<compile_context>
chip_gen: v7x
topology: tpu7x:2x2x1
jax: 0.10.0
libtpu: 0.0.40
codegen_flags: <defaults>
</compile_context>

<pallas_src>
import math
import functools

import jax
import jax.numpy as jnp
import numpy as np
from jax import lax
from jax.experimental import pallas as pl
from jax.experimental.pallas import tpu as pltpu


PARAM_ORDER = (
    "ln1_g", "ln1_b",
    "w_qkv", "b_qkv",
    "w_out", "b_out",
    "ln2_g", "ln2_b",
    "w1", "b1",
    "w2", "b2",
)


def clip_layer_kernel(x_ref,
                      g1_ref, b1_ref,
                      wqkv_ref, bqkv_ref,
                      wo_ref, bo_ref,
                      g2_ref, b2_ref,
                      w1_ref, bb1_ref,
                      w2_ref, bb2_ref,
                      o_ref,
                      attn_ref,
                      *, num_heads: int):
    Bt, S, D = x_ref.shape
    dh = D // num_heads
    M = Bt * S
    eps = 1e-5

    # Flatten the batch tile: every projection / MLP matmul gets M = Bt*S rows.
    x = x_ref[...].reshape(M, D)

    def layer_norm(v, g, b):
        mu = jnp.mean(v, axis=-1, keepdims=True)
        var = jnp.mean(jnp.square(v - mu), axis=-1, keepdims=True)
        return (v - mu) * lax.rsqrt(var + eps) * g + b

    # ---- LayerNorm 1 + causal multi-head self-attention ----
    xn = layer_norm(x, g1_ref[0], b1_ref[0])
    qkv = jnp.dot(xn, wqkv_ref[...], preferred_element_type=jnp.float32) + bqkv_ref[0]

    scale = 1.0 / math.sqrt(dh)
    q = (qkv[:, 0:D] * scale).reshape(Bt, S, D)   # scale folded into q (S*dh, not S*S)
    k = qkv[:, D:2 * D].reshape(Bt, S, D)
    v = qkv[:, 2 * D:3 * D].reshape(Bt, S, D)

    rows = lax.broadcasted_iota(jnp.int32, (S, S), 0)
    cols = lax.broadcasted_iota(jnp.int32, (S, S), 1)
    # Strict upper triangle masked with a large finite negative (hoisted out of loop).
    mask_bias = jnp.where(cols > rows, -1e30, 0.0).astype(jnp.float32)

    for h in range(num_heads):          # static unroll over heads
        sl = slice(h * dh, (h + 1) * dh)
        qh, kh, vh = q[:, :, sl], k[:, :, sl], v[:, :, sl]
        s = jnp.einsum('bqd,bkd->bqk', qh, kh,
                       preferred_element_type=jnp.float32) + mask_bias
        s = s - jnp.max(s, axis=-1, keepdims=True)
        p = jnp.exp(s)
        p = p * pl.reciprocal(jnp.sum(p, axis=-1, keepdims=True))
        oh = jnp.einsum('bqk,bkd->bqd', p, vh, preferred_element_type=jnp.float32)
        # Write this head's output directly into its lane slice (no concatenate).
        attn_ref[:, sl] = oh.reshape(M, dh)

    attn = jnp.dot(attn_ref[...], wo_ref[...],
                   preferred_element_type=jnp.float32) + bo_ref[0]
    x1 = attn + x  # residual 1

    # ---- LayerNorm 2 + MLP with QuickGELU ----
    xn2 = layer_norm(x1, g2_ref[0], b2_ref[0])
    h1 = jnp.dot(xn2, w1_ref[...], preferred_element_type=jnp.float32) + bb1_ref[0]
    h1 = h1 * jax.nn.sigmoid(1.702 * h1)
    h2 = jnp.dot(h1, w2_ref[...], preferred_element_type=jnp.float32) + bb2_ref[0]

    o_ref[...] = (h2 + x1).reshape(Bt, S, D)  # residual 2


def clip_layer(x, params, num_heads, *, batch_tile=None):
    B, S, D = x.shape
    if batch_tile is None:
        # Aim for ~128 MXU rows per step, while keeping >=2 grid steps when possible.
        batch_tile = max(1, min(B // 2 if B > 1 else 1, max(1, 128 // S)))
        while B % batch_tile:
            batch_tile -= 1
    assert B % batch_tile == 0, "batch must be divisible by batch_tile"
    param_list = [params[key] for key in PARAM_ORDER]

    grid = (B // batch_tile,)
    weight_bytes = sum(int(p.size) * p.dtype.itemsize for p in param_list)
    block_bytes = batch_tile * S * D * 4            # one x/out block
    scratch_bytes = batch_tile * S * D * 4          # attention scratch
    act_bytes = batch_tile * S * (3 * D + 4 * D + 6 * D) * 4  # qkv, h1, temporaries

    def build(single_buffer_weights):
        n_buf = 1 if single_buffer_weights else 2
        resident = (weight_bytes * n_buf + 2 * 2 * block_bytes
                    + scratch_bytes + act_bytes)
        # Explicit scoped-VMEM budget: 2x headroom, floored at 32 MiB, capped at the
        # v7x physical 64 MiB.
        vmem_limit = int(min(max(2 * resident, 32 << 20), 64 << 20))

        in_specs = [pl.BlockSpec((batch_tile, S, D), lambda b: (b, 0, 0))]
        for p in param_list:
            if single_buffer_weights:
                # Constant index_map -> one resident copy is enough (no re-fetch).
                spec = pl.BlockSpec(p.shape, lambda b: (0, 0),
                                    pipeline_mode=pl.Buffered(1))
            else:
                spec = pl.BlockSpec(p.shape, lambda b: (0, 0))
            in_specs.append(spec)

        return pl.pallas_call(
            functools.partial(clip_layer_kernel, num_heads=num_heads),
            out_shape=jax.ShapeDtypeStruct((B, S, D), jnp.float32),
            grid_spec=pltpu.PrefetchScalarGridSpec(
                num_scalar_prefetch=0,
                grid=grid,
                in_specs=in_specs,
                out_specs=pl.BlockSpec((batch_tile, S, D), lambda b: (b, 0, 0)),
                scratch_shapes=[pltpu.VMEM((batch_tile * S, D), jnp.float32)],
            ),
            compiler_params=pltpu.CompilerParams(
                dimension_semantics=("parallel",),
                vmem_limit_bytes=vmem_limit,
            ),
        )

    try:
        return build(single_buffer_weights=hasattr(pl, "Buffered"))(x, *param_list)
    except Exception:
        # pl.Buffered(1) / pipeline_mode not supported on this jax build: fall back
        # to default (double-buffered) weight specs.
        return build(single_buffer_weights=False)(x, *param_list)


def clip_layer_ref(x, p, num_heads):
    """Pure-JAX reference matching the PyTorch forward semantics."""
    B, S, D = x.shape
    dh = D // num_heads

    def ln(v, g, b):
        mu = v.mean(-1, keepdims=True)
        var = ((v - mu) ** 2).mean(-1, keepdims=True)
        return (v - mu) / jnp.sqrt(var + 1e-5) * g + b

    residue = x
    xn = ln(x, p["ln1_g"][0], p["ln1_b"][0])
    qkv = xn @ p["w_qkv"] + p["b_qkv"][0]
    q, k, v = jnp.split(qkv, 3, axis=-1)
    q = q.reshape(B, S, num_heads, dh).transpose(0, 2, 1, 3)
    k = k.reshape(B, S, num_heads, dh).transpose(0, 2, 1, 3)
    v = v.reshape(B, S, num_heads, dh).transpose(0, 2, 1, 3)
    w = jnp.einsum("bhqd,bhkd->bhqk", q, k)
    mask = jnp.triu(jnp.ones((S, S), dtype=bool), 1)
    w = jnp.where(mask, -jnp.inf, w)
    w = w / math.sqrt(dh)
    w = jax.nn.softmax(w, axis=-1)
    o = jnp.einsum("bhqk,bhkd->bhqd", w, v).transpose(0, 2, 1, 3).reshape(B, S, D)
    o = o @ p["w_out"] + p["b_out"][0]
    x = o + residue

    residue = x
    xn = ln(x, p["ln2_g"][0], p["ln2_b"][0])
    h = xn @ p["w1"] + p["b1"][0]
    h = h * jax.nn.sigmoid(1.702 * h)
    h = h @ p["w2"] + p["b2"][0]
    return h + residue


def init_params(key, D):
    ks = jax.random.split(key, 8)
    scale = 0.02
    return {
        "ln1_g": jnp.ones((1, D), jnp.float32),
        "ln1_b": jnp.zeros((1, D), jnp.float32),
        "w_qkv": scale * jax.random.normal(ks[0], (D, 3 * D), jnp.float32),
        "b_qkv": scale * jax.random.normal(ks[1], (1, 3 * D), jnp.float32),
        "w_out": scale * jax.random.normal(ks[2], (D, D), jnp.float32),
        "b_out": scale * jax.random.normal(ks[3], (1, D), jnp.float32),
        "ln2_g": jnp.ones((1, D), jnp.float32),
        "ln2_b": jnp.zeros((1, D), jnp.float32),
        "w1": scale * jax.random.normal(ks[4], (D, 4 * D), jnp.float32),
        "b1": scale * jax.random.normal(ks[5], (1, 4 * D), jnp.float32),
        "w2": scale * jax.random.normal(ks[6], (4 * D, D), jnp.float32),
        "b2": scale * jax.random.normal(ks[7], (1, D), jnp.float32),
    }


if __name__ == "__main__":
    B, S, D, H = 4, 8, 128, 4  # batch, seq, embedding_dim, num_heads

    key = jax.random.PRNGKey(0)
    kx, kp = jax.random.split(key)
    x = jax.random.normal(kx, (B, S, D), jnp.float32)
    params = init_params(kp, D)

    out = clip_layer(x, params, H, batch_tile=2)  # grid=(2,) parallel, M=16 rows/step
    out = jax.block_until_ready(out)

    ref = clip_layer_ref(x, params, H)
    np.testing.assert_allclose(np.asarray(out), np.asarray(ref), atol=1e-4, rtol=1e-4)

    print("KERNEL_OK")
</pallas_src>

<mosaic_0001>
module attributes {stable_mosaic.version = 11 : i64} {
  func.func @clip_layer_kernel(%arg0: i32, %arg1: memref<2x8x128xf32, #tpu.memory_space<vmem>>, %arg2: memref<1x128xf32, #tpu.memory_space<vmem>>, %arg3: memref<1x128xf32, #tpu.memory_space<vmem>>, %arg4: memref<128x384xf32, #tpu.memory_space<vmem>>, %arg5: memref<1x384xf32, #tpu.memory_space<vmem>>, %arg6: memref<128x128xf32, #tpu.memory_space<vmem>>, %arg7: memref<1x128xf32, #tpu.memory_space<vmem>>, %arg8: memref<1x128xf32, #tpu.memory_space<vmem>>, %arg9: memref<1x128xf32, #tpu.memory_space<vmem>>, %arg10: memref<128x512xf32, #tpu.memory_space<vmem>>, %arg11: memref<1x512xf32, #tpu.memory_space<vmem>>, %arg12: memref<512x128xf32, #tpu.memory_space<vmem>>, %arg13: memref<1x128xf32, #tpu.memory_space<vmem>>, %arg14: memref<2x8x128xf32, #tpu.memory_space<vmem>>, %arg15: memref<16x128xf32, #tpu.memory_space<vmem>>) attributes {dimension_semantics = [#tpu.dimension_semantics<parallel>], iteration_bounds = array<i64: 2>, scalar_prefetch = 0 : i64, scratch_operands = 1 : i64, tpu.core_type = #tpu.core_type<tc>, window_params = [{transform_indices = @transform_0, window_bounds = array<i64: 2, 8, 128>}, {pipeline_mode = #tpu.pipeline_mode<synchronous>, transform_indices = @transform_1, window_bounds = array<i64: 1, 128>}, {pipeline_mode = #tpu.pipeline_mode<synchronous>, transform_indices = @transform_2, window_bounds = array<i64: 1, 128>}, {pipeline_mode = #tpu.pipeline_mode<synchronous>, transform_indices = @transform_3, window_bounds = array<i64: 128, 384>}, {pipeline_mode = #tpu.pipeline_mode<synchronous>, transform_indices = @transform_4, window_bounds = array<i64: 1, 384>}, {pipeline_mode = #tpu.pipeline_mode<synchronous>, transform_indices = @transform_5, window_bounds = array<i64: 128, 128>}, {pipeline_mode = #tpu.pipeline_mode<synchronous>, transform_indices = @transform_6, window_bounds = array<i64: 1, 128>}, {pipeline_mode = #tpu.pipeline_mode<synchronous>, transform_indices = @transform_7, window_bounds = array<i64: 1, 128>}, {pipeline_mode = #tpu.pipeline_mode<synchronous>, transform_indices = @transform_8, window_bounds = array<i64: 1, 128>}, {pipeline_mode = #tpu.pipeline_mode<synchronous>, transform_indices = @transform_9, window_bounds = array<i64: 128, 512>}, {pipeline_mode = #tpu.pipeline_mode<synchronous>, transform_indices = @transform_10, window_bounds = array<i64: 1, 512>}, {pipeline_mode = #tpu.pipeline_mode<synchronous>, transform_indices = @transform_11, window_bounds = array<i64: 512, 128>}, {pipeline_mode = #tpu.pipeline_mode<synchronous>, transform_indices = @transform_12, window_bounds = array<i64: 1, 128>}, {transform_indices = @transform_13, window_bounds = array<i64: 2, 8, 128>}]} {
    %c0 = arith.constant 0 : index
    %c0_0 = arith.constant 0 : index
    %c0_1 = arith.constant 0 : index
    %0 = vector.load %arg1[%c0, %c0_0, %c0_1] : memref<2x8x128xf32, #tpu.memory_space<vmem>>, vector<2x8x128xf32>
    %1 = vector.shape_cast %0 : vector<2x8x128xf32> to vector<16x128xf32>
    %c0_2 = arith.constant 0 : index
    %c0_3 = arith.constant 0 : index
    %2 = vector.load %arg2[%c0_2, %c0_3] : memref<1x128xf32, #tpu.memory_space<vmem>>, vector<1x128xf32>
    %3 = vector.shape_cast %2 : vector<1x128xf32> to vector<128xf32>
    %c0_4 = arith.constant 0 : index
    %c0_5 = arith.constant 0 : index
    %4 = vector.load %arg3[%c0_4, %c0_5] : memref<1x128xf32, #tpu.memory_space<vmem>>, vector<1x128xf32>
    %5 = vector.shape_cast %4 : vector<1x128xf32> to vector<128xf32>
    %cst = arith.constant dense<0.000000e+00> : vector<16xf32>
    %6 = vector.multi_reduction <add>, %1, %cst [1] : vector<16x128xf32> to vector<16xf32>
    %7 = vector.shape_cast %6 : vector<16xf32> to vector<16x1xf32>
    %cst_6 = arith.constant 1.280000e+02 : f32
    %8 = vector.broadcast %cst_6 : f32 to vector<16x1xf32>
    %9 = arith.divf %7, %8 : vector<16x1xf32>
    %10 = vector.broadcast %9 : vector<16x1xf32> to vector<16x128xf32>
    %11 = arith.subf %1, %10 : vector<16x128xf32>
    %12 = arith.mulf %11, %11 : vector<16x128xf32>
    %cst_7 = arith.constant dense<0.000000e+00> : vector<16xf32>
    %13 = vector.multi_reduction <add>, %12, %cst_7 [1] : vector<16x128xf32> to vector<16xf32>
    %14 = vector.shape_cast %13 : vector<16xf32> to vector<16x1xf32>
    %cst_8 = arith.constant 1.280000e+02 : f32
    %15 = vector.broadcast %cst_8 : f32 to vector<16x1xf32>
    %16 = arith.divf %14, %15 : vector<16x1xf32>
    %17 = vector.broadcast %9 : vector<16x1xf32> to vector<16x128xf32>
    %18 = arith.subf %1, %17 : vector<16x128xf32>
    %cst_9 = arith.constant 9.99999974E-6 : f32
    %19 = vector.broadcast %cst_9 : f32 to vector<16x1xf32>
    %20 = arith.addf %16, %19 : vector<16x1xf32>
    %21 = math.rsqrt %20 : vector<16x1xf32>
    %22 = vector.broadcast %21 : vector<16x1xf32> to vector<16x128xf32>
    %23 = arith.mulf %18, %22 : vector<16x128xf32>
    %24 = vector.shape_cast %3 : vector<128xf32> to vector<1x128xf32>
    %25 = vector.broadcast %24 : vector<1x128xf32> to vector<16x128xf32>
    %26 = arith.mulf %23, %25 : vector<16x128xf32>
    %27 = vector.shape_cast %5 : vector<128xf32> to vector<1x128xf32>
    %28 = vector.broadcast %27 : vector<1x128xf32> to vector<16x128xf32>
    %29 = arith.addf %26, %28 : vector<16x128xf32>
    %c0_10 = arith.constant 0 : index
    %c0_11 = arith.constant 0 : index
    %30 = vector.load %arg4[%c0_10, %c0_11] : memref<128x384xf32, #tpu.memory_space<vmem>>, vector<128x384xf32>
    %cst_12 = arith.constant dense<0.000000e+00> : vector<16x384xf32>
    %31 = tpu.matmul %29, %30, %cst_12 {dimension_numbers = #tpu.dot_dimension_numbers<[1], [0], [0], [1], [0, 0, 1, 1], [], []>} : vector<16x128xf32>, vector<128x384xf32>, vector<16x384xf32> -> vector<16x384xf32>
    %c0_13 = arith.constant 0 : index
    %c0_14 = arith.constant 0 : index
    %32 = vector.load %arg5[%c0_13, %c0_14] : memref<1x384xf32, #tpu.memory_space<vmem>>, vector<1x384xf32>
    %33 = vector.shape_cast %32 : vector<1x384xf32> to vector<384xf32>
    %34 = vector.shape_cast %33 : vector<384xf32> to vector<1x384xf32>
    %35 = vector.broadcast %34 : vector<1x384xf32> to vector<16x384xf32>
    %36 = arith.addf %31, %35 : vector<16x384xf32>
    %37 = vector.extract_strided_slice %36 {offsets = [0, 0], sizes = [16, 128], strides = [1, 1]} : vector<16x384xf32> to vector<16x128xf32>
    %cst_15 = arith.constant 0.176776692 : f32
    %38 = vector.broadcast %cst_15 : f32 to vector<16x128xf32>
    %39 = arith.mulf %37, %38 : vector<16x128xf32>
    %40 = vector.shape_cast %39 : vector<16x128xf32> to vector<2x8x128xf32>
    %41 = vector.extract_strided_slice %36 {offsets = [0, 128], sizes = [16, 128], strides = [1, 1]} : vector<16x384xf32> to vector<16x128xf32>
    %42 = vector.shape_cast %41 : vector<16x128xf32> to vector<2x8x128xf32>
    %43 = vector.extract_strided_slice %36 {offsets = [0, 256], sizes = [16, 128], strides = [1, 1]} : vector<16x384xf32> to vector<16x128xf32>
    %44 = vector.shape_cast %43 : vector<16x128xf32> to vector<2x8x128xf32>
    %45 = tpu.iota {dimensions = array<i32: 0>} : vector<8x8xi32>
    %46 = tpu.iota {dimensions = array<i32: 1>} : vector<8x8xi32>
    %47 = arith.cmpi sgt, %46, %45 : vector<8x8xi32>
    %cst_16 = arith.constant -1.000000e+30 : f32
    %cst_17 = arith.constant 0.000000e+00 : f32
    %48 = vector.broadcast %cst_16 : f32 to vector<8x8xf32>
    %49 = vector.broadcast %cst_17 : f32 to vector<8x8xf32>
    %50 = arith.select %47, %48, %49 : vector<8x8xi1>, vector<8x8xf32>
    %51 = vector.extract_strided_slice %40 {offsets = [0, 0, 0], sizes = [2, 8, 32], strides = [1, 1, 1]} : vector<2x8x128xf32> to vector<2x8x32xf32>
    %52 = vector.extract_strided_slice %42 {offsets = [0, 0, 0], sizes = [2, 8, 32], strides = [1, 1, 1]} : vector<2x8x128xf32> to vector<2x8x32xf32>
    %53 = vector.extract_strided_slice %44 {offsets = [0, 0, 0], sizes = [2, 8, 32], strides = [1, 1, 1]} : vector<2x8x128xf32> to vector<2x8x32xf32>
    "tpu.trace_start"() <{level = 10 : i32, message = "bqd,bkd->bqk"}> : () -> ()
    %cst_18 = arith.constant dense<0.000000e+00> : vector<2x8x8xf32>
    %54 = tpu.matmul %51, %52, %cst_18 {dimension_numbers = #tpu.dot_dimension_numbers<[2], [2], [1], [1], [0, 0, 0, 1, 1, 1], [0], [0]>} : vector<2x8x32xf32>, vector<2x8x32xf32>, vector<2x8x8xf32> -> vector<2x8x8xf32>
    "tpu.trace_stop"() : () -> ()
    %55 = vector.shape_cast %50 : vector<8x8xf32> to vector<1x8x8xf32>
    %56 = vector.broadcast %55 : vector<1x8x8xf32> to vector<2x8x8xf32>
    %57 = arith.addf %54, %56 : vector<2x8x8xf32>
    %cst_19 = arith.constant dense<0xFF800000> : vector<2x8xf32>
    %58 = vector.multi_reduction <maximumf>, %57, %cst_19 [2] : vector<2x8x8xf32> to vector<2x8xf32>
    %59 = vector.shape_cast %58 : vector<2x8xf32> to vector<2x8x1xf32>
    %60 = vector.broadcast %59 : vector<2x8x1xf32> to vector<2x8x8xf32>
    %61 = arith.subf %57, %60 : vector<2x8x8xf32>
    %62 = math.exp %61 : vector<2x8x8xf32>
    %cst_20 = arith.constant dense<0.000000e+00> : vector<2x8xf32>
    %63 = vector.multi_reduction <add>, %62, %cst_20 [2] : vector<2x8x8xf32> to vector<2x8xf32>
    %64 = vector.shape_cast %63 : vector<2x8xf32> to vector<2x8x1xf32>
    %65 = tpu.reciprocal %64 : vector<2x8x1xf32> -> vector<2x8x1xf32>
    %66 = vector.broadcast %65 : vector<2x8x1xf32> to vector<2x8x8xf32>
    %67 = arith.mulf %62, %66 : vector<2x8x8xf32>
    "tpu.trace_start"() <{level = 10 : i32, message = "bqk,bkd->bqd"}> : () -> ()
    %cst_21 = arith.constant dense<0.000000e+00> : vector<2x8x32xf32>
    %68 = tpu.matmul %67, %53, %cst_21 {dimension_numbers = #tpu.dot_dimension_numbers<[2], [1], [1], [2], [0, 0, 0, 1, 1, 2], [0], [0]>} : vector<2x8x8xf32>, vector<2x8x32xf32>, vector<2x8x32xf32> -> vector<2x8x32xf32>
    "tpu.trace_stop"() : () -> ()
    %69 = vector.shape_cast %68 : vector<2x8x32xf32> to vector<16x32xf32>
    %c0_22 = arith.constant 0 : index
    %c0_23 = arith.constant 0 : index
    %70 = vector.load %arg15[%c0_22, %c0_23] : memref<16x128xf32, #tpu.memory_space<vmem>>, vector<16x32xf32>
    tpu.vector_store %arg15[%c0_22, %c0_23], %69 {strides = array<i32>} : memref<16x128xf32, #tpu.memory_space<vmem>>, vector<16x32xf32>,
    %71 = vector.extract_strided_slice %40 {offsets = [0, 0, 32], sizes = [2, 8, 32], strides = [1, 1, 1]} : vector<2x8x128xf32> to vector<2x8x32xf32>
    %72 = vector.extract_strided_slice %42 {offsets = [0, 0, 32], sizes = [2, 8, 32], strides = [1, 1, 1]} : vector<2x8x128xf32> to vector<2x8x32xf32>
    %73 = vector.extract_strided_slice %44 {offsets = [0, 0, 32], sizes = [2, 8, 32], strides = [1, 1, 1]} : vector<2x8x128xf32> to vector<2x8x32xf32>
    "tpu.trace_start"() <{level = 10 : i32, message = "bqd,bkd->bqk"}> : () -> ()
    %cst_24 = arith.constant dense<0.000000e+00> : vector<2x8x8xf32>
    %74 = tpu.matmul %71, %72, %cst_24 {dimension_numbers = #tpu.dot_dimension_numbers<[2], [2], [1], [1], [0, 0, 0, 1, 1, 1], [0], [0]>} : vector<2x8x32xf32>, vector<2x8x32xf32>, vector<2x8x8xf32> -> vector<2x8x8xf32>
    "tpu.trace_stop"() : () -> ()
    %75 = vector.shape_cast %50 : vector<8x8xf32> to vector<1x8x8xf32>
    %76 = vector.broadcast %75 : vector<1x8x8xf32> to vector<2x8x8xf32>
    %77 = arith.addf %74, %76 : vector<2x8x8xf32>
    %cst_25 = arith.constant dense<0xFF800000> : vector<2x8xf32>
    %78 = vector.multi_reduction <maximumf>, %77, %cst_25 [2] : vector<2x8x8xf32> to vector<2x8xf32>
    %79 = vector.shape_cast %78 : vector<2x8xf32> to vector<2x8x1xf32>
    %80 = vector.broadcast %79 : vector<2x8x1xf32> to vector<2x8x8xf32>
    %81 = arith.subf %77, %80 : vector<2x8x8xf32>
    %82 = math.exp %81 : vector<2x8x8xf32>
    %cst_26 = arith.constant dense<0.000000e+00> : vector<2x8xf32>
    %83 = vector.multi_reduction <add>, %82, %cst_26 [2] : vector<2x8x8xf32> to vector<2x8xf32>
    %84 = vector.shape_cast %83 : vector<2x8xf32> to vector<2x8x1xf32>
    %85 = tpu.reciprocal %84 : vector<2x8x1xf32> -> vector<2x8x1xf32>
    %86 = vector.broadcast %85 : vector<2x8x1xf32> to vector<2x8x8xf32>
    %87 = arith.mulf %82, %86 : vector<2x8x8xf32>
    "tpu.trace_start"() <{level = 10 : i32, message = "bqk,bkd->bqd"}> : () -> ()
    %cst_27 = arith.constant dense<0.000000e+00> : vector<2x8x32xf32>
    %88 = tpu.matmul %87, %73, %cst_27 {dimension_numbers = #tpu.dot_dimension_numbers<[2], [1], [1], [2], [0, 0, 0, 1, 1, 2], [0], [0]>} : vector<2x8x8xf32>, vector<2x8x32xf32>, vector<2x8x32xf32> -> vector<2x8x32xf32>
    "tpu.trace_stop"() : () -> ()
    %89 = vector.shape_cast %88 : vector<2x8x32xf32> to vector<16x32xf32>
    %c0_28 = arith.constant 0 : index
    %c32 = arith.constant 32 : index
    %90 = vector.load %arg15[%c0_28, %c32] : memref<16x128xf32, #tpu.memory_space<vmem>>, vector<16x32xf32>
    tpu.vector_store %arg15[%c0_28, %c32], %89 {strides = array<i32>} : memref<16x128xf32, #tpu.memory_space<vmem>>, vector<16x32xf32>,
    %91 = vector.extract_strided_slice %40 {offsets = [0, 0, 64], sizes = [2, 8, 32], strides = [1, 1, 1]} : vector<2x8x128xf32> to vector<2x8x32xf32>
    %92 = vector.extract_strided_slice %42 {offsets = [0, 0, 64], sizes = [2, 8, 32], strides = [1, 1, 1]} : vector<2x8x128xf32> to vector<2x8x32xf32>
    %93 = vector.extract_strided_slice %44 {offsets = [0, 0, 64], sizes = [2, 8, 32], strides = [1, 1, 1]} : vector<2x8x128xf32> to vector<2x8x32xf32>
    "tpu.trace_start"() <{level = 10 : i32, message = "bqd,bkd->bqk"}> : () -> ()
    %cst_29 = arith.constant dense<0.000000e+00> : vector<2x8x8xf32>
    %94 = tpu.matmul %91, %92, %cst_29 {dimension_numbers = #tpu.dot_dimension_numbers<[2], [2], [1], [1], [0, 0, 0, 1, 1, 1], [0], [0]>} : vector<2x8x32xf32>, vector<2x8x32xf32>, vector<2x8x8xf32> -> vector<2x8x8xf32>
    "tpu.trace_stop"() : () -> ()
    %95 = vector.shape_cast %50 : vector<8x8xf32> to vector<1x8x8xf32>
    %96 = vector.broadcast %95 : vector<1x8x8xf32> to vector<2x8x8xf32>
    %97 = arith.addf %94, %96 : vector<2x8x8xf32>
    %cst_30 = arith.constant dense<0xFF800000> : vector<2x8xf32>
    %98 = vector.multi_reduction <maximumf>, %97, %cst_30 [2] : vector<2x8x8xf32> to vector<2x8xf32>
    %99 = vector.shape_cast %98 : vector<2x8xf32> to vector<2x8x1xf32>
    %100 = vector.broadcast %99 : vector<2x8x1xf32> to vector<2x8x8xf32>
    %101 = arith.subf %97, %100 : vector<2x8x8xf32>
    %102 = math.exp %101 : vector<2x8x8xf32>
    %cst_31 = arith.constant dense<0.000000e+00> : vector<2x8xf32>
    %103 = vector.multi_reduction <add>, %102, %cst_31 [2] : vector<2x8x8xf32> to vector<2x8xf32>
    %104 = vector.shape_cast %103 : vector<2x8xf32> to vector<2x8x1xf32>
    %105 = tpu.reciprocal %104 : vector<2x8x1xf32> -> vector<2x8x1xf32>
    %106 = vector.broadcast %105 : vector<2x8x1xf32> to vector<2x8x8xf32>
    %107 = arith.mulf %102, %106 : vector<2x8x8xf32>
    "tpu.trace_start"() <{level = 10 : i32, message = "bqk,bkd->bqd"}> : () -> ()
    %cst_32 = arith.constant dense<0.000000e+00> : vector<2x8x32xf32>
    %108 = tpu.matmul %107, %93, %cst_32 {dimension_numbers = #tpu.dot_dimension_numbers<[2], [1], [1], [2], [0, 0, 0, 1, 1, 2], [0], [0]>} : vector<2x8x8xf32>, vector<2x8x32xf32>, vector<2x8x32xf32> -> vector<2x8x32xf32>
    "tpu.trace_stop"() : () -> ()
    %109 = vector.shape_cast %108 : vector<2x8x32xf32> to vector<16x32xf32>
    %c0_33 = arith.constant 0 : index
    %c64 = arith.constant 64 : index
    %110 = vector.load %arg15[%c0_33, %c64] : memref<16x128xf32, #tpu.memory_space<vmem>>, vector<16x32xf32>
    tpu.vector_store %arg15[%c0_33, %c64], %109 {strides = array<i32>} : memref<16x128xf32, #tpu.memory_space<vmem>>, vector<16x32xf32>,
    %111 = vector.extract_strided_slice %40 {offsets = [0, 0, 96], sizes = [2, 8, 32], strides = [1, 1, 1]} : vector<2x8x128xf32> to vector<2x8x32xf32>
    %112 = vector.extract_strided_slice %42 {offsets = [0, 0, 96], sizes = [2, 8, 32], strides = [1, 1, 1]} : vector<2x8x128xf32> to vector<2x8x32xf32>
    %113 = vector.extract_strided_slice %44 {offsets = [0, 0, 96], sizes = [2, 8, 32], strides = [1, 1, 1]} : vector<2x8x128xf32> to vector<2x8x32xf32>
    "tpu.trace_start"() <{level = 10 : i32, message = "bqd,bkd->bqk"}> : () -> ()
    %cst_34 = arith.constant dense<0.000000e+00> : vector<2x8x8xf32>
    %114 = tpu.matmul %111, %112, %cst_34 {dimension_numbers = #tpu.dot_dimension_numbers<[2], [2], [1], [1], [0, 0, 0, 1, 1, 1], [0], [0]>} : vector<2x8x32xf32>, vector<2x8x32xf32>, vector<2x8x8xf32> -> vector<2x8x8xf32>
    "tpu.trace_stop"() : () -> ()
    %115 = vector.shape_cast %50 : vector<8x8xf32> to vector<1x8x8xf32>
    %116 = vector.broadcast %115 : vector<1x8x8xf32> to vector<2x8x8xf32>
    %117 = arith.addf %114, %116 : vector<2x8x8xf32>
    %cst_35 = arith.constant dense<0xFF800000> : vector<2x8xf32>
    %118 = vector.multi_reduction <maximumf>, %117, %cst_35 [2] : vector<2x8x8xf32> to vector<2x8xf32>
    %119 = vector.shape_cast %118 : vector<2x8xf32> to vector<2x8x1xf32>
    %120 = vector.broadcast %119 : vector<2x8x1xf32> to vector<2x8x8xf32>
    %121 = arith.subf %117, %120 : vector<2x8x8xf32>
    %122 = math.exp %121 : vector<2x8x8xf32>
    %cst_36 = arith.constant dense<0.000000e+00> : vector<2x8xf32>
    %123 = vector.multi_reduction <add>, %122, %cst_36 [2] : vector<2x8x8xf32> to vector<2x8xf32>
    %124 = vector.shape_cast %123 : vector<2x8xf32> to vector<2x8x1xf32>
    %125 = tpu.reciprocal %124 : vector<2x8x1xf32> -> vector<2x8x1xf32>
    %126 = vector.broadcast %125 : vector<2x8x1xf32> to vector<2x8x8xf32>
    %127 = arith.mulf %122, %126 : vector<2x8x8xf32>
    "tpu.trace_start"() <{level = 10 : i32, message = "bqk,bkd->bqd"}> : () -> ()
    %cst_37 = arith.constant dense<0.000000e+00> : vector<2x8x32xf32>
    %128 = tpu.matmul %127, %113, %cst_37 {dimension_numbers = #tpu.dot_dimension_numbers<[2], [1], [1], [2], [0, 0, 0, 1, 1, 2], [0], [0]>} : vector<2x8x8xf32>, vector<2x8x32xf32>, vector<2x8x32xf32> -> vector<2x8x32xf32>
    "tpu.trace_stop"() : () -> ()
    %129 = vector.shape_cast %128 : vector<2x8x32xf32> to vector<16x32xf32>
    %c0_38 = arith.constant 0 : index
    %c96 = arith.constant 96 : index
    %130 = vector.load %arg15[%c0_38, %c96] : memref<16x128xf32, #tpu.memory_space<vmem>>, vector<16x32xf32>
    tpu.vector_store %arg15[%c0_38, %c96], %129 {strides = array<i32>} : memref<16x128xf32, #tpu.memory_space<vmem>>, vector<16x32xf32>,
    %c0_39 = arith.constant 0 : index
    %c0_40 = arith.constant 0 : index
    %131 = vector.load %arg15[%c0_39, %c0_40] : memref<16x128xf32, #tpu.memory_space<vmem>>, vector<16x128xf32>
    %c0_41 = arith.constant 0 : index
    %c0_42 = arith.constant 0 : index
    %132 = vector.load %arg6[%c0_41, %c0_42] : memref<128x128xf32, #tpu.memory_space<vmem>>, vector<128x128xf32>
    %cst_43 = arith.constant dense<0.000000e+00> : vector<16x128xf32>
    %133 = tpu.matmul %131, %132, %cst_43 {dimension_numbers = #tpu.dot_dimension_numbers<[1], [0], [0], [1], [0, 0, 1, 1], [], []>} : vector<16x128xf32>, vector<128x128xf32>, vector<16x128xf32> -> vector<16x128xf32>
    %c0_44 = arith.constant 0 : index
    %c0_45 = arith.constant 0 : index
    %134 = vector.load %arg7[%c0_44, %c0_45] : memref<1x128xf32, #tpu.memory_space<vmem>>, vector<1x128xf32>
    %135 = vector.shape_cast %134 : vector<1x128xf32> to vector<128xf32>
    %136 = vector.shape_cast %135 : vector<128xf32> to vector<1x128xf32>
    %137 = vector.broadcast %136 : vector<1x128xf32> to vector<16x128xf32>
    %138 = arith.addf %133, %137 : vector<16x128xf32>
    %139 = arith.addf %138, %1 : vector<16x128xf32>
    %c0_46 = arith.constant 0 : index
    %c0_47 = arith.constant 0 : index
    %140 = vector.load %arg8[%c0_46, %c0_47] : memref<1x128xf32, #tpu.memory_space<vmem>>, vector<1x128xf32>
    %141 = vector.shape_cast %140 : vector<1x128xf32> to vector<128xf32>
    %c0_48 = arith.constant 0 : index
    %c0_49 = arith.constant 0 : index
    %142 = vector.load %arg9[%c0_48, %c0_49] : memref<1x128xf32, #tpu.memory_space<vmem>>, vector<1x128xf32>
    %143 = vector.shape_cast %142 : vector<1x128xf32> to vector<128xf32>
    %cst_50 = arith.constant dense<0.000000e+00> : vector<16xf32>
    %144 = vector.multi_reduction <add>, %139, %cst_50 [1] : vector<16x128xf32> to vector<16xf32>
    %145 = vector.shape_cast %144 : vector<16xf32> to vector<16x1xf32>
    %cst_51 = arith.constant 1.280000e+02 : f32
    %146 = vector.broadcast %cst_51 : f32 to vector<16x1xf32>
    %147 = arith.divf %145, %146 : vector<16x1xf32>
    %148 = vector.broadcast %147 : vector<16x1xf32> to vector<16x128xf32>
    %149 = arith.subf %139, %148 : vector<16x128xf32>
    %150 = arith.mulf %149, %149 : vector<16x128xf32>
    %cst_52 = arith.constant dense<0.000000e+00> : vector<16xf32>
    %151 = vector.multi_reduction <add>, %150, %cst_52 [1] : vector<16x128xf32> to vector<16xf32>
    %152 = vector.shape_cast %151 : vector<16xf32> to vector<16x1xf32>
    %cst_53 = arith.constant 1.280000e+02 : f32
    %153 = vector.broadcast %cst_53 : f32 to vector<16x1xf32>
    %154 = arith.divf %152, %153 : vector<16x1xf32>
    %155 = vector.broadcast %147 : vector<16x1xf32> to vector<16x128xf32>
    %156 = arith.subf %139, %155 : vector<16x128xf32>
    %cst_54 = arith.constant 9.99999974E-6 : f32
    %157 = vector.broadcast %cst_54 : f32 to vector<16x1xf32>
    %158 = arith.addf %154, %157 : vector<16x1xf32>
    %159 = math.rsqrt %158 : vector<16x1xf32>
    %160 = vector.broadcast %159 : vector<16x1xf32> to vector<16x128xf32>
    %161 = arith.mulf %156, %160 : vector<16x128xf32>
    %162 = vector.shape_cast %141 : vector<128xf32> to vector<1x128xf32>
    %163 = vector.broadcast %162 : vector<1x128xf32> to vector<16x128xf32>
    %164 = arith.mulf %161, %163 : vector<16x128xf32>
    %165 = vector.shape_cast %143 : vector<128xf32> to vector<1x128xf32>
    %166 = vector.broadcast %165 : vector<1x128xf32> to vector<16x128xf32>
    %167 = arith.addf %164, %166 : vector<16x128xf32>
    %c0_55 = arith.constant 0 : index
    %c0_56 = arith.constant 0 : index
    %168 = vector.load %arg10[%c0_55, %c0_56] : memref<128x512xf32, #tpu.memory_space<vmem>>, vector<128x512xf32>
    %cst_57 = arith.constant dense<0.000000e+00> : vector<16x512xf32>
    %169 = tpu.matmul %167, %168, %cst_57 {dimension_numbers = #tpu.dot_dimension_numbers<[1], [0], [0], [1], [0, 0, 1, 1], [], []>} : vector<16x128xf32>, vector<128x512xf32>, vector<16x512xf32> -> vector<16x512xf32>
    %c0_58 = arith.constant 0 : index
    %c0_59 = arith.constant 0 : index
    %170 = vector.load %arg11[%c0_58, %c0_59] : memref<1x512xf32, #tpu.memory_space<vmem>>, vector<1x512xf32>
    %171 = vector.shape_cast %170 : vector<1x512xf32> to vector<512xf32>
    %172 = vector.shape_cast %171 : vector<512xf32> to vector<1x512xf32>
    %173 = vector.broadcast %172 : vector<1x512xf32> to vector<16x512xf32>
    %174 = arith.addf %169, %173 : vector<16x512xf32>
    %cst_60 = arith.constant 1.702000e+00 : f32
    %175 = vector.broadcast %cst_60 : f32 to vector<16x512xf32>
    %176 = arith.mulf %175, %174 : vector<16x512xf32>
    %177 = arith.negf %176 : vector<16x512xf32>
    %178 = math.exp %177 : vector<16x512xf32>
    %cst_61 = arith.constant 1.000000e+00 : f32
    %179 = vector.broadcast %cst_61 : f32 to vector<16x512xf32>
    %180 = arith.addf %179, %178 : vector<16x512xf32>
    %181 = arith.divf %179, %180 : vector<16x512xf32>
    %182 = arith.mulf %174, %181 : vector<16x512xf32>
    %c0_62 = arith.constant 0 : index
    %c0_63 = arith.constant 0 : index
    %183 = vector.load %arg12[%c0_62, %c0_63] : memref<512x128xf32, #tpu.memory_space<vmem>>, vector<512x128xf32>
    %cst_64 = arith.constant dense<0.000000e+00> : vector<16x128xf32>
    %184 = tpu.matmul %182, %183, %cst_64 {dimension_numbers = #tpu.dot_dimension_numbers<[1], [0], [0], [1], [0, 0, 1, 1], [], []>} : vector<16x512xf32>, vector<512x128xf32>, vector<16x128xf32> -> vector<16x128xf32>
    %c0_65 = arith.constant 0 : index
    %c0_66 = arith.constant 0 : index
    %185 = vector.load %arg13[%c0_65, %c0_66] : memref<1x128xf32, #tpu.memory_space<vmem>>, vector<1x128xf32>
    %186 = vector.shape_cast %185 : vector<1x128xf32> to vector<128xf32>
    %187 = vector.shape_cast %186 : vector<128xf32> to vector<1x128xf32>
    %188 = vector.broadcast %187 : vector<1x128xf32> to vector<16x128xf32>
    %189 = arith.addf %184, %188 : vector<16x128xf32>
    %190 = arith.addf %189, %139 : vector<16x128xf32>
    %191 = vector.shape_cast %190 : vector<16x128xf32> to vector<2x8x128xf32>
    %c0_67 = arith.constant 0 : index
    %c0_68 = arith.constant 0 : index
    %c0_69 = arith.constant 0 : index
    %192 = vector.load %arg14[%c0_67, %c0_68, %c0_69] : memref<2x8x128xf32, #tpu.memory_space<vmem>>, vector<2x8x128xf32>
    tpu.vector_store %arg14[%c0_67, %c0_68, %c0_69], %191 {strides = array<i32>} : memref<2x8x128xf32, #tpu.memory_space<vmem>>, vector<2x8x128xf32>,
    return
  }
  func.func @transform_0(%arg0: i32) -> (i32, i32, i32) {
    %c0_i32 = arith.constant 0 : i32
    %c0_i32_0 = arith.constant 0 : i32
    %c0_i32_1 = arith.constant 0 : i32
    return %arg0, %c0_i32, %c0_i32_0 : i32, i32, i32
  }
  func.func @transform_1(%arg0: i32) -> (i32, i32) {
    %c0_i32 = arith.constant 0 : i32
    %c0_i32_0 = arith.constant 0 : i32
    %c0_i32_1 = arith.constant 0 : i32
    return %c0_i32, %c0_i32_0 : i32, i32
  }
  func.func @transform_2(%arg0: i32) -> (i32, i32) {
    %c0_i32 = arith.constant 0 : i32
    %c0_i32_0 = arith.constant 0 : i32
    %c0_i32_1 = arith.constant 0 : i32
    return %c0_i32, %c0_i32_0 : i32, i32
  }
  func.func @transform_3(%arg0: i32) -> (i32, i32) {
    %c0_i32 = arith.constant 0 : i32
    %c0_i32_0 = arith.constant 0 : i32
    %c0_i32_1 = arith.constant 0 : i32
    return %c0_i32, %c0_i32_0 : i32, i32
  }
  func.func @transform_4(%arg0: i32) -> (i32, i32) {
    %c0_i32 = arith.constant 0 : i32
    %c0_i32_0 = arith.constant 0 : i32
    %c0_i32_1 = arith.constant 0 : i32
    return %c0_i32, %c0_i32_0 : i32, i32
  }
  func.func @transform_5(%arg0: i32) -> (i32, i32) {
    %c0_i32 = arith.constant 0 : i32
    %c0_i32_0 = arith.constant 0 : i32
    %c0_i32_1 = arith.constant 0 : i32
    return %c0_i32, %c0_i32_0 : i32, i32
  }
  func.func @transform_6(%arg0: i32) -> (i32, i32) {
    %c0_i32 = arith.constant 0 : i32
    %c0_i32_0 = arith.constant 0 : i32
    %c0_i32_1 = arith.constant 0 : i32
    return %c0_i32, %c0_i32_0 : i32, i32
  }
  func.func @transform_7(%arg0: i32) -> (i32, i32) {
    %c0_i32 = arith.constant 0 : i32
    %c0_i32_0 = arith.constant 0 : i32
    %c0_i32_1 = arith.constant 0 : i32
    return %c0_i32, %c0_i32_0 : i32, i32
  }
  func.func @transform_8(%arg0: i32) -> (i32, i32) {
    %c0_i32 = arith.constant 0 : i32
    %c0_i32_0 = arith.constant 0 : i32
    %c0_i32_1 = arith.constant 0 : i32
    return %c0_i32, %c0_i32_0 : i32, i32
  }
  func.func @transform_9(%arg0: i32) -> (i32, i32) {
    %c0_i32 = arith.constant 0 : i32
    %c0_i32_0 = arith.constant 0 : i32
    %c0_i32_1 = arith.constant 0 : i32
    return %c0_i32, %c0_i32_0 : i32, i32
  }
  func.func @transform_10(%arg0: i32) -> (i32, i32) {
    %c0_i32 = arith.constant 0 : i32
    %c0_i32_0 = arith.constant 0 : i32
    %c0_i32_1 = arith.constant 0 : i32
    return %c0_i32, %c0_i32_0 : i32, i32
  }
  func.func @transform_11(%arg0: i32) -> (i32, i32) {
    %c0_i32 = arith.constant 0 : i32
    %c0_i32_0 = arith.constant 0 : i32
    %c0_i32_1 = arith.constant 0 : i32
    return %c0_i32, %c0_i32_0 : i32, i32
  }
  func.func @transform_12(%arg0: i32) -> (i32, i32) {
    %c0_i32 = arith.constant 0 : i32
    %c0_i32_0 = arith.constant 0 : i32
    %c0_i32_1 = arith.constant 0 : i32
    return %c0_i32, %c0_i32_0 : i32, i32
  }
  func.func @transform_13(%arg0: i32) -> (i32, i32, i32) {
    %c0_i32 = arith.constant 0 : i32
    %c0_i32_0 = arith.constant 0 : i32
    %c0_i32_1 = arith.constant 0 : i32
    return %arg0, %c0_i32, %c0_i32_0 : i32, i32, i32
  }
}

module attributes {stable_mosaic.version = 11 : i64} {
  func.func @clip_layer_kernel(%arg0: i32, %arg1: memref<2x8x128xf32, #tpu.memory_space<vmem>>, %arg2: memref<1x128xf32, #tpu.memory_space<vmem>>, %arg3: memref<1x128xf32, #tpu.memory_space<vmem>>, %arg4: memref<128x384xf32, #tpu.memory_space<vmem>>, %arg5: memref<1x384xf32, #tpu.memory_space<vmem>>, %arg6: memref<128x128xf32, #tpu.memory_space<vmem>>, %arg7: memref<1x128xf32, #tpu.memory_space<vmem>>, %arg8: memref<1x128xf32, #tpu.memory_space<vmem>>, %arg9: memref<1x128xf32, #tpu.memory_space<vmem>>, %arg10: memref<128x512xf32, #tpu.memory_space<vmem>>, %arg11: memref<1x512xf32, #tpu.memory_space<vmem>>, %arg12: memref<512x128xf32, #tpu.memory_space<vmem>>, %arg13: memref<1x128xf32, #tpu.memory_space<vmem>>, %arg14: memref<2x8x128xf32, #tpu.memory_space<vmem>>, %arg15: memref<16x128xf32, #tpu.memory_space<vmem>>) attributes {dimension_semantics = [#tpu.dimension_semantics<parallel>], iteration_bounds = array<i64: 2>, scalar_prefetch = 0 : i64, scratch_operands = 1 : i64, tpu.core_type = #tpu.core_type<tc>, window_params = [{transform_indices = @transform_0, window_bounds = array<i64: 2, 8, 128>}, {pipeline_mode = #tpu.pipeline_mode<synchronous>, transform_indices = @transform_1, window_bounds = array<i64: 1, 128>}, {pipeline_mode = #tpu.pipeline_mode<synchronous>, transform_indices = @transform_2, window_bounds = array<i64: 1, 128>}, {pipeline_mode = #tpu.pipeline_mode<synchronous>, transform_indices = @transform_3, window_bounds = array<i64: 128, 384>}, {pipeline_mode = #tpu.pipeline_mode<synchronous>, transform_indices = @transform_4, window_bounds = array<i64: 1, 384>}, {pipeline_mode = #tpu.pipeline_mode<synchronous>, transform_indices = @transform_5, window_bounds = array<i64: 128, 128>}, {pipeline_mode = #tpu.pipeline_mode<synchronous>, transform_indices = @transform_6, window_bounds = array<i64: 1, 128>}, {pipeline_mode = #tpu.pipeline_mode<synchronous>, transform_indices = @transform_7, window_bounds = array<i64: 1, 128>}, {pipeline_mode = #tpu.pipeline_mode<synchronous>, transform_indices = @transform_8, window_bounds = array<i64: 1, 128>}, {pipeline_mode = #tpu.pipeline_mode<synchronous>, transform_indices = @transform_9, window_bounds = array<i64: 128, 512>}, {pipeline_mode = #tpu.pipeline_mode<synchronous>, transform_indices = @transform_10, window_bounds = array<i64: 1, 512>}, {pipeline_mode = #tpu.pipeline_mode<synchronous>, transform_indices = @transform_11, window_bounds = array<i64: 512, 128>}, {pipeline_mode = #tpu.pipeline_mode<synchronous>, transform_indices = @transform_12, window_bounds = array<i64: 1, 128>}, {transform_indices = @transform_13, window_bounds = array<i64: 2, 8, 128>}]} {
    %c0 = arith.constant 0 : index
    %c0_0 = arith.constant 0 : index
    %c0_1 = arith.constant 0 : index
    %0 = vector.load %arg1[%c0, %c0_0, %c0_1] : memref<2x8x128xf32, #tpu.memory_space<vmem>>, vector<2x8x128xf32>
    %1 = vector.shape_cast %0 : vector<2x8x128xf32> to vector<16x128xf32>
    %c0_2 = arith.constant 0 : index
    %c0_3 = arith.constant 0 : index
    %2 = vector.load %arg2[%c0_2, %c0_3] : memref<1x128xf32, #tpu.memory_space<vmem>>, vector<1x128xf32>
    %3 = vector.shape_cast %2 : vector<1x128xf32> to vector<128xf32>
    %c0_4 = arith.constant 0 : index
    %c0_5 = arith.constant 0 : index
    %4 = vector.load %arg3[%c0_4, %c0_5] : memref<1x128xf32, #tpu.memory_space<vmem>>, vector<1x128xf32>
    %5 = vector.shape_cast %4 : vector<1x128xf32> to vector<128xf32>
    %cst = arith.constant dense<0.000000e+00> : vector<16xf32>
    %6 = vector.multi_reduction <add>, %1, %cst [1] : vector<16x128xf32> to vector<16xf32>
    %7 = vector.shape_cast %6 : vector<16xf32> to vector<16x1xf32>
    %cst_6 = arith.constant 1.280000e+02 : f32
    %8 = vector.broadcast %cst_6 : f32 to vector<16x1xf32>
    %9 = arith.divf %7, %8 : vector<16x1xf32>
    %10 = vector.broadcast %9 : vector<16x1xf32> to vector<16x128xf32>
    %11 = arith.subf %1, %10 : vector<16x128xf32>
    %12 = arith.mulf %11, %11 : vector<16x128xf32>
    %cst_7 = arith.constant dense<0.000000e+00> : vector<16xf32>
    %13 = vector.multi_reduction <add>, %12, %cst_7 [1] : vector<16x128xf32> to vector<16xf32>
    %14 = vector.shape_cast %13 : vector<16xf32> to vector<16x1xf32>
    %cst_8 = arith.constant 1.280000e+02 : f32
    %15 = vector.broadcast %cst_8 : f32 to vector<16x1xf32>
    %16 = arith.divf %14, %15 : vector<16x1xf32>
    %17 = vector.broadcast %9 : vector<16x1xf32> to vector<16x128xf32>
    %18 = arith.subf %1, %17 : vector<16x128xf32>
    %cst_9 = arith.constant 9.99999974E-6 : f32
    %19 = vector.broadcast %cst_9 : f32 to vector<16x1xf32>
    %20 = arith.addf %16, %19 : vector<16x1xf32>
    %21 = math.rsqrt %20 : vector<16x1xf32>
    %22 = vector.broadcast %21 : vector<16x1xf32> to vector<16x128xf32>
    %23 = arith.mulf %18, %22 : vector<16x128xf32>
    %24 = vector.shape_cast %3 : vector<128xf32> to vector<1x128xf32>
    %25 = vector.broadcast %24 : vector<1x128xf32> to vector<16x128xf32>
    %26 = arith.mulf %23, %25 : vector<16x128xf32>
    %27 = vector.shape_cast %5 : vector<128xf32> to vector<1x128xf32>
    %28 = vector.broadcast %27 : vector<1x128xf32> to vector<16x128xf32>
    %29 = arith.addf %26, %28 : vector<16x128xf32>
    %c0_10 = arith.constant 0 : index
    %c0_11 = arith.constant 0 : index
    %30 = vector.load %arg4[%c0_10, %c0_11] : memref<128x384xf32, #tpu.memory_space<vmem>>, vector<128x384xf32>
    %cst_12 = arith.constant dense<0.000000e+00> : vector<16x384xf32>
    %31 = tpu.matmul %29, %30, %cst_12 {dimension_numbers = #tpu.dot_dimension_numbers<[1], [0], [0], [1], [0, 0, 1, 1], [], []>} : vector<16x128xf32>, vector<128x384xf32>, vector<16x384xf32> -> vector<16x384xf32>
    %c0_13 = arith.constant 0 : index
    %c0_14 = arith.constant 0 : index
    %32 = vector.load %arg5[%c0_13, %c0_14] : memref<1x384xf32, #tpu.memory_space<vmem>>, vector<1x384xf32>
    %33 = vector.shape_cast %32 : vector<1x384xf32> to vector<384xf32>
    %34 = vector.shape_cast %33 : vector<384xf32> to vector<1x384xf32>
    %35 = vector.broadcast %34 : vector<1x384xf32> to vector<16x384xf32>
    %36 = arith.addf %31, %35 : vector<16x384xf32>
    %37 = vector.extract_strided_slice %36 {offsets = [0, 0], sizes = [16, 128], strides = [1, 1]} : vector<16x384xf32> to vector<16x128xf32>
    %cst_15 = arith.constant 0.176776692 : f32
    %38 = vector.broadcast %cst_15 : f32 to vector<16x128xf32>
    %39 = arith.mulf %37, %38 : vector<16x128xf32>
    %40 = vector.shape_cast %39 : vector<16x128xf32> to vector<2x8x128xf32>
    %41 = vector.extract_strided_slice %36 {offsets = [0, 128], sizes = [16, 128], strides = [1, 1]} : vector<16x384xf32> to vector<16x128xf32>
    %42 = vector.shape_cast %41 : vector<16x128xf32> to vector<2x8x128xf32>
    %43 = vector.extract_strided_slice %36 {offsets = [0, 256], sizes = [16, 128], strides = [1, 1]} : vector<16x384xf32> to vector<16x128xf32>
    %44 = vector.shape_cast %43 : vector<16x128xf32> to vector<2x8x128xf32>
    %45 = tpu.iota {dimensions = array<i32: 0>} : vector<8x8xi32>
    %46 = tpu.iota {dimensions = array<i32: 1>} : vector<8x8xi32>
    %47 = arith.cmpi sgt, %46, %45 : vector<8x8xi32>
    %cst_16 = arith.constant -1.000000e+30 : f32
    %cst_17 = arith.constant 0.000000e+00 : f32
    %48 = vector.broadcast %cst_16 : f32 to vector<8x8xf32>
    %49 = vector.broadcast %cst_17 : f32 to vector<8x8xf32>
    %50 = arith.select %47, %48, %49 : vector<8x8xi1>, vector<8x8xf32>
    %51 = vector.extract_strided_slice %40 {offsets = [0, 0, 0], sizes = [2, 8, 32], strides = [1, 1, 1]} : vector<2x8x128xf32> to vector<2x8x32xf32>
    %52 = vector.extract_strided_slice %42 {offsets = [0, 0, 0], sizes = [2, 8, 32], strides = [1, 1, 1]} : vector<2x8x128xf32> to vector<2x8x32xf32>
    %53 = vector.extract_strided_slice %44 {offsets = [0, 0, 0], sizes = [2, 8, 32], strides = [1, 1, 1]} : vector<2x8x128xf32> to vector<2x8x32xf32>
    "tpu.trace_start"() <{level = 10 : i32, message = "bqd,bkd->bqk"}> : () -> ()
    %cst_18 = arith.constant dense<0.000000e+00> : vector<2x8x8xf32>
    %54 = tpu.matmul %51, %52, %cst_18 {dimension_numbers = #tpu.dot_dimension_numbers<[2], [2], [1], [1], [0, 0, 0, 1, 1, 1], [0], [0]>} : vector<2x8x32xf32>, vector<2x8x32xf32>, vector<2x8x8xf32> -> vector<2x8x8xf32>
    "tpu.trace_stop"() : () -> ()
    %55 = vector.shape_cast %50 : vector<8x8xf32> to vector<1x8x8xf32>
    %56 = vector.broadcast %55 : vector<1x8x8xf32> to vector<2x8x8xf32>
    %57 = arith.addf %54, %56 : vector<2x8x8xf32>
    %cst_19 = arith.constant dense<0xFF800000> : vector<2x8xf32>
    %58 = vector.multi_reduction <maximumf>, %57, %cst_19 [2] : vector<2x8x8xf32> to vector<2x8xf32>
    %59 = vector.shape_cast %58 : vector<2x8xf32> to vector<2x8x1xf32>
    %60 = vector.broadcast %59 : vector<2x8x1xf32> to vector<2x8x8xf32>
    %61 = arith.subf %57, %60 : vector<2x8x8xf32>
    %62 = math.exp %61 : vector<2x8x8xf32>
    %cst_20 = arith.constant dense<0.000000e+00> : vector<2x8xf32>
    %63 = vector.multi_reduction <add>, %62, %cst_20 [2] : vector<2x8x8xf32> to vector<2x8xf32>
    %64 = vector.shape_cast %63 : vector<2x8xf32> to vector<2x8x1xf32>
    %65 = tpu.reciprocal %64 : vector<2x8x1xf32> -> vector<2x8x1xf32>
    %66 = vector.broadcast %65 : vector<2x8x1xf32> to vector<2x8x8xf32>
    %67 = arith.mulf %62, %66 : vector<2x8x8xf32>
    "tpu.trace_start"() <{level = 10 : i32, message = "bqk,bkd->bqd"}> : () -> ()
    %cst_21 = arith.constant dense<0.000000e+00> : vector<2x8x32xf32>
    %68 = tpu.matmul %67, %53, %cst_21 {dimension_numbers = #tpu.dot_dimension_numbers<[2], [1], [1], [2], [0, 0, 0, 1, 1, 2], [0], [0]>} : vector<2x8x8xf32>, vector<2x8x32xf32>, vector<2x8x32xf32> -> vector<2x8x32xf32>
    "tpu.trace_stop"() : () -> ()
    %69 = vector.shape_cast %68 : vector<2x8x32xf32> to vector<16x32xf32>
    %c0_22 = arith.constant 0 : index
    %c0_23 = arith.constant 0 : index
    %70 = vector.load %arg15[%c0_22, %c0_23] : memref<16x128xf32, #tpu.memory_space<vmem>>, vector<16x32xf32>
    tpu.vector_store %arg15[%c0_22, %c0_23], %69 {strides = array<i32>} : memref<16x128xf32, #tpu.memory_space<vmem>>, vector<16x32xf32>,
    %71 = vector.extract_strided_slice %40 {offsets = [0, 0, 32], sizes = [2, 8, 32], strides = [1, 1, 1]} : vector<2x8x128xf32> to vector<2x8x32xf32>
    %72 = vector.extract_strided_slice %42 {offsets = [0, 0, 32], sizes = [2, 8, 32], strides = [1, 1, 1]} : vector<2x8x128xf32> to vector<2x8x32xf32>
    %73 = vector.extract_strided_slice %44 {offsets = [0, 0, 32], sizes = [2, 8, 32], strides = [1, 1, 1]} : vector<2x8x128xf32> to vector<2x8x32xf32>
    "tpu.trace_start"() <{level = 10 : i32, message = "bqd,bkd->bqk"}> : () -> ()
    %cst_24 = arith.constant dense<0.000000e+00> : vector<2x8x8xf32>
    %74 = tpu.matmul %71, %72, %cst_24 {dimension_numbers = #tpu.dot_dimension_numbers<[2], [2], [1], [1], [0, 0, 0, 1, 1, 1], [0], [0]>} : vector<2x8x32xf32>, vector<2x8x32xf32>, vector<2x8x8xf32> -> vector<2x8x8xf32>
    "tpu.trace_stop"() : () -> ()
    %75 = vector.shape_cast %50 : vector<8x8xf32> to vector<1x8x8xf32>
    %76 = vector.broadcast %75 : vector<1x8x8xf32> to vector<2x8x8xf32>
    %77 = arith.addf %74, %76 : vector<2x8x8xf32>
    %cst_25 = arith.constant dense<0xFF800000> : vector<2x8xf32>
    %78 = vector.multi_reduction <maximumf>, %77, %cst_25 [2] : vector<2x8x8xf32> to vector<2x8xf32>
    %79 = vector.shape_cast %78 : vector<2x8xf32> to vector<2x8x1xf32>
    %80 = vector.broadcast %79 : vector<2x8x1xf32> to vector<2x8x8xf32>
    %81 = arith.subf %77, %80 : vector<2x8x8xf32>
    %82 = math.exp %81 : vector<2x8x8xf32>
    %cst_26 = arith.constant dense<0.000000e+00> : vector<2x8xf32>
    %83 = vector.multi_reduction <add>, %82, %cst_26 [2] : vector<2x8x8xf32> to vector<2x8xf32>
    %84 = vector.shape_cast %83 : vector<2x8xf32> to vector<2x8x1xf32>
    %85 = tpu.reciprocal %84 : vector<2x8x1xf32> -> vector<2x8x1xf32>
    %86 = vector.broadcast %85 : vector<2x8x1xf32> to vector<2x8x8xf32>
    %87 = arith.mulf %82, %86 : vector<2x8x8xf32>
    "tpu.trace_start"() <{level = 10 : i32, message = "bqk,bkd->bqd"}> : () -> ()
    %cst_27 = arith.constant dense<0.000000e+00> : vector<2x8x32xf32>
    %88 = tpu.matmul %87, %73, %cst_27 {dimension_numbers = #tpu.dot_dimension_numbers<[2], [1], [1], [2], [0, 0, 0, 1, 1, 2], [0], [0]>} : vector<2x8x8xf32>, vector<2x8x32xf32>, vector<2x8x32xf32> -> vector<2x8x32xf32>
    "tpu.trace_stop"() : () -> ()
    %89 = vector.shape_cast %88 : vector<2x8x32xf32> to vector<16x32xf32>
    %c0_28 = arith.constant 0 : index
    %c32 = arith.constant 32 : index
    %90 = vector.load %arg15[%c0_28, %c32] : memref<16x128xf32, #tpu.memory_space<vmem>>, vector<16x32xf32>
    tpu.vector_store %arg15[%c0_28, %c32], %89 {strides = array<i32>} : memref<16x128xf32, #tpu.memory_space<vmem>>, vector<16x32xf32>,
    %91 = vector.extract_strided_slice %40 {offsets = [0, 0, 64], sizes = [2, 8, 32], strides = [1, 1, 1]} : vector<2x8x128xf32> to vector<2x8x32xf32>
    %92 = vector.extract_strided_slice %42 {offsets = [0, 0, 64], sizes = [2, 8, 32], strides = [1, 1, 1]} : vector<2x8x128xf32> to vector<2x8x32xf32>
    %93 = vector.extract_strided_slice %44 {offsets = [0, 0, 64], sizes = [2, 8, 32], strides = [1, 1, 1]} : vector<2x8x128xf32> to vector<2x8x32xf32>
    "tpu.trace_start"() <{level = 10 : i32, message = "bqd,bkd->bqk"}> : () -> ()
    %cst_29 = arith.constant dense<0.000000e+00> : vector<2x8x8xf32>
    %94 = tpu.matmul %91, %92, %cst_29 {dimension_numbers = #tpu.dot_dimension_numbers<[2], [2], [1], [1], [0, 0, 0, 1, 1, 1], [0], [0]>} : vector<2x8x32xf32>, vector<2x8x32xf32>, vector<2x8x8xf32> -> vector<2x8x8xf32>
    "tpu.trace_stop"() : () -> ()
    %95 = vector.shape_cast %50 : vector<8x8xf32> to vector<1x8x8xf32>
    %96 = vector.broadcast %95 : vector<1x8x8xf32> to vector<2x8x8xf32>
    %97 = arith.addf %94, %96 : vector<2x8x8xf32>
    %cst_30 = arith.constant dense<0xFF800000> : vector<2x8xf32>
    %98 = vector.multi_reduction <maximumf>, %97, %cst_30 [2] : vector<2x8x8xf32> to vector<2x8xf32>
    %99 = vector.shape_cast %98 : vector<2x8xf32> to vector<2x8x1xf32>
    %100 = vector.broadcast %99 : vector<2x8x1xf32> to vector<2x8x8xf32>
    %101 = arith.subf %97, %100 : vector<2x8x8xf32>
    %102 = math.exp %101 : vector<2x8x8xf32>
    %cst_31 = arith.constant dense<0.000000e+00> : vector<2x8xf32>
    %103 = vector.multi_reduction <add>, %102, %cst_31 [2] : vector<2x8x8xf32> to vector<2x8xf32>
    %104 = vector.shape_cast %103 : vector<2x8xf32> to vector<2x8x1xf32>
    %105 = tpu.reciprocal %104 : vector<2x8x1xf32> -> vector<2x8x1xf32>
    %106 = vector.broadcast %105 : vector<2x8x1xf32> to vector<2x8x8xf32>
    %107 = arith.mulf %102, %106 : vector<2x8x8xf32>
    "tpu.trace_start"() <{level = 10 : i32, message = "bqk,bkd->bqd"}> : () -> ()
    %cst_32 = arith.constant dense<0.000000e+00> : vector<2x8x32xf32>
    %108 = tpu.matmul %107, %93, %cst_32 {dimension_numbers = #tpu.dot_dimension_numbers<[2], [1], [1], [2], [0, 0, 0, 1, 1, 2], [0], [0]>} : vector<2x8x8xf32>, vector<2x8x32xf32>, vector<2x8x32xf32> -> vector<2x8x32xf32>
    "tpu.trace_stop"() : () -> ()
    %109 = vector.shape_cast %108 : vector<2x8x32xf32> to vector<16x32xf32>
    %c0_33 = arith.constant 0 : index
    %c64 = arith.constant 64 : index
    %110 = vector.load %arg15[%c0_33, %c64] : memref<16x128xf32, #tpu.memory_space<vmem>>, vector<16x32xf32>
    tpu.vector_store %arg15[%c0_33, %c64], %109 {strides = array<i32>} : memref<16x128xf32, #tpu.memory_space<vmem>>, vector<16x32xf32>,
    %111 = vector.extract_strided_slice %40 {offsets = [0, 0, 96], sizes = [2, 8, 32], strides = [1, 1, 1]} : vector<2x8x128xf32> to vector<2x8x32xf32>
    %112 = vector.extract_strided_slice %42 {offsets = [0, 0, 96], sizes = [2, 8, 32], strides = [1, 1, 1]} : vector<2x8x128xf32> to vector<2x8x32xf32>
    %113 = vector.extract_strided_slice %44 {offsets = [0, 0, 96], sizes = [2, 8, 32], strides = [1, 1, 1]} : vector<2x8x128xf32> to vector<2x8x32xf32>
    "tpu.trace_start"() <{level = 10 : i32, message = "bqd,bkd->bqk"}> : () -> ()
    %cst_34 = arith.constant dense<0.000000e+00> : vector<2x8x8xf32>
    %114 = tpu.matmul %111, %112, %cst_34 {dimension_numbers = #tpu.dot_dimension_numbers<[2], [2], [1], [1], [0, 0, 0, 1, 1, 1], [0], [0]>} : vector<2x8x32xf32>, vector<2x8x32xf32>, vector<2x8x8xf32> -> vector<2x8x8xf32>
    "tpu.trace_stop"() : () -> ()
    %115 = vector.shape_cast %50 : vector<8x8xf32> to vector<1x8x8xf32>
    %116 = vector.broadcast %115 : vector<1x8x8xf32> to vector<2x8x8xf32>
    %117 = arith.addf %114, %116 : vector<2x8x8xf32>
    %cst_35 = arith.constant dense<0xFF800000> : vector<2x8xf32>
    %118 = vector.multi_reduction <maximumf>, %117, %cst_35 [2] : vector<2x8x8xf32> to vector<2x8xf32>
    %119 = vector.shape_cast %118 : vector<2x8xf32> to vector<2x8x1xf32>
    %120 = vector.broadcast %119 : vector<2x8x1xf32> to vector<2x8x8xf32>
    %121 = arith.subf %117, %120 : vector<2x8x8xf32>
    %122 = math.exp %121 : vector<2x8x8xf32>
    %cst_36 = arith.constant dense<0.000000e+00> : vector<2x8xf32>
    %123 = vector.multi_reduction <add>, %122, %cst_36 [2] : vector<2x8x8xf32> to vector<2x8xf32>
    %124 = vector.shape_cast %123 : vector<2x8xf32> to vector<2x8x1xf32>
    %125 = tpu.reciprocal %124 : vector<2x8x1xf32> -> vector<2x8x1xf32>
    %126 = vector.broadcast %125 : vector<2x8x1xf32> to vector<2x8x8xf32>
    %127 = arith.mulf %122, %126 : vector<2x8x8xf32>
    "tpu.trace_start"() <{level = 10 : i32, message = "bqk,bkd->bqd"}> : () -> ()
    %cst_37 = arith.constant dense<0.000000e+00> : vector<2x8x32xf32>
    %128 = tpu.matmul %127, %113, %cst_37 {dimension_numbers = #tpu.dot_dimension_numbers<[2], [1], [1], [2], [0, 0, 0, 1, 1, 2], [0], [0]>} : vector<2x8x8xf32>, vector<2x8x32xf32>, vector<2x8x32xf32> -> vector<2x8x32xf32>
    "tpu.trace_stop"() : () -> ()
    %129 = vector.shape_cast %128 : vector<2x8x32xf32> to vector<16x32xf32>
    %c0_38 = arith.constant 0 : index
    %c96 = arith.constant 96 : index
    %130 = vector.load %arg15[%c0_38, %c96] : memref<16x128xf32, #tpu.memory_space<vmem>>, vector<16x32xf32>
    tpu.vector_store %arg15[%c0_38, %c96], %129 {strides = array<i32>} : memref<16x128xf32, #tpu.memory_space<vmem>>, vector<16x32xf32>,
    %c0_39 = arith.constant 0 : index
    %c0_40 = arith.constant 0 : index
    %131 = vector.load %arg15[%c0_39, %c0_40] : memref<16x128xf32, #tpu.memory_space<vmem>>, vector<16x128xf32>
    %c0_41 = arith.constant 0 : index
    %c0_42 = arith.constant 0 : index
    %132 = vector.load %arg6[%c0_41, %c0_42] : memref<128x128xf32, #tpu.memory_space<vmem>>, vector<128x128xf32>
    %cst_43 = arith.constant dense<0.000000e+00> : vector<16x128xf32>
    %133 = tpu.matmul %131, %132, %cst_43 {dimension_numbers = #tpu.dot_dimension_numbers<[1], [0], [0], [1], [0, 0, 1, 1], [], []>} : vector<16x128xf32>, vector<128x128xf32>, vector<16x128xf32> -> vector<16x128xf32>
    %c0_44 = arith.constant 0 : index
    %c0_45 = arith.constant 0 : index
    %134 = vector.load %arg7[%c0_44, %c0_45] : memref<1x128xf32, #tpu.memory_space<vmem>>, vector<1x128xf32>
    %135 = vector.shape_cast %134 : vector<1x128xf32> to vector<128xf32>
    %136 = vector.shape_cast %135 : vector<128xf32> to vector<1x128xf32>
    %137 = vector.broadcast %136 : vector<1x128xf32> to vector<16x128xf32>
    %138 = arith.addf %133, %137 : vector<16x128xf32>
    %139 = arith.addf %138, %1 : vector<16x128xf32>
    %c0_46 = arith.constant 0 : index
    %c0_47 = arith.constant 0 : index
    %140 = vector.load %arg8[%c0_46, %c0_47] : memref<1x128xf32, #tpu.memory_space<vmem>>, vector<1x128xf32>
    %141 = vector.shape_cast %140 : vector<1x128xf32> to vector<128xf32>
    %c0_48 = arith.constant 0 : index
    %c0_49 = arith.constant 0 : index
    %142 = vector.load %arg9[%c0_48, %c0_49] : memref<1x128xf32, #tpu.memory_space<vmem>>, vector<1x128xf32>
    %143 = vector.shape_cast %142 : vector<1x128xf32> to vector<128xf32>
    %cst_50 = arith.constant dense<0.000000e+00> : vector<16xf32>
    %144 = vector.multi_reduction <add>, %139, %cst_50 [1] : vector<16x128xf32> to vector<16xf32>
    %145 = vector.shape_cast %144 : vector<16xf32> to vector<16x1xf32>
    %cst_51 = arith.constant 1.280000e+02 : f32
    %146 = vector.broadcast %cst_51 : f32 to vector<16x1xf32>
    %147 = arith.divf %145, %146 : vector<16x1xf32>
    %148 = vector.broadcast %147 : vector<16x1xf32> to vector<16x128xf32>
    %149 = arith.subf %139, %148 : vector<16x128xf32>
    %150 = arith.mulf %149, %149 : vector<16x128xf32>
    %cst_52 = arith.constant dense<0.000000e+00> : vector<16xf32>
    %151 = vector.multi_reduction <add>, %150, %cst_52 [1] : vector<16x128xf32> to vector<16xf32>
    %152 = vector.shape_cast %151 : vector<16xf32> to vector<16x1xf32>
    %cst_53 = arith.constant 1.280000e+02 : f32
    %153 = vector.broadcast %cst_53 : f32 to vector<16x1xf32>
    %154 = arith.divf %152, %153 : vector<16x1xf32>
    %155 = vector.broadcast %147 : vector<16x1xf32> to vector<16x128xf32>
    %156 = arith.subf %139, %155 : vector<16x128xf32>
    %cst_54 = arith.constant 9.99999974E-6 : f32
    %157 = vector.broadcast %cst_54 : f32 to vector<16x1xf32>
    %158 = arith.addf %154, %157 : vector<16x1xf32>
    %159 = math.rsqrt %158 : vector<16x1xf32>
    %160 = vector.broadcast %159 : vector<16x1xf32> to vector<16x128xf32>
    %161 = arith.mulf %156, %160 : vector<16x128xf32>
    %162 = vector.shape_cast %141 : vector<128xf32> to vector<1x128xf32>
    %163 = vector.broadcast %162 : vector<1x128xf32> to vector<16x128xf32>
    %164 = arith.mulf %161, %163 : vector<16x128xf32>
    %165 = vector.shape_cast %143 : vector<128xf32> to vector<1x128xf32>
    %166 = vector.broadcast %165 : vector<1x128xf32> to vector<16x128xf32>
    %167 = arith.addf %164, %166 : vector<16x128xf32>
    %c0_55 = arith.constant 0 : index
    %c0_56 = arith.constant 0 : index
    %168 = vector.load %arg10[%c0_55, %c0_56] : memref<128x512xf32, #tpu.memory_space<vmem>>, vector<128x512xf32>
    %cst_57 = arith.constant dense<0.000000e+00> : vector<16x512xf32>
    %169 = tpu.matmul %167, %168, %cst_57 {dimension_numbers = #tpu.dot_dimension_numbers<[1], [0], [0], [1], [0, 0, 1, 1], [], []>} : vector<16x128xf32>, vector<128x512xf32>, vector<16x512xf32> -> vector<16x512xf32>
    %c0_58 = arith.constant 0 : index
    %c0_59 = arith.constant 0 : index
    %170 = vector.load %arg11[%c0_58, %c0_59] : memref<1x512xf32, #tpu.memory_space<vmem>>, vector<1x512xf32>
    %171 = vector.shape_cast %170 : vector<1x512xf32> to vector<512xf32>
    %172 = vector.shape_cast %171 : vector<512xf32> to vector<1x512xf32>
    %173 = vector.broadcast %172 : vector<1x512xf32> to vector<16x512xf32>
    %174 = arith.addf %169, %173 : vector<16x512xf32>
    %cst_60 = arith.constant 1.702000e+00 : f32
    %175 = vector.broadcast %cst_60 : f32 to vector<16x512xf32>
    %176 = arith.mulf %175, %174 : vector<16x512xf32>
    %177 = arith.negf %176 : vector<16x512xf32>
    %178 = math.exp %177 : vector<16x512xf32>
    %cst_61 = arith.constant 1.000000e+00 : f32
    %179 = vector.broadcast %cst_61 : f32 to vector<16x512xf32>
    %180 = arith.addf %179, %178 : vector<16x512xf32>
    %181 = arith.divf %179, %180 : vector<16x512xf32>
    %182 = arith.mulf %174, %181 : vector<16x512xf32>
    %c0_62 = arith.constant 0 : index
    %c0_63 = arith.constant 0 : index
    %183 = vector.load %arg12[%c0_62, %c0_63] : memref<512x128xf32, #tpu.memory_space<vmem>>, vector<512x128xf32>
    %cst_64 = arith.constant dense<0.000000e+00> : vector<16x128xf32>
    %184 = tpu.matmul %182, %183, %cst_64 {dimension_numbers = #tpu.dot_dimension_numbers<[1], [0], [0], [1], [0, 0, 1, 1], [], []>} : vector<16x512xf32>, vector<512x128xf32>, vector<16x128xf32> -> vector<16x128xf32>
    %c0_65 = arith.constant 0 : index
    %c0_66 = arith.constant 0 : index
    %185 = vector.load %arg13[%c0_65, %c0_66] : memref<1x128xf32, #tpu.memory_space<vmem>>, vector<1x128xf32>
    %186 = vector.shape_cast %185 : vector<1x128xf32> to vector<128xf32>
    %187 = vector.shape_cast %186 : vector<128xf32> to vector<1x128xf32>
    %188 = vector.broadcast %187 : vector<1x128xf32> to vector<16x128xf32>
    %189 = arith.addf %184, %188 : vector<16x128xf32>
    %190 = arith.addf %189, %139 : vector<16x128xf32>
    %191 = vector.shape_cast %190 : vector<16x128xf32> to vector<2x8x128xf32>
    %c0_67 = arith.constant 0 : index
    %c0_68 = arith.constant 0 : index
    %c0_69 = arith.constant 0 : index
    %192 = vector.load %arg14[%c0_67, %c0_68, %c0_69] : memref<2x8x128xf32, #tpu.memory_space<vmem>>, vector<2x8x128xf32>
    tpu.vector_store %arg14[%c0_67, %c0_68, %c0_69], %191 {strides = array<i32>} : memref<2x8x128xf32, #tpu.memory_space<vmem>>, vector<2x8x128xf32>,
    return
  }
  func.func @transform_0(%arg0: i32) -> (i32, i32, i32) {
    %c0_i32 = arith.constant 0 : i32
    %c0_i32_0 = arith.constant 0 : i32
    %c0_i32_1 = arith.constant 0 : i32
    return %arg0, %c0_i32, %c0_i32_0 : i32, i32, i32
  }
  func.func @transform_1(%arg0: i32) -> (i32, i32) {
    %c0_i32 = arith.constant 0 : i32
    %c0_i32_0 = arith.constant 0 : i32
    %c0_i32_1 = arith.constant 0 : i32
    return %c0_i32, %c0_i32_0 : i32, i32
  }
  func.func @transform_2(%arg0: i32) -> (i32, i32) {
    %c0_i32 = arith.constant 0 : i32
    %c0_i32_0 = arith.constant 0 : i32
    %c0_i32_1 = arith.constant 0 : i32
    return %c0_i32, %c0_i32_0 : i32, i32
  }
  func.func @transform_3(%arg0: i32) -> (i32, i32) {
    %c0_i32 = arith.constant 0 : i32
    %c0_i32_0 = arith.constant 0 : i32
    %c0_i32_1 = arith.constant 0 : i32
    return %c0_i32, %c0_i32_0 : i32, i32
  }
  func.func @transform_4(%arg0: i32) -> (i32, i32) {
    %c0_i32 = arith.constant 0 : i32
    %c0_i32_0 = arith.constant 0 : i32
    %c0_i32_1 = arith.constant 0 : i32
    return %c0_i32, %c0_i32_0 : i32, i32
  }
  func.func @transform_5(%arg0: i32) -> (i32, i32) {
    %c0_i32 = arith.constant 0 : i32
    %c0_i32_0 = arith.constant 0 : i32
    %c0_i32_1 = arith.constant 0 : i32
    return %c0_i32, %c0_i32_0 : i32, i32
  }
  func.func @transform_6(%arg0: i32) -> (i32, i32) {
    %c0_i32 = arith.constant 0 : i32
    %c0_i32_0 = arith.constant 0 : i32
    %c0_i32_1 = arith.constant 0 : i32
    return %c0_i32, %c0_i32_0 : i32, i32
  }
  func.func @transform_7(%arg0: i32) -> (i32, i32) {
    %c0_i32 = arith.constant 0 : i32
    %c0_i32_0 = arith.constant 0 : i32
    %c0_i32_1 = arith.constant 0 : i32
    return %c0_i32, %c0_i32_0 : i32, i32
  }
  func.func @transform_8(%arg0: i32) -> (i32, i32) {
    %c0_i32 = arith.constant 0 : i32
    %c0_i32_0 = arith.constant 0 : i32
    %c0_i32_1 = arith.constant 0 : i32
    return %c0_i32, %c0_i32_0 : i32, i32
  }
  func.func @transform_9(%arg0: i32) -> (i32, i32) {
    %c0_i32 = arith.constant 0 : i32
    %c0_i32_0 = arith.constant 0 : i32
    %c0_i32_1 = arith.constant 0 : i32
    return %c0_i32, %c0_i32_0 : i32, i32
  }
  func.func @transform_10(%arg0: i32) -> (i32, i32) {
    %c0_i32 = arith.constant 0 : i32
    %c0_i32_0 = arith.constant 0 : i32
    %c0_i32_1 = arith.constant 0 : i32
    return %c0_i32, %c0_i32_0 : i32, i32
  }
  func.func @transform_11(%arg0: i32) -> (i32, i32) {
    %c0_i32 = arith.constant 0 : i32
    %c0_i32_0 = arith.constant 0 : i32
    %c0_i32_1 = arith.constant 0 : i32
    return %c0_i32, %c0_i32_0 : i32, i32
  }
  func.func @transform_12(%arg0: i32) -> (i32, i32) {
    %c0_i32 = arith.constant 0 : i32
    %c0_i32_0 = arith.constant 0 : i32
    %c0_i32_1 = arith.constant 0 : i32
    return %c0_i32, %c0_i32_0 : i32, i32
  }
  func.func @transform_13(%arg0: i32) -> (i32, i32, i32) {
    %c0_i32 = arith.constant 0 : i32
    %c0_i32_0 = arith.constant 0 : i32
    %c0_i32_1 = arith.constant 0 : i32
    return %arg0, %c0_i32, %c0_i32_0 : i32, i32, i32
  }
}

</mosaic_0001>

<bundles_post_ra>
// kernel: tpu_custom_call.1
= control target key start
LH: loop header
LB: loop body
LE: loop exit
PB: predicated region body
PF: predicated region fallthrough
CT: control target
= control target key end

     0   :  { %s4732_s0 = inlined_call_operand.hbm [shape: f32[4,8,128], index: 0, kind: input, shape index: {}]   ;;  %s4733_s1 = inlined_call_operand.hbm [shape: f32[1,128], index: 1, kind: input, shape index: {}]   ;;  %s4734_s2 = inlined_call_operand.hbm [shape: f32[1,128], index: 2, kind: input, shape index: {}]   ;;  %s4735_s3 = inlined_call_operand.hbm [shape: f32[128,384], index: 3, kind: input, shape index: {}]   ;;  %s4736_s4 = inlined_call_operand.vmem [shape: f32[1,384], index: 4, kind: input, shape index: {}]   ;;  %s4737_s5 = inlined_call_operand.hbm [shape: f32[128,128], index: 5, kind: input, shape index: {}]   ;;  %s4738_s6 = inlined_call_operand.vmem [shape: f32[1,128], index: 6, kind: input, shape index: {}]   ;;  %s4739_s7 = inlined_call_operand.vmem [shape: f32[1,128], index: 7, kind: input, shape index: {}]   ;;  %s4740_s8 = inlined_call_operand.vmem [shape: f32[1,128], index: 8, kind: input, shape index: {}]   ;;  %s4741_s9 = inlined_call_operand.hbm [shape: f32[128,512], index: 9, kind: input, shape index: {}]   ;;  %s4742_s10 = inlined_call_operand.vmem [shape: f32[1,512], index: 10, kind: input, shape index: {}]   ;;  %s4743_s11 = inlined_call_operand.hbm [shape: f32[512,128], index: 11, kind: input, shape index: {}]   ;;  %s4744_s12 = inlined_call_operand.vmem [shape: f32[1,128], index: 12, kind: input, shape index: {}]   ;;  %s4745_s13 = inlined_call_operand.hbm [shape: f32[4,8,128], index: 13, kind: output, shape index: {}]  }
   0x1   :  { %4750 = sst [smem:[#allocation21_spill]] %s4733_s1 }
   0x2   :  { %4751 = sst [smem:[#allocation22_spill]] %s4735_s3 }
   0x3   :  { %4752 = sst [smem:[#allocation23_spill]] %s4739_s7 }
   0x4   :  { %4753 = sst [smem:[#allocation24_spill]] %s4740_s8 }
   0x5   :  { %4754 = sst [smem:[#allocation25_spill]] %s4742_s10 }
   0x6   :  { %4755 = sst [smem:[#allocation26_spill]] %s4744_s12 }
   0x7   :  { %4756 = sst [smem:[#allocation27_spill]] %s4745_s13 }
   0x8   :  { %18 = vsyncpa [#allocation4], 0 }
   0x9   :  { %20 = vsyncpa [#allocation4 + $0x1], 0 }
   0xa   :  { %21 = vsyncpa [#allocation7], 0 }
   0xb   :  { %22 = vsyncpa [#allocation10], 0 }
   0xc   :  { %23 = vsyncpa [#allocation13], 0 }
   0xd   :  { %24 = vsyncpa [#allocation5], 0 }
   0xe   :  { %26 = vsyncpa [#allocation5 + $0x1], 0  ;;  %s4121_s25 = smov 0   ;;  %s4123_s26 = smov 0  }
   0xf   :  { %s4125_s27 = smov 0   ;;  %s4127_s28 = smov 0  }
  0x10 LB: > { %s4030_s29 = smov [#allocation6]   ;;  %s4142_s14 = sadd.s32 4294967295, %s4028_s28   ;;  %s4028_s28 = sphi %s4127_s28, %s4786_s28   ;;  %s4024_s27 = sphi %s4125_s27, %s4785_s27   ;;  %s4020_s26 = sphi %s4123_s26, %s4784_s26   ;;  %s4016_s25 = sphi %s4121_s25, %s4783_s25  }
  0x11   : > { %s354_s30 = sshll.u32 %s4030_s29, 4  ;;  %p2977_p0 = scmp.ge.s32.totalorder %s4028_s28, 1  ;;  %s4147_s30 = int_to_ptr.vmem [resolvable:$true] %s354_s30 }
  0x12   : > { %p4747_p1 = scmp.eq.s32.totalorder %s4142_s14, 0  ;;  %p341_p2 = scmp.lt.s32.totalorder %s4028_s28, 3 }
  0x13   : > { %s4031_s16 = smov [#allocation9]   ;;  %s4032_s19 = smov [#allocation12]  }
  0x14   : > { %p4149_p3 = pnand %p2977_p0, %p341_p2  ;;  %s375_s17 = sshll.u32 %s4031_s16, 4  ;;  %s4156_s17 = int_to_ptr.vmem [resolvable:$true] %s375_s17 }
  0x15   : > { %s413_s20 = sshll.u32 %s4032_s19, 4  ;;  %s4759_s1 = sld [smem:[#allocation21_spill]]  ;;  %s4164_s20 = int_to_ptr.vmem [resolvable:$true] %s413_s20 }
  0x16   : > { %s4757_s15 = scalar_select %p4149_p3, 1, 0 }
  0x17   : > { %p3588_p5 = pneg %p4149_p3 }
  0x19   : > { %p4160_p6 = pnand %p3588_p5, %p4747_p1 }
  0x1b   : > { %s3752_s23 = scalar_lea.hbm %s4759_s1, 16  ;;  %p4174_p8 = pneg %p4160_p6 }
  0x1c   : > { %p3753_p7 = scmp.ne.s32.totalorder %s4759_s1, %s3752_s23  ;;  %p3759_p11 = scmp.lt.u32.totalorder %s3752_s23, %s4759_s1 }
  0x1e   : > { %p3755_p9 = pnand %p4174_p8, %p3753_p7 }
  0x20   : > { %p3756_p10 = pneg %p3755_p9 }
  0x22   : > { %p3761_p12 = pnand %p3759_p11, %p3756_p10 }
  0x24   : > { %3764 = shalt.err (!%p3761_p12)
}
  0x25   : > { %s3765_s21 = scalar_lea.vmem %s4147_s30, 16  ;;  %s3772_s22 = scalar_lea.vmem %s4147_s30, 32 }
  0x26   : > { %p3766_p13 = scmp.ne.s32.totalorder %s4147_s30, %s3765_s21  ;;  %p3773_p5 = scmp.lt.s32.totalorder %s4147_s30, %s4147_s30 }
  0x27   : > { %p3774_p7 = scmp.lt.s32.totalorder %s3772_s22, %s3765_s21 }
  0x28   : > { %p3768_p0 = pnand %p3766_p13, %p4174_p8 }
  0x29   : > { %p3775_p9 = por %p3774_p7, %p3773_p5 }
  0x2a   : > { %p3769_p2 = pneg %p3768_p0 }
  0x2c   : > { %p3776_p4 = pnand %p3775_p9, %p3769_p2 }
  0x2e   : > { %3779 = shalt.err (!%p3776_p4)
}
  0x2f   : > { %3591 = dma.hbm_to_vmem [thread:$0]  (!%p4160_p6), %s4759_s1, 16, %s4147_s30, [#allocation7]  }
  0x30   : > { %s4761_s3 = sld [smem:[#allocation22_spill]] }
  0x36   : > { %s3780_s19 = scalar_lea.hbm %s4761_s3, 6144 }
  0x37   : > { %p3781_p10 = scmp.ne.s32.totalorder %s4761_s3, %s3780_s19  ;;  %p3787_p4 = scmp.lt.u32.totalorder %s3780_s19, %s4761_s3 }
  0x39   : > { %p3783_p11 = pnand %p3781_p10, %p4174_p8 }
  0x3b   : > { %p3784_p12 = pneg %p3783_p11 }
  0x3d   : > { %p3789_p13 = pnand %p3787_p4, %p3784_p12 }
  0x3f   : > { %3792 = shalt.err (!%p3789_p13)
}
  0x40   : > { %s3793_s30 = scalar_lea.vmem %s4156_s17, 6144  ;;  %p3801_p7 = scmp.lt.s32.totalorder %s4156_s17, %s4156_s17 }
  0x41   : > { %p3794_p0 = scmp.ne.s32.totalorder %s4156_s17, %s3793_s30  ;;  %p3802_p9 = scmp.lt.s32.totalorder %s3793_s30, %s3793_s30 }
  0x43   : > { %p3796_p2 = pnand %p3794_p0, %p4174_p8  ;;  %p3803_p10 = por %p3802_p9, %p3801_p7 }
  0x45   : > { %p3797_p5 = pneg %p3796_p2 }
  0x47   : > { %p3804_p11 = pnand %p3803_p10, %p3797_p5 }
  0x49   : > { %3807 = shalt.err (!%p3804_p11)
}
  0x4a   : > { %s4033_s10 = smov 384   ;;  %s4034_s12 = smov 24  }
  0x4b   : > { %3597 = dma.hbm_to_vmem [thread:$0]  (!%p4160_p6), %s4761_s3, 6144, %s4156_s17, [#allocation10], %s4033_s10, %s4033_s10, %s4034_s12  }
  0x4c   : > { %s3808_s19 = scalar_lea.hbm %s4741_s9, 8192 }
  0x4d   : > { %p3809_p12 = scmp.ne.s32.totalorder %s4741_s9, %s3808_s19  ;;  %p3815_p0 = scmp.lt.u32.totalorder %s3808_s19, %s4741_s9 }
  0x4f   : > { %p3811_p4 = pnand %p3809_p12, %p4174_p8 }
  0x51   : > { %p3812_p13 = pneg %p3811_p4 }
  0x53   : > { %p3817_p2 = pnand %p3815_p0, %p3812_p13 }
  0x55   : > { %3820 = shalt.err (!%p3817_p2)
}
  0x56   : > { %s3821_s17 = scalar_lea.vmem %s4164_s20, 8192  ;;  %p3829_p10 = scmp.lt.s32.totalorder %s4164_s20, %s4164_s20 }
  0x57   : > { %p3822_p5 = scmp.ne.s32.totalorder %s4164_s20, %s3821_s17  ;;  %p3830_p11 = scmp.lt.s32.totalorder %s3821_s17, %s3821_s17 }
  0x59   : > { %p3824_p7 = pnand %p3822_p5, %p4174_p8  ;;  %p3831_p12 = por %p3830_p11, %p3829_p10 }
  0x5b   : > { %p3825_p9 = pneg %p3824_p7 }
  0x5d   : > { %p3832_p4 = pnand %p3831_p12, %p3825_p9 }
  0x5f   : > { %3835 = shalt.err (!%p3832_p4)
}
  0x60   : > { %s4035_s10 = smov 512   ;;  %s4036_s1 = smov 32  }
  0x61   : > { %3603 = dma.hbm_to_vmem [thread:$0]  (!%p4160_p6), %s4741_s9, 8192, %s4164_s20, [#allocation13], %s4035_s10, %s4035_s10, %s4036_s1  }
  0x62   : > { %s4037_s23 = smov [#allocation8]   ;;  %s4038_s29 = smov [#allocation11]  }
  0x63   : > { %s365_s24 = sshll.u32 %s4037_s23, 4  ;;  %s391_s19 = sshll.u32 %s4038_s29, 4  ;;  %s366_s24 = int_to_ptr.vmem [resolvable:$true] %s365_s24  ;;  %s392_s19 = int_to_ptr.vmem [resolvable:$true] %s391_s19 }
  0x64   : > { %s3836_s30 = scalar_lea.hbm %s4734_s2, 16 }
  0x65   : > { %p3837_p13 = scmp.ne.s32.totalorder %s4734_s2, %s3836_s30  ;;  %p3843_p5 = scmp.lt.u32.totalorder %s3836_s30, %s4734_s2 }
  0x67   : > { %p3839_p0 = pnand %p3837_p13, %p4174_p8 }
  0x69   : > { %p3840_p2 = pneg %p3839_p0 }
  0x6b   : > { %p3845_p7 = pnand %p3843_p5, %p3840_p2 }
  0x6d   : > { %3848 = shalt.err (!%p3845_p7)
}
  0x6e   : > { %s3849_s20 = scalar_lea.vmem %s366_s24, 16  ;;  %s3856_s10 = scalar_lea.vmem %s366_s24, 32 }
  0x6f   : > { %p3850_p9 = scmp.ne.s32.totalorder %s366_s24, %s3849_s20  ;;  %p3857_p12 = scmp.lt.s32.totalorder %s366_s24, %s366_s24 }
  0x70   : > { %p3858_p4 = scmp.lt.s32.totalorder %s3856_s10, %s3849_s20 }
  0x71   : > { %p3852_p10 = pnand %p3850_p9, %p4174_p8 }
  0x72   : > { %p3859_p1 = por %p3858_p4, %p3857_p12 }
  0x73   : > { %p3853_p11 = pneg %p3852_p10 }
  0x75   : > { %p3860_p3 = pnand %p3859_p1, %p3853_p11 }
  0x77   : > { %3863 = shalt.err (!%p3860_p3)
}
  0x78   : > { %3594 = dma.hbm_to_vmem [thread:$0]  (!%p4160_p6), %s4734_s2, 16, %s366_s24, [#allocation7]  }
  0x79   : > { %s3864_s12 = scalar_lea.hbm %s4737_s5, 2048 }
  0x7a   : > { %p3865_p13 = scmp.ne.s32.totalorder %s4737_s5, %s3864_s12  ;;  %p3871_p3 = scmp.lt.u32.totalorder %s3864_s12, %s4737_s5 }
  0x7c   : > { %p3867_p0 = pnand %p3865_p13, %p4174_p8 }
  0x7e   : > { %p3868_p1 = pneg %p3867_p0 }
  0x80   : > { %p3873_p2 = pnand %p3871_p3, %p3868_p1 }
  0x82   : > { %3876 = shalt.err (!%p3873_p2)
}
  0x83   : > { %s3877_s22 = scalar_lea.vmem %s392_s19, 2048  ;;  %p3885_p10 = scmp.lt.s32.totalorder %s392_s19, %s392_s19 }
  0x84   : > { %p3878_p5 = scmp.ne.s32.totalorder %s392_s19, %s3877_s22  ;;  %p3886_p11 = scmp.lt.s32.totalorder %s3877_s22, %s3877_s22 }
  0x86   : > { %p3880_p7 = pnand %p3878_p5, %p4174_p8  ;;  %p3887_p12 = por %p3886_p11, %p3885_p10 }
  0x88   : > { %p3881_p9 = pneg %p3880_p7 }
  0x8a   : > { %p3888_p4 = pnand %p3887_p12, %p3881_p9 }
  0x8c   : > { %3891 = shalt.err (!%p3888_p4)
}
  0x8d   : > { %s4039_s24 = smov 128   ;;  %s4040_s30 = smov 8  }
  0x8e   : > { %3600 = dma.hbm_to_vmem [thread:$0]  (!%p4160_p6), %s4737_s5, 2048, %s392_s19, [#allocation10], %s4039_s24, %s4039_s24, %s4040_s30  }
  0x8f   : > { %s4041_s10 = smov [#allocation14]   ;;  %s3892_s8 = scalar_lea.hbm %s4743_s11, 8192 }
  0x90   : > { %s429_s3 = sshll.u32 %s4041_s10, 4  ;;  %p3893_p13 = scmp.ne.s32.totalorder %s4743_s11, %s3892_s8  ;;  %s430_s3 = int_to_ptr.vmem [resolvable:$true] %s429_s3 }
  0x91   : > { %p3899_p3 = scmp.lt.u32.totalorder %s3892_s8, %s4743_s11 }
  0x92   : > { %p3895_p0 = pnand %p3893_p13, %p4174_p8 }
  0x94   : > { %p3896_p1 = pneg %p3895_p0 }
  0x96   : > { %p3901_p2 = pnand %p3899_p3, %p3896_p1 }
  0x98   : > { %3904 = shalt.err (!%p3901_p2)
}
  0x99   : > { %s3905_s19 = scalar_lea.vmem %s430_s3, 8192  ;;  %p3913_p10 = scmp.lt.s32.totalorder %s430_s3, %s430_s3 }
  0x9a   : > { %p3906_p5 = scmp.ne.s32.totalorder %s430_s3, %s3905_s19  ;;  %p3914_p11 = scmp.lt.s32.totalorder %s3905_s19, %s3905_s19 }
  0x9c   : > { %p3908_p7 = pnand %p3906_p5, %p4174_p8  ;;  %p3915_p12 = por %p3914_p11, %p3913_p10 }
  0x9e   : > { %p3909_p9 = pneg %p3908_p7 }
  0xa0   : > { %p3916_p4 = pnand %p3915_p12, %p3909_p9 }
  0xa2   : > { %3919 = shalt.err (!%p3916_p4)
}
  0xa3   : > { %3606 = dma.hbm_to_vmem [thread:$0]  (!%p4160_p6), %s4743_s11, 8192, %s430_s3, [#allocation13], %s4039_s24, %s4039_s24, %s4040_s30  }
  0xa4   : > { %s2976_s18 = sadd.s32 4294967294, %s4028_s28   ;;  %s4304_s16 = sadd.s32 1, %s4028_s28  }
  0xa5   : > { %s36_s17 = ssub.s32 %s4028_s28, %s4304_s16  ;;  %s39_s20 = sadd.s32 1, %s4024_s27 }
  0xa6   : > { %p37_p8 = scmp.eq.s32.totalorder %s36_s17, 0  ;;  %p46_p13 = scmp.ne.s32.totalorder %s4024_s27, %s4020_s26 }
  0xa7   : > { %p47_p0 = scmp.eq.s32.totalorder %s4028_s28, 0  ;;  %p52_p1 = scmp.ne.s32.totalorder %s4020_s26, %s4016_s25 }
  0xa8   : > { %s4315_s10 = scalar_select %p37_p8, %s4024_s27, %s39_s20  }
  0xa9   : > { %p4317_p3 = por %p47_p0, %p46_p13  ;;  %p4763_p2 = scmp.eq.s32.totalorder %s4142_s14, 0 }
  0xaa   : > { %p328_p5 = scmp.eq.s32.totalorder %s4142_s14, 1  ;;  %p334_p7 = scmp.eq.s32.totalorder %s2976_s18, 1 }
  0xab   : > { %p4323_p6 = por %p4763_p2, %p52_p1  ;;  %p3621_p9 = scmp.lt.s32.totalorder %s4028_s28, 2 }
  0xac   : > { %s446_s7 = sand.u32 1, %s4024_s27   ;;  %p4330_p10 = por %p328_p5, %p46_p13 }
  0xad   : > { %p4334_p11 = por %p334_p7, %p52_p1  ;;  %s2985_s13 = sshll.u32 %s446_s7, 4 }
  0xae   : > { %s4765_s8 = scalar_select %p4330_p10, 1, 0 }
  0xaf   : > { %s4766_s12 = scalar_select %p4334_p11, 1, 0 }
  0xb0   : > { %s3040_s23 = sshll.u32 %s4028_s28, 8  ;;  %s450_s22 = scalar_lea.vmem [#allocation3], %s2985_s13 }
  0xb1   : > { %s4342_s21 = scalar_lea.hbm %s4732_s0, %s3040_s23  ;;  %s457_s18 = sshll.u32 %s450_s22, 4  ;;  %s4344_s18 = int_to_ptr.vmem [resolvable:$true] %s457_s18 }
  0xb2   : > { %p4348_p12 = pnand %p3621_p9, %p4317_p3  ;;  %s4352_s20 = scalar_lea.sflag [#allocation4], %s446_s7 }
  0xb3   : > { %s3920_s29 = scalar_lea.hbm %s4342_s21, 256  ;;  %s3925_s1 = scalar_lea.hbm %s4732_s0, 512 }
  0xb4   : > { %p3921_p4 = scmp.ne.s32.totalorder %s4342_s21, %s3920_s29  ;;  %p3922_p8 = pneg %p4348_p12 }
  0xb5   : > { %p3926_p1 = scmp.lt.u32.totalorder %s4342_s21, %s4732_s0  ;;  %p3927_p3 = scmp.lt.u32.totalorder %s3925_s1, %s3920_s29 }
  0xb6   : > { %p3923_p13 = pnand %p3922_p8, %p3921_p4  ;;  %p3929_p5 = scmp.lt.u32.totalorder %s3920_s29, %s4342_s21 }
  0xb7   : > { %p3928_p2 = por %p3927_p3, %p3926_p1 }
  0xb8   : > { %p3924_p0 = pneg %p3923_p13 }
  0xb9   : > { %p3930_p7 = por %p3929_p5, %p3928_p2 }
  0xbb   : > { %p3931_p9 = pnand %p3930_p7, %p3924_p0 }
  0xbd   : > { %3934 = shalt.err (!%p3931_p9)
}
  0xbe   : > { %s3935_s7 = scalar_lea.vmem %s4344_s18, 256  ;;  %s4042_s13 = smov [#allocation3]  }
  0xbf   : > { %p3936_p4 = scmp.ne.s32.totalorder %s4344_s18, %s3935_s7  ;;  %s3940_s23 = sshll.u32 %s4042_s13, 4  ;;  %s3941_s23 = int_to_ptr.vmem [resolvable:$false] %s3940_s23 }
  0xc0   : > { %s3942_s19 = scalar_lea.vmem %s3941_s23, 512  ;;  %p3943_p10 = scmp.lt.s32.totalorder %s4344_s18, %s3941_s23 }
  0xc1   : > { %p3938_p13 = pnand %p3936_p4, %p3922_p8  ;;  %p3944_p1 = scmp.lt.s32.totalorder %s3942_s19, %s3935_s7 }
  0xc3   : > { %p3939_p11 = pneg %p3938_p13  ;;  %p3945_p3 = por %p3944_p1, %p3943_p10 }
  0xc5   : > { %p3946_p2 = pnand %p3945_p3, %p3939_p11 }
  0xc7   : > { %3949 = shalt.err (!%p3946_p2)
}
  0xc8   : > { %3610 = dma.hbm_to_vmem [thread:$0]  (!%p4348_p12), %s4342_s21, 256, %s4344_s18, %s4352_s20, %s4039_s24, %s4039_s24, %s4040_s30  }
  0xc9   : > { %p4768_p8 = scmp.ne.s32.totalorder %s4757_s15, 0 }
  0xca   : > { %s4386_s29 = sand.u32 (!%p4768_p8), 1, %s4020_s26  }
  0xcb   : > { %469 = sbr.rel (%p4768_p8) target bundleno = 4236 (0x108c), region = 72  ;;  %s2989_s1 = sshll.u32 (!%p4768_p8), %s4386_s29, 4 }
  0xcc   : > { %s472_s22 = scalar_lea.sflag (!%p4768_p8), [#allocation4], %s4386_s29  ;;  %s475_s17 = scalar_lea.vmem (!%p4768_p8), [#allocation3], %s2989_s1 }
  0xd2   : > { %3995 = dma.done.wait (%p4323_p6), %s472_s22, 256  }
  0xd3   : > { %3997 = vsyncadd (%p4323_p6), %s472_s22, 4294967040  ;;  %p4769_p10 = scmp.eq.s32.totalorder %s4142_s14, 0 }
  0xd5   : > { %3999 = dma.done.wait (%p4769_p10), [#allocation7], 32   ;;  %p4770_p11 = pmov %p4769_p10 }
  0xd6   : > { %p4771_p12 = pmov %p4769_p10 }
  0xd7   : > { %4001 = vsyncadd (%p4770_p11), [#allocation7], 4294967264 }
  0xd8   : > { %4003 = dma.done.wait (%p4771_p12), [#allocation10], 8192   ;;  %p4772_p0 = pmov %p4769_p10 }
  0xda   : > { %4005 = vsyncadd (%p4772_p0), [#allocation10], 4294959104  ;;  %p4773_p5 = pmov %p4772_p0 }
  0xdb   : > { %p4774_p7 = pmov %p4772_p0 }
  0xdc   : > { %4007 = dma.done.wait (%p4773_p5), [#allocation13], 16384  }
  0xdd   : > { %4009 = vsyncadd (%p4774_p7), [#allocation13], 4294950912  ;;  %v4408_v0 = vld [vmem:[%s475_s17] sm:$0xff]  ;;  %v4411_v1 = vld [vmem:[%s475_s17 + $0x8] sm:$0xff]  ;;  %vm4044_vm0 = vmmov 0   ;;  %vm812_vm1 = vcmask 261120  }
  0xde   : > { %548 = vadd.xlane.f32.xlu0 %v4408_v0  ;;  %v588_v2 = vld [vmem:[#allocation9 + $0x8] sm:$0xff]  ;;  %v591_v3 = vld [vmem:[#allocation9 + $0x20] sm:$0xff]  ;;  %v590_v6 = vld [vmem:[#allocation9 + $0x18] sm:$0xff]  ;;  %vm965_vm3 = vcmask 64512   ;;  %s4045_s30 = smov 96   ;;  %s4046_s3 = smov 64  }
  0xdf   : > { %v587_v4 = vld [vmem:[#allocation9] sm:$0xff]  ;;  %v3336_v5 = vpack.c.bf16 %v591_v3, %v588_v2  ;;  %v594_v7 = vld [vmem:[#allocation9 + $0x38] sm:$0xff]  ;;  %v597_v8 = vld [vmem:[#allocation9 + $0x50] sm:$0xff]  ;;  %s4047_s21 = smov 32   ;;  %vm1476_vm4 = vcmask 523520   ;;  %vm1817_vm5 = vcmask 785920  }
  0xe0   : > { %v3338_v9 = vpack.c.bf16 %v590_v6, %v587_v4  ;;  %v3340_v10 = vpack.c.bf16 %v597_v8, %v594_v7  ;;  %v589_v11 = vld [vmem:[#allocation9 + $0x10] sm:$0xff]  ;;  %v592_v12 = vld [vmem:[#allocation9 + $0x28] sm:$0xff]  ;;  %v603_v17 = vld [vmem:[#allocation9 + $0x80] sm:$0xff]  ;;  %v4043_v6 = vmov 0.0   ;;  %vm2158_vm6 = vcmask 1048320   ;;  %s4775_s23 = sld [smem:[#allocation23_spill]] }
  0xe1   : > { %v593_v13 = vld [vmem:[#allocation9 + $0x30] sm:$0xff]  ;;  %3337 = vmatprep.subr.bf16.mxu0 %v3336_v5  ;;  %v3368_v14 = vpack.c.bf16 %v592_v12, %v589_v11  ;;  %v596_v15 = vld [vmem:[#allocation9 + $0x48] sm:$0xff]  ;;  %v595_v19 = vld [vmem:[#allocation9 + $0x40] sm:$0xff]  ;;  %716 = vmatprep.mubr.f32.mxu0 %v4043_v6  ;;  %s4776_s17 = sld [smem:[#allocation24_spill]]  ;;  %s4778_s18 = sld [smem:[#allocation26_spill]] }
  0xe2   : > { %550 = vadd.xlane.f32.xlu0 %v4411_v1  ;;  %v600_v16 = vld [vmem:[#allocation9 + $0x68] sm:$0xff]  ;;  %3339 = vmatpush1.bf16.msra.mxu0 %v3338_v9  ;;  %v3342_v18 = vpack.c.bf16 %v596_v15, %v593_v13  ;;  %v598_v20 = vld [vmem:[#allocation9 + $0x58] sm:$0xff]  ;;  %v599_v23 = vld [vmem:[#allocation9 + $0x60] sm:$0xff]  ;;  %s541_s20 = scalar_lea.vmem [#allocation15], %s2989_s1  ;;  %s3041_s13 = sshll.u32 %s4142_s14, 8 }
  0xe3   : > { %3341 = vmatprep.subr.bf16.mxu0 %v3340_v10  ;;  %3369 = vmatprep.subr.bf16.mxu1 %v3368_v14  ;;  %v3344_v21 = vpack.c.bf16 %v603_v17, %v600_v16  ;;  %v3372_v22 = vpack.c.bf16 %v598_v20, %v595_v19  ;;  %v602_v24 = vld [vmem:[#allocation9 + $0x78] sm:$0xff]  ;;  %v609_v35 = vld [vmem:[#allocation9 + $0xb0] sm:$0xff]  ;;  %v604_v38 = vld [vmem:[#allocation9 + $0x88] sm:$0xff]  ;;  %s2846_s7 = sshll.u32 %s541_s20, 4  ;;  %s4779_s22 = sld [smem:[#allocation27_spill]]  ;;  %s4682_s7 = int_to_ptr.vmem [resolvable:$true] %s2846_s7 }
  0xe4   : > { %3371 = vmatpush3.bf16.msra.mxu1 %v3368_v14  ;;  %v3346_v25 = vpack.c.bf16 %v602_v24, %v599_v23  ;;  %v606_v34 = vld [vmem:[#allocation9 + $0x98] sm:$0xff]  ;;  %v601_v36 = vld [vmem:[#allocation9 + $0x70] sm:$0xff]  ;;  %v608_v40 = vld [vmem:[#allocation9 + $0xa8] sm:$0xff]  ;;  %s2833_s1 = scalar_lea.sflag [#allocation5], %s4386_s29  ;;  %s3950_s15 = scalar_lea.vmem %s4682_s7, 256 }
  0xe5   : > { %3373 = vmatprep.subr.bf16.mxu1 %v3372_v22  ;;  %v3348_v37 = vpack.c.bf16 %v609_v35, %v606_v34  ;;  %v605_v39 = vld [vmem:[#allocation9 + $0x90] sm:$0xff]  ;;  %v3376_v41 = vpack.c.bf16 %v604_v38, %v601_v36  ;;  %v612_v43 = vld [vmem:[#allocation9 + $0xc8] sm:$0xff]  ;;  %v615_v44 = vld [vmem:[#allocation9 + $0xe0] sm:$0xff]  ;;  %p3951_p6 = scmp.ne.s32.totalorder %s4682_s7, %s3950_s15  ;;  %p4780_p9 = scmp.ne.s32.totalorder %s4765_s8, 0 }
  0xe6   : > { %3343 = vmatpush1.bf16.msra.mxu0 %v3342_v18  ;;  %v3350_v42 = vpack.c.bf16 %v608_v40, %v605_v39  ;;  %v607_v45 = vld [vmem:[#allocation9 + $0xa0] sm:$0xff]  ;;  %v3352_v46 = vpack.c.bf16 %v615_v44, %v612_v43  ;;  %v610_v47 = vld [vmem:[#allocation9 + $0xb8] sm:$0xff]  ;;  %v621_v53 = vld [vmem:[#allocation9 + $0x110] sm:$0xff]  ;;  %s4048_s14 = smov [#allocation15]  }
  0xe7   : > { %3345 = vmatprep.subr.bf16.mxu0 %v3344_v21  ;;  %v611_v48 = vld [vmem:[#allocation9 + $0xc0] sm:$0xff]  ;;  %v614_v49 = vld [vmem:[#allocation9 + $0xd8] sm:$0xff]  ;;  %v3380_v50 = vpack.c.bf16 %v610_v47, %v607_v45  ;;  %v613_v54 = vld [vmem:[#allocation9 + $0xd0] sm:$0xff]  ;;  %p3952_p4 = pnand %p3951_p6, %p4780_p9  ;;  %s3954_s24 = sshll.u32 %s4048_s14, 4  ;;  %s3955_s24 = int_to_ptr.vmem [resolvable:$false] %s3954_s24 }
  0xe8   : > { %3375 = vmatpush3.bf16.msra.mxu1 %v3372_v22  ;;  %v3354_v51 = vpack.c.bf16 %v614_v49, %v611_v48  ;;  %v618_v52 = vld [vmem:[#allocation9 + $0xf8] sm:$0xff]  ;;  %v616_v56 = vld [vmem:[#allocation9 + $0xe8] sm:$0xff]  ;;  %v617_v57 = vld [vmem:[#allocation9 + $0xf0] sm:$0xff]  ;;  %p3957_p1 = scmp.lt.s32.totalorder %s4682_s7, %s3955_s24 }
  0xe9   : > { %3377 = vmatprep.subr.bf16.mxu1 %v3376_v41  ;;  %v3356_v55 = vpack.c.bf16 %v621_v53, %v618_v52  ;;  %v620_v58 = vld [vmem:[#allocation9 + $0x108] sm:$0xff]  ;;  %v3384_v59 = vpack.c.bf16 %v616_v56, %v613_v54  ;;  %v627_v62 = vld [vmem:[#allocation9 + $0x140] sm:$0xff]  ;;  %v622_v3 = vld [vmem:[#allocation9 + $0x118] sm:$0xff]  ;;  %p3953_p13 = pneg %p3952_p4 }
  0xea   : > { %3347 = vmatpush1.bf16.msra.mxu0 %v3346_v25  ;;  %v3358_v60 = vpack.c.bf16 %v620_v58, %v617_v57  ;;  %v624_v61 = vld [vmem:[#allocation9 + $0x128] sm:$0xff]  ;;  %v619_v63 = vld [vmem:[#allocation9 + $0x100] sm:$0xff]  ;;  %v626_v5 = vld [vmem:[#allocation9 + $0x138] sm:$0xff] }
  0xeb   : > { %3349 = vmatprep.subr.bf16.mxu0 %v3348_v37  ;;  %v3360_v2 = vpack.c.bf16 %v627_v62, %v624_v61  ;;  %v623_v4 = vld [vmem:[#allocation9 + $0x120] sm:$0xff]  ;;  %v3388_v7 = vpack.c.bf16 %v622_v3, %v619_v63  ;;  %v630_v9 = vld [vmem:[#allocation9 + $0x158] sm:$0xff]  ;;  %v633_v10 = vld [vmem:[#allocation9 + $0x170] sm:$0xff] }
  0xec   : > { %3379 = vmatpush3.bf16.msra.mxu1 %v3376_v41  ;;  %v3362_v8 = vpack.c.bf16 %v626_v5, %v623_v4  ;;  %v625_v11 = vld [vmem:[#allocation9 + $0x130] sm:$0xff]  ;;  %v3364_v12 = vpack.c.bf16 %v633_v10, %v630_v9  ;;  %v628_v13 = vld [vmem:[#allocation9 + $0x148] sm:$0xff]  ;;  %v631_v18 = vld [vmem:[#allocation9 + $0x160] sm:$0xff] }
  0xed   : > { %3381 = vmatprep.subr.bf16.mxu1 %v3380_v50  ;;  %v629_v14 = vld [vmem:[#allocation9 + $0x150] sm:$0xff]  ;;  %v632_v15 = vld [vmem:[#allocation9 + $0x168] sm:$0xff]  ;;  %v3392_v16 = vpack.c.bf16 %v628_v13, %v625_v11  ;;  %v634_v19 = vld [vmem:[#allocation9 + $0x178] sm:$0xff] }
  0xee   : > { %3351 = vmatpush1.bf16.msra.mxu0 %v3350_v42  ;;  %v3366_v17 = vpack.c.bf16 %v632_v15, %v629_v14  ;;  %v3396_v20 = vpack.c.bf16 %v634_v19, %v631_v18  ;;  %v635_v40 = vld [vmem:[%s4736_s4] sm:$0x7] }
  0xef   : > { %3353 = vmatprep.subr.bf16.mxu0 %v3352_v46 }
  0xf0   : > { %3383 = vmatpush3.bf16.msra.mxu1 %v3380_v50 }
  0xf1   : > { %3385 = vmatprep.subr.bf16.mxu1 %v3384_v59 }
  0xf2   : > { %3355 = vmatpush1.bf16.msra.mxu0 %v3354_v51 }
  0xf3   : > { %3357 = vmatprep.subr.bf16.mxu0 %v3356_v55 }
  0xf4   : > { %3387 = vmatpush3.bf16.msra.mxu1 %v3384_v59 }
  0xf5   : > { %3389 = vmatprep.subr.bf16.mxu1 %v3388_v7 }
  0xf6   : > { %3359 = vmatpush1.bf16.msra.mxu0 %v3358_v60 }
  0xf7   : > { %3361 = vmatprep.subr.bf16.mxu0 %v3360_v2 }
  0xf8   : > { %3391 = vmatpush3.bf16.msra.mxu1 %v3388_v7 }
  0xf9   : > { %3393 = vmatprep.subr.bf16.mxu1 %v3392_v16 }
  0xfa   : > { %3363 = vmatpush1.bf16.msra.mxu0 %v3362_v8 }
  0xfb   : > { %3365 = vmatprep.subr.bf16.mxu0 %v3364_v12 }
  0xfc   : > { %3395 = vmatpush3.bf16.msra.mxu1 %v3392_v16 }
  0xfd   : > { %3397 = vmatprep.subr.bf16.mxu1 %v3396_v20 }
  0xfe   : > { %3367 = vmatpush1.bf16.msra.mxu0 %v3366_v17 }
  0xff   : > { %3221 = vmatprep.subr.mxu0 %v4043_v6 }
 0x100   : > { %3399 = vmatpush3.bf16.msra.mxu1 %v3396_v20 }
 0x101   : > { %3251 = vmatprep.subr.mxu1 %v4043_v6 }
 0x16b   : > { %v549_v26 = vpop.xlane.xlu0 %548 }
 0x16c   : > { %v553_v27 = vmul.f32 0.0078125, %v549_v26 }
 0x16e   : > { %v4415_v28 = vsub.f32 %v4408_v0, %v553_v27 }
 0x16f   : > { %v551_v29 = vpop.xlane.xlu0 %550 }
 0x170   : > { %v554_v30 = vmul.f32 0.0078125, %v551_v29  ;;  %v557_v31 = vmul.f32 %v4415_v28, %v4415_v28  ;;  %v2997_v29 = vld [vmem:[#allocation6] ss:$0 sm:$0xff] }
 0x172   : > { %v4420_v32 = vsub.f32 %v4411_v1, %v554_v30  ;;  %559 = vadd.xlane.f32.xlu1 %v557_v31  ;;  %v2998_v31 = vld [vmem:[#allocation8] ss:$0 sm:$0xff] }
 0x174   : > { %v558_v33 = vmul.f32 %v4420_v32, %v4420_v32 }
 0x176   : > { %561 = vadd.xlane.f32.xlu1 %v558_v33 }
 0x1ff   : > { %v560_v21 = vpop.xlane.xlu1 %559 }
 0x200   : > { %v563_v22 = vmul.f32 0.0078125, %v560_v21 }
 0x202   : > { %v565_v23 = vadd.f32 1e-05, %v563_v22 }
 0x203   : > { %v562_v24 = vpop.xlane.xlu1 %561 }
 0x204   : > { %3680 = vrsqrt.f32 %v565_v23  ;;  %v564_v25 = vmul.f32 0.0078125, %v562_v24 }
 0x206   : > { %v566_v26 = vadd.f32 1e-05, %v564_v25 }
 0x208   : > { %3682 = vrsqrt.f32 %v566_v26 }
 0x20e   : > { %v3681_v27 = vpop.eup %3680 }
 0x20f   : > { %v569_v30 = vmul.f32 %v3681_v27, %v4415_v28  ;;  %v637_v28 = vlaneseq }
 0x211   : > { %v577_v33 = vmul.f32 %v2997_v29, %v569_v30  ;;  %v4434_v39 = vshrl.u32 %v637_v28, 7  ;;  %v809_v60 = vand.u32 127, %v637_v28 }
 0x212   : > { %v3683_v34 = vpop.eup %3682 }
 0x213   : > { %v585_v35 = vadd.f32 %v2998_v31, %v577_v33  ;;  %v570_v36 = vmul.f32 %v3683_v34, %v4420_v32  ;;  %v639_v32 = vsub.s32 0, %v4434_v39  ;;  %v643_v41 = vsub.s32 1, %v4434_v39 }
 0x214   : > { %v647_v43 = vsub.s32 2, %v4434_v39  ;;  %vm810_vm2 = vcmp.gt.s32.totalorder %v809_v60, %v4434_v39 }
 0x215   : > { %717 = vmatmul.mubr.f32.vlgmr.msra.gmra.mrb[0].mxu0 %v585_v35  ;;  %3218 = vmatprep.mubr.f32.mxu1 %v585_v35  ;;  %v578_v37 = vmul.f32 %v2997_v29, %v570_v36  ;;  %v640_v42 = vrot.slane %v635_v40, %v639_v32  ;;  %v644_v44 = vrot.slane %v635_v40, %v643_v41  ;;  %v4478_v61 = vsel %vm810_vm2, -1e+30, %v4043_v6 }
 0x216   : > { %722 = vmatprep.mubr.f32.mxu0 %v4043_v6  ;;  %v648_v48 = vrot.slane %v635_v40, %v647_v43 }
 0x217   : > { %v586_v38 = vadd.f32 %v2998_v31, %v578_v37 }
 0x219   : > { %723 = vmatmul.mubr.f32.gmra.mrb[2].mxu0 %v586_v38  ;;  %3219 = vmatmul.mubr.f32.vlgmr.msra.gmra.mrb[0].mxu1 %v586_v38 }
 0x21a   : > { %3223 = vmatprep.mubr.msk.f32.mxu0 %vm4044_vm0, %v4043_v6  ;;  %3253 = vmatprep.mubr.msk.f32.mxu1 %vm4044_vm0, %v4043_v6 }
 0x2e8   : > { %v718_v45 = vpop.f32.mrb[0].mxu0 }
 0x2e9   : > { %v719_v46 = vadd.f32 %v718_v45, %v640_v42  ;;  %v720_v47 = vpop.f32.mrb[1].mxu0 }
 0x2ea   : > { %v4448_v49 = vadd.f32 %v720_v47, %v644_v44 }
 0x2eb   : > { %v4452_v52 = vmul.f32 0.17677669, %v719_v46 }
 0x2ec   : > { %v724_v50 = vpop.f32.mrb[2].mxu0  ;;  %v3220_v51 = vpop.f32.mrb[0].mxu1  ;;  %3222 = vmatpush3.xpose.msk.msra.mxu0 %vm812_vm1, %v4448_v49 }
 0x2ed   : > { %v725_v53 = vadd.f32 %v724_v50, %v640_v42  ;;  %v4454_v54 = vadd.f32 %v3220_v51, %v648_v48  ;;  %v726_v55 = vpop.f32.mrb[3].mxu0  ;;  %v795_v56 = vpop.f32.mrb[1].mxu1  ;;  %3226 = vmatprep.subr.mxu0 %v4043_v6 }
 0x2ee   : > { %v4457_v57 = vadd.f32 %v726_v55, %v644_v44  ;;  %v4468_v59 = vadd.f32 %v795_v56, %v648_v48 }
 0x2ef   : > { %3224 = vmatmul.mubr.msk.f32.vlgmr.msra.gmra.mrb[4].mxu0 %vm812_vm1, %v4452_v52  ;;  %v4465_v58 = vmul.f32 0.17677669, %v725_v53 }
 0x2f0   : > { %3227 = vmatpush3.xpose.msk.msra.mxu0 %vm812_vm1, %v4457_v57  ;;  %3228 = vmatprep.mubr.msk.f32.mxu0 %vm4044_vm0, %v4043_v6 }
 0x2f1   : > { %3231 = vmatprep.subr.mxu0 %v4043_v6 }
 0x2f3   : > { %3229 = vmatmul.mubr.msk.f32.vlgmr.msra.gmra.mrb[6].mxu0 %vm812_vm1, %v4465_v58 }
 0x2f4   : > { %3232 = vmatpush3.msra.mxu0 %v4468_v59  ;;  %3233 = vmatprep.mubr.msk.f32.mxu0 %vm4044_vm0, %v4043_v6 }
 0x2f5   : > { %3236 = vmatprep.subr.mxu0 %v4043_v6 }
 0x3c2   : > { %v885_v62 = vpop.f32.mrb[4].mxu0 }
 0x3c3   : > { %v886_v63 = vadd.f32 %v885_v62, %v4478_v61  ;;  %v3225_v2 = vpop.f32.mrb[5].mxu0 }
 0x3c5   : > { %v966_v3 = vsel %vm965_vm3, %v886_v63, -inf }
 0x3c6   : > { %967 = vmax.xlane.f32.xlu0 %v966_v3  ;;  %v961_v4 = vpop.f32.mrb[6].mxu0 }
 0x3c7   : > { %v962_v5 = vadd.f32 %v961_v4, %v4478_v61  ;;  %v3230_v7 = vpop.f32.mrb[7].mxu0 }
 0x3c9   : > { %v969_v8 = vsel %vm965_vm3, %v962_v5, -inf }
 0x3ca   : > { %970 = vmax.xlane.f32.xlu1 %v969_v8 }
 0x3db   : > { %1136 = vrot.lane.b32.xlu1 %v4452_v52, %s4045_s30 }
 0x3df   : > { %1216 = vrot.lane.b32.xlu1 %v4457_v57, %s4045_s30 }
 0x453   : > { %v968_v9 = vpop.xlane.xlu0 %967 }
 0x454   : > { %v972_v10 = vsub.f32 %v886_v63, %v968_v9 }
 0x456   : > { %v974_v11 = vmul.f32 1.442695, %v972_v10 }
 0x457   : > { %v971_v12 = vpop.xlane.xlu1 %970 }
 0x458   : > { %3684 = vpow2.f32 %v974_v11  ;;  %v973_v13 = vsub.f32 %v962_v5, %v971_v12 }
 0x45a   : > { %v976_v14 = vmul.f32 1.442695, %v973_v13 }
 0x45b   : > { %v1137_v19 = vpop.permute.xlu1 %1136 }
 0x45c   : > { %3686 = vpow2.f32 %v976_v14 }
 0x45f   : > { %v1217_v20 = vpop.permute.xlu1 %1216 }
 0x462   : > { %v3685_v15 = vpop.eup %3684 }
 0x463   : > { %v978_v16 = vsel %vm965_vm3, %v3685_v15, 0.0 }
 0x464   : > { %979 = vadd.xlane.f32.xlu0 %v978_v16 }
 0x466   : > { %v3687_v17 = vpop.eup %3686 }
 0x467   : > { %v981_v18 = vsel %vm965_vm3, %v3687_v17, 0.0 }
 0x468   : > { %982 = vadd.xlane.f32.xlu1 %v981_v18 }
 0x479   : > { %1214 = vrot.lane.b32.xlu1 %v4465_v58, %s4045_s30 }
 0x47a   : > { %1138 = vrot.lane.b32.xlu0 %v4448_v49, %s4045_s30 }
 0x4f1   : > { %v980_v21 = vpop.xlane.xlu0 %979 }
 0x4f2   : > { %3688 = vrcp.f32 %v980_v21 }
 0x4f5   : > { %v983_v22 = vpop.xlane.xlu1 %982  ;;  %v1139_v27 = vpop.permute.xlu0 %1138 }
 0x4f6   : > { %3690 = vrcp.f32 %v983_v22 }
 0x4f9   : > { %v1215_v29 = vpop.permute.xlu1 %1214 }
 0x4fc   : > { %v3689_v23 = vpop.eup %3688 }
 0x4fd   : > { %v986_v24 = vmul.f32 %v3689_v23, %v3685_v15 }
 0x4ff   : > { %3234 = vmatmul.mubr.msk.f32.vlgmr.msra.gmra.mrb[8].mxu0 %vm965_vm3, %v986_v24 }
 0x500   : > { %v3691_v25 = vpop.eup %3690  ;;  %3237 = vmatpush3.msra.mxu0 %v4454_v54  ;;  %3238 = vmatprep.mubr.msk.f32.mxu0 %vm4044_vm0, %v4043_v6 }
 0x501   : > { %v987_v26 = vmul.f32 %v3691_v25, %v3687_v17  ;;  %3241 = vmatprep.subr.mxu0 %v4043_v6 }
 0x503   : > { %3239 = vmatmul.mubr.msk.f32.vlgmr.msra.gmra.mrb[10].mxu0 %vm965_vm3, %v987_v26 }
 0x504   : > { %3243 = vmatprep.mubr.msk.f32.mxu0 %vm4044_vm0, %v4043_v6 }
 0x507   : > { %3242 = vmatpush3.xpose.msk.msra.mxu0 %vm812_vm1, %v1139_v27 }
 0x508   : > { %3246 = vmatprep.subr.mxu0 %v4043_v6 }
 0x50a   : > { %3244 = vmatmul.mubr.msk.f32.vlgmr.msra.gmra.mrb[12].mxu0 %vm812_vm1, %v1137_v19 }
 0x50b   : > { %3247 = vmatpush3.xpose.msk.msra.mxu0 %vm812_vm1, %v1217_v20  ;;  %3248 = vmatprep.mubr.msk.f32.mxu0 %vm4044_vm0, %v4043_v6 }
 0x50c   : > { %3256 = vmatprep.subr.mxu0 %v4043_v6 }
 0x50e   : > { %3249 = vmatmul.mubr.msk.f32.vlgmr.msra.gmra.mrb[14].mxu0 %vm812_vm1, %v1215_v29 }
 0x50f   : > { %3258 = vmatprep.mubr.msk.f32.mxu0 %vm4044_vm0, %v4043_v6 }
 0x5d2   : > { %v1057_v30 = vpop.f32.mrb[8].mxu0 }
 0x5d3   : > { %1134 = vst.msk [vmem:[#allocation2] sm:$0xff] %vm812_vm1, %v1057_v30  ;;  %v3235_v31 = vpop.f32.mrb[9].mxu0 }
 0x5d6   : > { %v1130_v33 = vpop.f32.mrb[10].mxu0 }
 0x5d7   : > { %1135 = vst.msk [vmem:[#allocation2 + $0x8] sm:$0xff] %vm812_vm1, %v1130_v33  ;;  %v3240_v34 = vpop.f32.mrb[11].mxu0 }
 0x5dd   : > { %v1210_v35 = vpop.f32.mrb[12].mxu0 }
 0x5de   : > { %v1211_v36 = vadd.f32 %v1210_v35, %v4478_v61  ;;  %v3245_v37 = vpop.f32.mrb[13].mxu0 }
 0x5e0   : > { %v1292_v38 = vsel %vm965_vm3, %v1211_v36, -inf }
 0x5e1   : > { %1293 = vmax.xlane.f32.xlu0 %v1292_v38  ;;  %v1288_v28 = vpop.f32.mrb[14].mxu0 }
 0x5e2   : > { %v1289_v40 = vadd.f32 %v1288_v28, %v4478_v61  ;;  %v3250_v42 = vpop.f32.mrb[15].mxu0 }
 0x5e4   : > { %v1295_v44 = vsel %vm965_vm3, %v1289_v40, -inf }
 0x5e5   : > { %1296 = vmax.xlane.f32.xlu1 %v1295_v44 }
 0x5f6   : > { %1392 = vrot.lane.b32.xlu1 %v4454_v54, %s4045_s30 }
 0x5f7   : > { %1315 = vrot.lane.b32.xlu0 %v4468_v59, %s4045_s30 }
 0x5fa   : > { %1481 = vrot.lane.b32.xlu1 %v4448_v49, %s4046_s3 }
 0x5fe   : > { %1559 = vrot.lane.b32.xlu1 %v4457_v57, %s4046_s3 }
 0x602   : > { %1557 = vrot.lane.b32.xlu1 %v4465_v58, %s4046_s3 }
 0x66e   : > { %v1294_v45 = vpop.xlane.xlu0 %1293 }
 0x66f   : > { %v1298_v46 = vsub.f32 %v1211_v36, %v1294_v45 }
 0x671   : > { %v1300_v47 = vmul.f32 1.442695, %v1298_v46 }
 0x672   : > { %v1316_v48 = vpop.permute.xlu0 %1315  ;;  %v1297_v50 = vpop.xlane.xlu1 %1296 }
 0x673   : > { %3692 = vpow2.f32 %v1300_v47  ;;  %v1299_v51 = vsub.f32 %v1289_v40, %v1297_v50  ;;  %3252 = vmatpush3.msra.mxu1 %v1316_v48 }
 0x674   : > { %3261 = vmatprep.subr.mxu1 %v4043_v6 }
 0x675   : > { %v1302_v53 = vmul.f32 1.442695, %v1299_v51 }
 0x676   : > { %v1393_v55 = vpop.permute.xlu1 %1392 }
 0x677   : > { %3694 = vpow2.f32 %v1302_v53  ;;  %3257 = vmatpush3.msra.mxu0 %v1393_v55 }
 0x678   : > { %3266 = vmatprep.subr.mxu0 %v4043_v6 }
 0x67a   : > { %v1482_v4 = vpop.permute.xlu1 %1481 }
 0x67d   : > { %v3693_v56 = vpop.eup %3692 }
 0x67e   : > { %v1304_v60 = vsel %vm965_vm3, %v3693_v56, 0.0  ;;  %v1560_v9 = vpop.permute.xlu1 %1559 }
 0x67f   : > { %1305 = vadd.xlane.f32.xlu0 %v1304_v60 }
 0x681   : > { %v3695_v62 = vpop.eup %3694 }
 0x682   : > { %v1307_v63 = vsel %vm965_vm3, %v3695_v62, 0.0  ;;  %v1558_v12 = vpop.permute.xlu1 %1557 }
 0x683   : > { %1308 = vadd.xlane.f32.xlu0 %v1307_v63 }
 0x699   : > { %1479 = vrot.lane.b32.xlu0 %v4452_v52, %s4046_s3 }
 0x70c   : > { %v1306_v2 = vpop.xlane.xlu0 %1305 }
 0x70d   : > { %3696 = vrcp.f32 %v1306_v2 }
 0x710   : > { %v1309_v3 = vpop.xlane.xlu0 %1308 }
 0x711   : > { %3698 = vrcp.f32 %v1309_v3 }
 0x714   : > { %v1480_v11 = vpop.permute.xlu0 %1479 }
 0x717   : > { %v3697_v5 = vpop.eup %3696 }
 0x718   : > { %v1312_v7 = vmul.f32 %v3697_v5, %v3693_v56 }
 0x71a   : > { %3254 = vmatmul.mubr.msk.f32.vlgmr.msra.gmra.mrb[2].mxu1 %vm965_vm3, %v1312_v7 }
 0x71b   : > { %v3699_v8 = vpop.eup %3698  ;;  %3262 = vmatpush3.xpose.msk.msra.mxu1 %vm812_vm1, %v1482_v4  ;;  %3263 = vmatprep.mubr.msk.f32.mxu1 %vm4044_vm0, %v4043_v6 }
 0x71c   : > { %v1313_v10 = vmul.f32 %v3699_v8, %v3695_v62  ;;  %3271 = vmatprep.subr.mxu1 %v4043_v6 }
 0x71e   : > { %3259 = vmatmul.mubr.msk.f32.vlgmr.msra.gmra.mrb[16].mxu0 %vm965_vm3, %v1313_v10  ;;  %3264 = vmatmul.mubr.msk.f32.vlgmr.msra.gmra.mrb[4].mxu1 %vm812_vm1, %v1480_v11 }
 0x71f   : > { %3267 = vmatpush3.xpose.msk.msra.mxu0 %vm812_vm1, %v1560_v9  ;;  %3268 = vmatprep.mubr.msk.f32.mxu0 %vm4044_vm0, %v4043_v6 }
 0x720   : > { %3276 = vmatprep.subr.mxu0 %v4043_v6  ;;  %3273 = vmatprep.mubr.msk.f32.mxu1 %vm4044_vm0, %v4043_v6 }
 0x722   : > { %3269 = vmatmul.mubr.msk.f32.vlgmr.msra.gmra.mrb[18].mxu0 %vm812_vm1, %v1558_v12 }
 0x723   : > { %3278 = vmatprep.mubr.msk.f32.mxu0 %vm4044_vm0, %v4043_v6 }
 0x7ed   : > { %v4550_v13 = vpop.f32.mrb[2].mxu1 }
 0x7ee   : > { %v3255_v14 = vpop.f32.mrb[3].mxu1 }
 0x7f1   : > { %v4552_v15 = vpop.f32.mrb[16].mxu0  ;;  %v1553_v16 = vpop.f32.mrb[4].mxu1 }
 0x7f2   : > { %v1554_v17 = vadd.f32 %v1553_v16, %v4478_v61  ;;  %v3260_v18 = vpop.f32.mrb[17].mxu0  ;;  %v3265_v19 = vpop.f32.mrb[5].mxu1 }
 0x7f4   : > { %v1635_v20 = vsel %vm965_vm3, %v1554_v17, -inf }
 0x7f5   : > { %1636 = vmax.xlane.f32.xlu0 %v1635_v20  ;;  %v1631_v21 = vpop.f32.mrb[18].mxu0 }
 0x7f6   : > { %v1632_v22 = vadd.f32 %v1631_v21, %v4478_v61  ;;  %v3270_v23 = vpop.f32.mrb[19].mxu0 }
 0x7f8   : > { %v1638_v24 = vsel %vm965_vm3, %v1632_v22, -inf }
 0x7f9   : > { %1639 = vmax.xlane.f32.xlu1 %v1638_v24 }
 0x80a   : > { %1733 = vrot.lane.b32.xlu1 %v4454_v54, %s4046_s3 }
 0x80b   : > { %1657 = vrot.lane.b32.xlu0 %v4468_v59, %s4046_s3 }
 0x80e   : > { %1822 = vrot.lane.b32.xlu1 %v4448_v49, %s4047_s21 }
 0x812   : > { %1900 = vrot.lane.b32.xlu1 %v4457_v57, %s4047_s21 }
 0x816   : > { %1898 = vrot.lane.b32.xlu1 %v4465_v58, %s4047_s21 }
 0x882   : > { %v1637_v25 = vpop.xlane.xlu0 %1636 }
 0x883   : > { %v1641_v26 = vsub.f32 %v1554_v17, %v1637_v25  ;;  %v2164_v25 = vld [vmem:[#allocation11 + $0x8] sm:$0xff] }
 0x885   : > { %v1643_v27 = vmul.f32 1.442695, %v1641_v26  ;;  %v2165_v26 = vld [vmem:[#allocation11 + $0x10] sm:$0xff] }
 0x886   : > { %v1658_v29 = vpop.permute.xlu0 %1657  ;;  %v1640_v30 = vpop.xlane.xlu1 %1639 }
 0x887   : > { %3700 = vpow2.f32 %v1643_v27  ;;  %v1642_v31 = vsub.f32 %v1632_v22, %v1640_v30  ;;  %3272 = vmatpush3.msra.mxu1 %v1658_v29  ;;  %v2166_v29 = vld [vmem:[#allocation11 + $0x18] sm:$0xff] }
 0x888   : > { %3281 = vmatprep.subr.mxu1 %v4043_v6  ;;  %v3404_v30 = vpack.c.bf16 %v2166_v29, %v2165_v26  ;;  %v2317_v26 = vld [vmem:[#allocation12 + $0x70] sm:$0xff]  ;;  %v2324_v29 = vld [vmem:[#allocation12 + $0xa8] sm:$0xff] }
 0x889   : > { %v1645_v33 = vmul.f32 1.442695, %v1642_v31  ;;  %v2167_v31 = vld [vmem:[#allocation11 + $0x20] sm:$0xff] }
 0x88a   : > { %v1734_v34 = vpop.permute.xlu1 %1733 }
 0x88b   : > { %3702 = vpow2.f32 %v1645_v33  ;;  %3277 = vmatpush3.msra.mxu0 %v1734_v34  ;;  %v2168_v33 = vld [vmem:[#allocation11 + $0x28] sm:$0xff] }
 0x88c   : > { %3286 = vmatprep.subr.mxu0 %v4043_v6  ;;  %v3408_v34 = vpack.c.bf16 %v2168_v33, %v2167_v31  ;;  %v2322_v33 = vld [vmem:[#allocation12 + $0x98] sm:$0xff] }
 0x88e   : > { %v1823_v38 = vpop.permute.xlu1 %1822 }
 0x891   : > { %v3701_v49 = vpop.eup %3700 }
 0x892   : > { %v1647_v57 = vsel %vm965_vm3, %v3701_v49, 0.0  ;;  %v1901_v44 = vpop.permute.xlu1 %1900 }
 0x893   : > { %1648 = vadd.xlane.f32.xlu0 %v1647_v57  ;;  %v2170_v57 = vld [vmem:[#allocation11 + $0x38] sm:$0xff] }
 0x895   : > { %v3703_v58 = vpop.eup %3702 }
 0x896   : > { %v1650_v35 = vsel %vm965_vm3, %v3703_v58, 0.0  ;;  %v1899_v46 = vpop.permute.xlu1 %1898 }
 0x897   : > { %1651 = vadd.xlane.f32.xlu0 %v1650_v35  ;;  %v2171_v35 = vld [vmem:[#allocation11 + $0x40] sm:$0xff] }
 0x8ad   : > { %1820 = vrot.lane.b32.xlu0 %v4452_v52, %s4047_s21 }
 0x920   : > { %v1649_v36 = vpop.xlane.xlu0 %1648 }
 0x921   : > { %3704 = vrcp.f32 %v1649_v36  ;;  %v2172_v36 = vld [vmem:[#allocation11 + $0x48] sm:$0xff] }
 0x924   : > { %v1652_v37 = vpop.xlane.xlu0 %1651 }
 0x925   : > { %3706 = vrcp.f32 %v1652_v37  ;;  %v3416_v37 = vpack.c.bf16 %v2172_v36, %v2171_v35  ;;  %v2321_v35 = vld [vmem:[#allocation12 + $0x90] sm:$0xff] }
 0x926   : > { %v2325_v36 = vld [vmem:[#allocation12 + $0xb0] sm:$0xff] }
 0x928   : > { %v1821_v52 = vpop.permute.xlu0 %1820 }
 0x92b   : > { %v3705_v28 = vpop.eup %3704 }
 0x92c   : > { %v1655_v40 = vmul.f32 %v3705_v28, %v3701_v49  ;;  %v2169_v49 = vld [vmem:[#allocation11 + $0x30] sm:$0xff]  ;;  %v2174_v28 = vld [vmem:[#allocation11 + $0x58] sm:$0xff] }
 0x92e   : > { %3274 = vmatmul.mubr.msk.f32.vlgmr.msra.gmra.mrb[6].mxu1 %vm965_vm3, %v1655_v40 }
 0x92f   : > { %v3707_v42 = vpop.eup %3706  ;;  %3282 = vmatpush3.xpose.msk.msra.mxu1 %vm812_vm1, %v1823_v38  ;;  %3283 = vmatprep.mubr.msk.f32.mxu1 %vm4044_vm0, %v4043_v6  ;;  %v2173_v38 = vld [vmem:[#allocation11 + $0x50] sm:$0xff] }
 0x930   : > { %v1656_v45 = vmul.f32 %v3707_v42, %v3703_v58  ;;  %3291 = vmatprep.subr.mxu1 %v4043_v6  ;;  %v3412_v58 = vpack.c.bf16 %v2170_v57, %v2169_v49  ;;  %v3420_v40 = vpack.c.bf16 %v2174_v28, %v2173_v38  ;;  %v2175_v42 = vld [vmem:[#allocation11 + $0x60] sm:$0xff]  ;;  %v3474_v38 = vpack.c.bf16 %v2325_v36, %v2321_v35  ;;  %v2357_v36 = vld [vmem:[#allocation12 + $0x1b0] sm:$0xff] }
 0x931   : > { %v2319_v49 = vld [vmem:[#allocation12 + $0x80] sm:$0xff] }
 0x932   : > { %3279 = vmatmul.mubr.msk.f32.vlgmr.msra.gmra.mrb[20].mxu0 %vm965_vm3, %v1656_v45  ;;  %3284 = vmatmul.mubr.msk.f32.vlgmr.msra.gmra.mrb[8].mxu1 %vm812_vm1, %v1821_v52  ;;  %v2177_v52 = vld [vmem:[#allocation11 + $0x70] sm:$0xff] }
 0x933   : > { %3287 = vmatpush3.xpose.msk.msra.mxu0 %vm812_vm1, %v1901_v44  ;;  %3288 = vmatprep.mubr.msk.f32.mxu0 %vm4044_vm0, %v4043_v6  ;;  %v2176_v44 = vld [vmem:[#allocation11 + $0x68] sm:$0xff] }
 0x934   : > { %3296 = vmatprep.subr.mxu0 %v4043_v6  ;;  %3293 = vmatprep.mubr.msk.f32.mxu1 %vm4044_vm0, %v4043_v6  ;;  %v3424_v45 = vpack.c.bf16 %v2176_v44, %v2175_v42 }
 0x936   : > { %3289 = vmatmul.mubr.msk.f32.vlgmr.msra.gmra.mrb[22].mxu0 %vm812_vm1, %v1899_v46  ;;  %v2178_v46 = vld [vmem:[#allocation11 + $0x78] sm:$0xff] }
 0x937   : > { %3298 = vmatprep.mubr.msk.f32.mxu0 %vm4044_vm0, %v4043_v6 }
 0xa01   : > { %v1729_v47 = vpop.f32.mrb[6].mxu1 }
 0xa02   : > { %v3275_v48 = vpop.f32.mrb[7].mxu1 }
 0xa05   : > { %v1805_v50 = vpop.f32.mrb[20].mxu0  ;;  %v1894_v51 = vpop.f32.mrb[8].mxu1 }
 0xa06   : > { %v1895_v53 = vadd.f32 %v1894_v51, %v4478_v61  ;;  %v3280_v55 = vpop.f32.mrb[21].mxu0  ;;  %v3285_v56 = vpop.f32.mrb[9].mxu1 }
 0xa08   : > { %v1976_v60 = vsel %vm965_vm3, %v1895_v53, -inf }
 0xa09   : > { %1977 = vmax.xlane.f32.xlu0 %v1976_v60  ;;  %v1972_v62 = vpop.f32.mrb[22].mxu0 }
 0xa0a   : > { %v1973_v63 = vadd.f32 %v1972_v62, %v4478_v61  ;;  %v3290_v2 = vpop.f32.mrb[23].mxu0 }
 0xa0c   : > { %v1979_v3 = vsel %vm965_vm3, %v1973_v63, -inf }
 0xa0d   : > { %1980 = vmax.xlane.f32.xlu1 %v1979_v3 }
 0xa1e   : > { %2074 = vrot.lane.b32.xlu1 %v4454_v54, %s4047_s21 }
 0xa22   : > { %1470 = vrot.lane.b32.xlu1 %v4550_v13, %s4047_s21 }
 0xa26   : > { %1472 = vrot.lane.b32.xlu1 %v4552_v15, %s4047_s21 }
 0xa2a   : > { %1813 = vrot.lane.b32.xlu1 %v1805_v50, %s4046_s3 }
 0xa96   : > { %v1978_v4 = vpop.xlane.xlu0 %1977 }
 0xa97   : > { %v1982_v5 = vsub.f32 %v1895_v53, %v1978_v4 }
 0xa99   : > { %v1984_v7 = vmul.f32 1.442695, %v1982_v5 }
 0xa9a   : > { %v1981_v8 = vpop.xlane.xlu1 %1980 }
 0xa9b   : > { %3708 = vpow2.f32 %v1984_v7  ;;  %v1983_v61 = vsub.f32 %v1973_v63, %v1981_v8  ;;  %v3023_v63 = vld [vmem:[%s4738_s6] ss:$0 sm:$0xff] }
 0xa9d   : > { %v1986_v9 = vmul.f32 1.442695, %v1983_v61  ;;  %v2304_v61 = vld [vmem:[#allocation12 + $0x8] sm:$0xff] }
 0xa9e   : > { %v2075_v10 = vpop.permute.xlu1 %2074 }
 0xa9f   : > { %3710 = vpow2.f32 %v1986_v9  ;;  %3297 = vmatpush3.msra.mxu0 %v2075_v10  ;;  %v2308_v9 = vld [vmem:[#allocation12 + $0x28] sm:$0xff]  ;;  %v2306_v10 = vld [vmem:[#allocation12 + $0x18] sm:$0xff] }
 0xaa2   : > { %v1471_v54 = vpop.permute.xlu1 %1470 }
 0xaa3   : > { %1477 = vst.msk [vmem:[#allocation2] sm:$0xff] %vm1476_vm4, %v1471_v54  ;;  %v3432_v54 = vpack.c.bf16 %v2308_v9, %v2304_v61  ;;  %v2340_v61 = vld [vmem:[#allocation12 + $0x128] sm:$0xff]  ;;  %v2338_v9 = vld [vmem:[#allocation12 + $0x118] sm:$0xff] }
 0xaa5   : > { %v3709_v11 = vpop.eup %3708  ;;  %3433 = vmatprep.subr.bf16.mxu0 %v3432_v54  ;;  %v2342_v54 = vld [vmem:[#allocation12 + $0x138] sm:$0xff] }
 0xaa6   : > { %v1473_v12 = vpop.permute.xlu1 %1472  ;;  %v1988_v13 = vsel %vm965_vm3, %v3709_v11, 0.0 }
 0xaa7   : > { %1478 = vst.msk [vmem:[#allocation2 + $0x8] sm:$0xff] %vm1476_vm4, %v1473_v12  ;;  %1989 = vadd.xlane.f32.xlu0 %v1988_v13  ;;  %v2303_v12 = vld [vmem:[#allocation12] sm:$0xff] }
 0xaa8   : > { %v2307_v13 = vld [vmem:[#allocation12 + $0x20] sm:$0xff] }
 0xaa9   : > { %v3711_v14 = vpop.eup %3710 }
 0xaaa   : > { %v1814_v15 = vpop.permute.xlu1 %1813  ;;  %v1991_v16 = vsel %vm965_vm3, %v3711_v14, 0.0 }
 0xaab   : > { %1819 = vst.msk [vmem:[#allocation2 + $0x8] sm:$0xff] %vm1817_vm5, %v1814_v15  ;;  %1992 = vadd.xlane.f32.xlu0 %v1991_v16  ;;  %v3434_v15 = vpack.c.bf16 %v2307_v13, %v2303_v12  ;;  %v2305_v16 = vld [vmem:[#allocation12 + $0x10] sm:$0xff]  ;;  %v2339_v12 = vld [vmem:[#allocation12 + $0x120] sm:$0xff]  ;;  %v3480_v13 = vpack.c.bf16 %v2342_v54, %v2338_v9  ;;  %v3025_v9 = vld [vmem:[%s4776_s17] ss:$0 sm:$0xff]  ;;  %s4687_s17 = scalar_lea.hbm %s4779_s22, %s3041_s13 }
 0xac1   : > { %1998 = vrot.lane.b32.xlu0 %v4468_v59, %s4047_s21  ;;  %v2163_v59 = vld [vmem:[#allocation11] sm:$0xff] }
 0xac2   : > { %v3400_v27 = vpack.c.bf16 %v2164_v25, %v2163_v59  ;;  %v2313_v59 = vld [vmem:[#allocation12 + $0x50] sm:$0xff] }
 0xac5   : > { %1811 = vrot.lane.b32.xlu0 %v1729_v47, %s4046_s3  ;;  %v3428_v47 = vpack.c.bf16 %v2178_v46, %v2177_v52 }
 0xb34   : > { %v1990_v17 = vpop.xlane.xlu0 %1989 }
 0xb35   : > { %3712 = vrcp.f32 %v1990_v17  ;;  %v2309_v17 = vld [vmem:[#allocation12 + $0x30] sm:$0xff] }
 0xb38   : > { %v1993_v18 = vpop.xlane.xlu0 %1992 }
 0xb39   : > { %3714 = vrcp.f32 %v1993_v18  ;;  %v3466_v18 = vpack.c.bf16 %v2309_v17, %v2305_v16  ;;  %v2341_v16 = vld [vmem:[#allocation12 + $0x130] sm:$0xff] }
 0xb3c   : > { %v1999_v19 = vpop.permute.xlu0 %1998 }
 0xb3d   : > { %3292 = vmatpush3.msra.mxu1 %v1999_v19  ;;  %v2314_v19 = vld [vmem:[#allocation12 + $0x58] sm:$0xff] }
 0xb3e   : > { %3401 = vmatprep.subr.bf16.mxu1 %v3400_v27 }
 0xb3f   : > { %v3713_v20 = vpop.eup %3712 }
 0xb40   : > { %v1996_v21 = vmul.f32 %v3713_v20, %v3709_v11  ;;  %v1812_v22 = vpop.permute.xlu0 %1811  ;;  %v2310_v11 = vld [vmem:[#allocation12 + $0x38] sm:$0xff] }
 0xb41   : > { %1818 = vst.msk [vmem:[#allocation2] sm:$0xff] %vm1817_vm5, %v1812_v22  ;;  %v2318_v20 = vld [vmem:[#allocation12 + $0x78] sm:$0xff] }
 0xb42   : > { %3294 = vmatmul.mubr.msk.f32.vlgmr.msra.gmra.mrb[10].mxu1 %vm965_vm3, %v1996_v21  ;;  %v3468_v22 = vpack.c.bf16 %v2318_v20, %v2314_v19  ;;  %v2350_v20 = vld [vmem:[#allocation12 + $0x178] sm:$0xff] }
 0xb43   : > { %v3715_v23 = vpop.eup %3714  ;;  %3403 = vmatpush3.bf16.msra.mxu1 %v3400_v27  ;;  %v2320_v27 = vld [vmem:[#allocation12 + $0x88] sm:$0xff] }
 0xb44   : > { %v1997_v24 = vmul.f32 %v3715_v23, %v3711_v14  ;;  %3405 = vmatprep.subr.bf16.mxu1 %v3404_v30  ;;  %v3464_v14 = vpack.c.bf16 %v2310_v11, %v2306_v10  ;;  %v2311_v23 = vld [vmem:[#allocation12 + $0x40] sm:$0xff]  ;;  %v3440_v31 = vpack.c.bf16 %v2324_v29, %v2320_v27  ;;  %v2356_v29 = vld [vmem:[#allocation12 + $0x1a8] sm:$0xff] }
 0xb45   : > { %v2335_v11 = vld [vmem:[#allocation12 + $0x100] sm:$0xff] }
 0xb46   : > { %3299 = vmatmul.mubr.msk.f32.vlgmr.msra.gmra.mrb[24].mxu0 %vm965_vm3, %v1997_v24  ;;  %v2315_v24 = vld [vmem:[#allocation12 + $0x60] sm:$0xff] }
 0xb47   : > { %2453 = vmatprep.mubr.f32.mxu0 %v4043_v6  ;;  %3407 = vmatpush3.bf16.msra.mxu1 %v3404_v30  ;;  %v3438_v25 = vpack.c.bf16 %v2315_v24, %v2311_v23  ;;  %v3470_v30 = vpack.c.bf16 %v2317_v26, %v2313_v59  ;;  %v2345_v59 = vld [vmem:[#allocation12 + $0x150] sm:$0xff]  ;;  %v2352_v26 = vld [vmem:[#allocation12 + $0x188] sm:$0xff] }
 0xb48   : > { %3409 = vmatprep.subr.bf16.mxu1 %v3408_v34  ;;  %3435 = vmatpush1.bf16.msra.mxu0 %v3434_v15  ;;  %v2337_v15 = vld [vmem:[#allocation12 + $0x110] sm:$0xff] }
 0xb49   : > { %v3482_v17 = vpack.c.bf16 %v2341_v16, %v2337_v15  ;;  %v2624_v15 = vld [vmem:[#allocation14 + $0x88] sm:$0xff]  ;;  %v2655_v16 = vld [vmem:[#allocation14 + $0x180] sm:$0xff] }
 0xb4b   : > { %3411 = vmatpush3.bf16.msra.mxu1 %v3408_v34  ;;  %v2326_v34 = vld [vmem:[#allocation12 + $0xb8] sm:$0xff] }
 0xb4c   : > { %3413 = vmatprep.subr.bf16.mxu1 %v3412_v58  ;;  %v3472_v57 = vpack.c.bf16 %v2326_v34, %v2322_v33  ;;  %v3456_v33 = vpack.c.bf16 %v2356_v29, %v2352_v26  ;;  %v2609_v26 = vld [vmem:[#allocation14 + $0x10] sm:$0xff] }
 0xb4f   : > { %3415 = vmatpush3.bf16.msra.mxu1 %v3412_v58  ;;  %v2323_v58 = vld [vmem:[#allocation12 + $0xa0] sm:$0xff] }
 0xb50   : > { %3417 = vmatprep.subr.bf16.mxu1 %v3416_v37 }
 0xb53   : > { %3419 = vmatpush3.bf16.msra.mxu1 %v3416_v37  ;;  %v3442_v37 = vpack.c.bf16 %v2323_v58, %v2319_v49  ;;  %v2351_v49 = vld [vmem:[#allocation12 + $0x180] sm:$0xff]  ;;  %v2353_v58 = vld [vmem:[#allocation12 + $0x190] sm:$0xff] }
 0xb54   : > { %3421 = vmatprep.subr.bf16.mxu1 %v3420_v40 }
 0xb57   : > { %3423 = vmatpush3.bf16.msra.mxu1 %v3420_v40 }
 0xb58   : > { %3425 = vmatprep.subr.bf16.mxu1 %v3424_v45 }
 0xb5b   : > { %3427 = vmatpush3.bf16.msra.mxu1 %v3424_v45 }
 0xb5c   : > { %3429 = vmatprep.subr.bf16.mxu1 %v3428_v47 }
 0xb5f   : > { %3431 = vmatpush3.bf16.msra.mxu1 %v3428_v47 }
 0xb60   : > { %3465 = vmatprep.subr.bf16.mxu1 %v3464_v14  ;;  %v3450_v14 = vpack.c.bf16 %v2339_v12, %v2335_v11 }
 0xc15   : > { %v2070_v48 = vpop.f32.mrb[10].mxu1 }
 0xc16   : > { %2152 = vrot.lane.b32.xlu0 %v2070_v48, %s4045_s30  ;;  %v3295_v50 = vpop.f32.mrb[11].mxu1  ;;  %v2328_v48 = vld [vmem:[#allocation12 + $0xc8] sm:$0xff] }
 0xc17   : > { %v2332_v50 = vld [vmem:[#allocation12 + $0xe8] sm:$0xff] }
 0xc19   : > { %v2146_v51 = vpop.f32.mrb[24].mxu0 }
 0xc1a   : > { %2154 = vrot.lane.b32.xlu1 %v2146_v51, %s4045_s30  ;;  %v3300_v53 = vpop.f32.mrb[25].mxu0  ;;  %v2330_v51 = vld [vmem:[#allocation12 + $0xd8] sm:$0xff]  ;;  %s4777_s30 = sld [smem:[#allocation25_spill]] }
 0xc1b   : > { %v3444_v53 = vpack.c.bf16 %v2332_v50, %v2328_v48  ;;  %v2363_v48 = vld [vmem:[#allocation12 + $0x1e0] sm:$0xff]  ;;  %v2361_v50 = vld [vmem:[#allocation12 + $0x1d0] sm:$0xff] }
 0xc88   : > { %v2153_v55 = vpop.permute.xlu0 %2152 }
 0xc89   : > { %2159 = vst.msk [vmem:[#allocation2] sm:$0xff] %vm2158_vm6, %v2153_v55  ;;  %v2334_v55 = vld [vmem:[#allocation12 + $0xf8] sm:$0xff] }
 0xc8c   : > { %v2155_v56 = vpop.permute.xlu1 %2154 }
 0xc8d   : > { %2160 = vst.msk [vmem:[#allocation2 + $0x8] sm:$0xff] %vm2158_vm6, %v2155_v56  ;;  %v2327_v56 = vld [vmem:[#allocation12 + $0xc0] sm:$0xff] }
 0xc90   : > { %v2161_v60 = vld [vmem:[#allocation2] sm:$0xff] }
 0xc91   : > { %3333 = vmatprep.mubr.f32.mxu1 %v2161_v60  ;;  %v2331_v60 = vld [vmem:[#allocation12 + $0xe0] sm:$0xff] }
 0xc94   : > { %v2162_v62 = vld [vmem:[#allocation2 + $0x8] sm:$0xff] }
 0xc95   : > { %3334 = vmatmul.mubr.f32.vlgmr.msra.gmra.mrb[12].mxu1 %v2162_v62  ;;  %v3476_v62 = vpack.c.bf16 %v2334_v55, %v2330_v51  ;;  %v2365_v51 = vld [vmem:[#allocation12 + $0x1f0] sm:$0xff] }
 0xc96   : > { %2530 = vmatprep.mubr.f32.mxu1 %v4043_v6  ;;  %3467 = vmatpush1.bf16.msra.mxu1 %v3466_v18  ;;  %v2348_v18 = vld [vmem:[#allocation12 + $0x168] sm:$0xff]  ;;  %v3494_v55 = vpack.c.bf16 %v2365_v51, %v2361_v50  ;;  %v2661_v50 = vld [vmem:[#allocation14 + $0x1b0] sm:$0xff] }
 0xc97   : > { %3469 = vmatprep.subr.bf16.mxu1 %v3468_v22  ;;  %v2347_v22 = vld [vmem:[#allocation12 + $0x160] sm:$0xff] }
 0xc9a   : > { %3471 = vmatpush1.bf16.msra.mxu1 %v3470_v30  ;;  %v2354_v30 = vld [vmem:[#allocation12 + $0x198] sm:$0xff] }
 0xc9b   : > { %3473 = vmatprep.subr.bf16.mxu1 %v3472_v57  ;;  %v2355_v57 = vld [vmem:[#allocation12 + $0x1a0] sm:$0xff] }
 0xc9c   : > { %v3458_v35 = vpack.c.bf16 %v2355_v57, %v2351_v49  ;;  %v2627_v49 = vld [vmem:[#allocation14 + $0xa0] sm:$0xff]  ;;  %v2628_v57 = vld [vmem:[#allocation14 + $0xa8] sm:$0xff] }
 0xc9e   : > { %3475 = vmatpush1.bf16.msra.mxu1 %v3474_v38  ;;  %v2364_v38 = vld [vmem:[#allocation12 + $0x1e8] sm:$0xff] }
 0xc9f   : > { %3477 = vmatprep.subr.bf16.mxu1 %v3476_v62 }
 0xd68   : > { %v3335_v2 = vpop.f32.mrb[12].mxu1 }
 0xd69   : > { %v2258_v3 = vadd.f32 %v3335_v2, %v3023_v63  ;;  %v2252_v4 = vpop.f32.mrb[13].mxu1  ;;  %v2329_v2 = vld [vmem:[#allocation12 + $0xd0] sm:$0xff] }
 0xd6a   : > { %v2253_v5 = vadd.f32 %v3023_v63, %v2252_v4  ;;  %v3446_v63 = vpack.c.bf16 %v2331_v60, %v2327_v56 }
 0xd6b   : > { %v4618_v7 = vadd.f32 %v2258_v3, %v4411_v1  ;;  %v2312_v1 = vld [vmem:[#allocation12 + $0x48] sm:$0xff]  ;;  %v2333_v3 = vld [vmem:[#allocation12 + $0xf0] sm:$0xff] }
 0xd6c   : > { %v4621_v8 = vadd.f32 %v2253_v5, %v4408_v0  ;;  %v2316_v0 = vld [vmem:[#allocation12 + $0x68] sm:$0xff]  ;;  %v3478_v4 = vpack.c.bf16 %v2333_v3, %v2329_v2 }
 0xd6d   : > { %2267 = vadd.xlane.f32.xlu1 %v4618_v7  ;;  %v3436_v21 = vpack.c.bf16 %v2316_v0, %v2312_v1  ;;  %v2336_v5 = vld [vmem:[#allocation12 + $0x108] sm:$0xff]  ;;  %v2346_v0 = vld [vmem:[#allocation12 + $0x158] sm:$0xff] }
 0xd6e   : > { %2265 = vadd.xlane.f32.xlu0 %v4621_v8  ;;  %3479 = vmatpush1.bf16.msra.mxu1 %v3478_v4  ;;  %v3448_v10 = vpack.c.bf16 %v2340_v61, %v2336_v5  ;;  %v2344_v1 = vld [vmem:[#allocation12 + $0x148] sm:$0xff]  ;;  %v3484_v23 = vpack.c.bf16 %v2350_v20, %v2346_v0 }
 0xd6f   : > { %3437 = vmatprep.subr.bf16.mxu0 %v3436_v21  ;;  %3481 = vmatprep.subr.bf16.mxu1 %v3480_v13  ;;  %v3452_v19 = vpack.c.bf16 %v2348_v18, %v2344_v1  ;;  %v2343_v21 = vld [vmem:[#allocation12 + $0x140] sm:$0xff]  ;;  %v3024_v5 = vld [vmem:[%s4775_s23] ss:$0 sm:$0xff] }
 0xd70   : > { %3439 = vmatpush1.bf16.msra.mxu0 %v3438_v25  ;;  %v3454_v24 = vpack.c.bf16 %v2347_v22, %v2343_v21  ;;  %v2349_v25 = vld [vmem:[#allocation12 + $0x170] sm:$0xff]  ;;  %v2656_v1 = vld [vmem:[#allocation14 + $0x188] sm:$0xff]  ;;  %v2607_v18 = vld [vmem:[#allocation14] sm:$0xff] }
 0xd71   : > { %3441 = vmatprep.subr.bf16.mxu0 %v3440_v31  ;;  %v3486_v27 = vpack.c.bf16 %v2349_v25, %v2345_v59  ;;  %v2358_v31 = vld [vmem:[#allocation12 + $0x1b8] sm:$0xff]  ;;  %v2608_v0 = vld [vmem:[#allocation14 + $0x8] sm:$0xff] }
 0xd72   : > { %3483 = vmatpush1.bf16.msra.mxu1 %v3482_v17  ;;  %v3488_v34 = vpack.c.bf16 %v2358_v31, %v2354_v30  ;;  %v3498_v20 = vpack.c.bf16 %v2608_v0, %v2607_v18  ;;  %v2640_v21 = vld [vmem:[#allocation14 + $0x108] sm:$0xff]  ;;  %v2658_v25 = vld [vmem:[#allocation14 + $0x198] sm:$0xff]  ;;  %v2641_v31 = vld [vmem:[#allocation14 + $0x110] sm:$0xff] }
 0xd73   : > { %3485 = vmatprep.subr.bf16.mxu1 %v3484_v23  ;;  %v2625_v23 = vld [vmem:[#allocation14 + $0x90] sm:$0xff]  ;;  %v2666_v0 = vld [vmem:[#allocation14 + $0x1d8] sm:$0xff] }
 0xd74   : > { %3443 = vmatpush1.bf16.msra.mxu0 %v3442_v37  ;;  %v2360_v37 = vld [vmem:[#allocation12 + $0x1c8] sm:$0xff] }
 0xd75   : > { %3445 = vmatprep.subr.bf16.mxu0 %v3444_v53 }
 0xd76   : > { %3487 = vmatpush1.bf16.msra.mxu1 %v3486_v27  ;;  %v2610_v27 = vld [vmem:[#allocation14 + $0x18] sm:$0xff] }
 0xd77   : > { %3489 = vmatprep.subr.bf16.mxu1 %v3488_v34  ;;  %v3502_v30 = vpack.c.bf16 %v2610_v27, %v2609_v26  ;;  %v2668_v27 = vld [vmem:[#allocation14 + $0x1e8] sm:$0xff] }
 0xd78   : > { %3447 = vmatpush1.bf16.msra.mxu0 %v3446_v63 }
 0xd79   : > { %3449 = vmatprep.subr.bf16.mxu0 %v3448_v10 }
 0xd7c   : > { %3451 = vmatpush1.bf16.msra.mxu0 %v3450_v14 }
 0xd7d   : > { %3453 = vmatprep.subr.bf16.mxu0 %v3452_v19  ;;  %v3528_v19 = vpack.c.bf16 %v2656_v1, %v2655_v16  ;;  %v2633_v16 = vld [vmem:[#allocation14 + $0xd0] sm:$0xff] }
 0xd7e   : > { %v2665_v1 = vld [vmem:[#allocation14 + $0x1d0] sm:$0xff] }
 0xd80   : > { %3455 = vmatpush1.bf16.msra.mxu0 %v3454_v24  ;;  %v2657_v24 = vld [vmem:[#allocation14 + $0x190] sm:$0xff] }
 0xd81   : > { %3457 = vmatprep.subr.bf16.mxu0 %v3456_v33  ;;  %v3532_v29 = vpack.c.bf16 %v2658_v25, %v2657_v24  ;;  %v2642_v33 = vld [vmem:[#allocation14 + $0x118] sm:$0xff]  ;;  %v2635_v24 = vld [vmem:[#allocation14 + $0xe0] sm:$0xff] }
 0xd82   : > { %v3534_v34 = vpack.c.bf16 %v2642_v33, %v2641_v31  ;;  %v2667_v25 = vld [vmem:[#allocation14 + $0x1e0] sm:$0xff] }
 0xd83   : > { %v3552_v31 = vpack.c.bf16 %v2668_v27, %v2667_v25 }
 0xd84   : > { %3459 = vmatpush1.bf16.msra.mxu0 %v3458_v35  ;;  %v3504_v35 = vpack.c.bf16 %v2628_v57, %v2627_v49  ;;  %v2652_v49 = vld [vmem:[#allocation14 + $0x168] sm:$0xff] }
 0xdfa   : > { %v2268_v28 = vpop.xlane.xlu1 %2267 }
 0xdfb   : > { %v2266_v40 = vpop.xlane.xlu0 %2265  ;;  %v2270_v42 = vmul.f32 0.0078125, %v2268_v28  ;;  %v3490_v28 = vpack.c.bf16 %v2357_v36, %v2353_v58  ;;  %v2659_v58 = vld [vmem:[#allocation14 + $0x1a0] sm:$0xff]  ;;  %v2660_v36 = vld [vmem:[#allocation14 + $0x1a8] sm:$0xff] }
 0xdfc   : > { %v2269_v44 = vmul.f32 0.0078125, %v2266_v40  ;;  %v3460_v40 = vpack.c.bf16 %v2364_v38, %v2360_v37  ;;  %v2611_v37 = vld [vmem:[#allocation14 + $0x20] sm:$0xff]  ;;  %v2612_v38 = vld [vmem:[#allocation14 + $0x28] sm:$0xff] }
 0xdfd   : > { %v4629_v52 = vsub.f32 %v4618_v7, %v2270_v42  ;;  %v2362_v42 = vld [vmem:[#allocation12 + $0x1d8] sm:$0xff]  ;;  %3491 = vmatpush1.bf16.msra.mxu1 %v3490_v28  ;;  %v3536_v28 = vpack.c.bf16 %v2660_v36, %v2659_v58  ;;  %v2637_v58 = vld [vmem:[#allocation14 + $0xf0] sm:$0xff] }
 0xdfe   : > { %v4626_v45 = vsub.f32 %v4621_v8, %v2269_v44  ;;  %v2366_v44 = vld [vmem:[#allocation12 + $0x1f8] sm:$0xff]  ;;  %3461 = vmatprep.subr.bf16.mxu0 %v3460_v40  ;;  %v3506_v40 = vpack.c.bf16 %v2612_v38, %v2611_v37  ;;  %v2669_v36 = vld [vmem:[#allocation14 + $0x1f0] sm:$0xff] }
 0xdff   : > { %v2274_v47 = vmul.f32 %v4629_v52, %v4629_v52  ;;  %v2670_v38 = vld [vmem:[#allocation14 + $0x1f8] sm:$0xff] }
 0xe00   : > { %v2273_v46 = vmul.f32 %v4626_v45, %v4626_v45 }
 0xe02   : > { %2275 = vadd.xlane.f32.xlu0 %v2273_v46  ;;  %v2359_v46 = vld [vmem:[#allocation12 + $0x1c0] sm:$0xff] }
 0xe03   : > { %v3462_v53 = vpack.c.bf16 %v2363_v48, %v2359_v46  ;;  %v2630_v48 = vld [vmem:[#allocation14 + $0xb8] sm:$0xff] }
 0xe05   : > { %3463 = vmatpush1.bf16.msra.mxu0 %v3462_v53  ;;  %v2662_v53 = vld [vmem:[#allocation14 + $0x1b8] sm:$0xff] }
 0xe06   : > { %2277 = vadd.xlane.f32.xlu0 %v2274_v47  ;;  %v3492_v47 = vpack.c.bf16 %v2366_v44, %v2362_v42  ;;  %v2643_v42 = vld [vmem:[#allocation14 + $0x120] sm:$0xff]  ;;  %v2644_v44 = vld [vmem:[#allocation14 + $0x128] sm:$0xff] }
 0xe07   : > { %v3538_v46 = vpack.c.bf16 %v2644_v44, %v2643_v42  ;;  %v3556_v42 = vpack.c.bf16 %v2670_v38, %v2669_v36 }
 0xe08   : > { %3493 = vmatprep.subr.bf16.mxu1 %v3492_v47  ;;  %v2629_v47 = vld [vmem:[#allocation14 + $0xb0] sm:$0xff] }
 0xe09   : > { %3495 = vmatpush1.bf16.msra.mxu1 %v3494_v55  ;;  %v3508_v51 = vpack.c.bf16 %v2630_v48, %v2629_v47  ;;  %v2613_v55 = vld [vmem:[#allocation14 + $0x30] sm:$0xff]  ;;  %v2654_v47 = vld [vmem:[#allocation14 + $0x178] sm:$0xff] }
 0xe0a   : > { %3529 = vmatprep.subr.bf16.mxu1 %v3528_v19  ;;  %v2617_v19 = vld [vmem:[#allocation14 + $0x50] sm:$0xff] }
 0xe8f   : > { %v2276_v56 = vpop.xlane.xlu0 %2275 }
 0xe90   : > { %v2279_v60 = vmul.f32 0.0078125, %v2276_v56  ;;  %v2614_v56 = vld [vmem:[#allocation14 + $0x38] sm:$0xff] }
 0xe92   : > { %v2281_v62 = vadd.f32 1e-05, %v2279_v60  ;;  %v3540_v60 = vpack.c.bf16 %v2662_v53, %v2661_v50  ;;  %v2367_v50 = vld [vmem:[%s4777_s30] sm:$0xf]  ;;  %s3956_s30 = scalar_lea.vmem %s3955_s24, 512 }
 0xe93   : > { %v2278_v63 = vpop.xlane.xlu0 %2277  ;;  %v2372_v53 = vrot.slane %v2367_v50, %v639_v32  ;;  %p3958_p3 = scmp.lt.s32.totalorder %s3956_s30, %s3950_s15 }
 0xe94   : > { %3716 = vrsqrt.f32 %v2281_v62  ;;  %v2280_v2 = vmul.f32 0.0078125, %v2278_v63  ;;  %v3510_v62 = vpack.c.bf16 %v2614_v56, %v2613_v55  ;;  %v2645_v63 = vld [vmem:[#allocation14 + $0x130] sm:$0xff]  ;;  %v2380_v55 = vrot.slane %v2367_v50, %v647_v43 }
 0xe95   : > { %v2376_v56 = vrot.slane %v2367_v50, %v643_v41  ;;  %p3959_p2 = por %p3958_p3, %p3957_p1 }
 0xe96   : > { %v2282_v3 = vadd.f32 1e-05, %v2280_v2  ;;  %v2646_v2 = vld [vmem:[#allocation14 + $0x138] sm:$0xff] }
 0xe97   : > { %p3960_p8 = pnand %p3959_p2, %p3953_p13 }
 0xe98   : > { %3718 = vrsqrt.f32 %v2282_v3  ;;  %v3542_v3 = vpack.c.bf16 %v2646_v2, %v2645_v63 }
 0xe9e   : > { %v3717_v4 = vpop.eup %3716 }
 0xe9f   : > { %v2285_v61 = vmul.f32 %v3717_v4, %v4626_v45  ;;  %v2623_v45 = vld [vmem:[#allocation14 + $0x80] sm:$0xff] }
 0xea0   : > { %v3496_v17 = vpack.c.bf16 %v2624_v15, %v2623_v45  ;;  %v2631_v4 = vld [vmem:[#allocation14 + $0xc0] sm:$0xff]  ;;  %v2648_v45 = vld [vmem:[#allocation14 + $0x148] sm:$0xff] }
 0xea1   : > { %v2293_v10 = vmul.f32 %v3024_v5, %v2285_v61  ;;  %v2663_v61 = vld [vmem:[#allocation14 + $0x1c0] sm:$0xff] }
 0xea2   : > { %v3719_v54 = vpop.eup %3718  ;;  %3497 = vmatprep.subr.bf16.mxu0 %v3496_v17  ;;  %v2634_v17 = vld [vmem:[#allocation14 + $0xd8] sm:$0xff] }
 0xea3   : > { %v2301_v11 = vadd.f32 %v3025_v9, %v2293_v10  ;;  %v2286_v12 = vmul.f32 %v3719_v54, %v4629_v52  ;;  %v2639_v52 = vld [vmem:[#allocation14 + $0x100] sm:$0xff]  ;;  %v2664_v10 = vld [vmem:[#allocation14 + $0x1c8] sm:$0xff]  ;;  %v3516_v18 = vpack.c.bf16 %v2634_v17, %v2633_v16 }
 0xea4   : > { %v3530_v22 = vpack.c.bf16 %v2640_v21, %v2639_v52  ;;  %v2615_v54 = vld [vmem:[#allocation14 + $0x40] sm:$0xff]  ;;  %v3548_v52 = vpack.c.bf16 %v2666_v0, %v2665_v1 }
 0xea5   : > { %2454 = vmatmul.mubr.f32.vlgmr.msra.gmra.mrb[26].mxu0 %v2301_v11  ;;  %2531 = vmatmul.mubr.f32.vlgmr.msra.gmra.mrb[14].mxu1 %v2301_v11  ;;  %v2294_v13 = vmul.f32 %v3024_v5, %v2286_v12  ;;  %v2632_v5 = vld [vmem:[#allocation14 + $0xc8] sm:$0xff]  ;;  %v3544_v12 = vpack.c.bf16 %v2664_v10, %v2663_v61 }
 0xea6   : > { %2459 = vmatprep.mubr.f32.mxu0 %v4043_v6  ;;  %2536 = vmatprep.mubr.f32.mxu1 %v4043_v6  ;;  %v2626_v6 = vld [vmem:[#allocation14 + $0x98] sm:$0xff]  ;;  %v2616_v11 = vld [vmem:[#allocation14 + $0x48] sm:$0xff] }
 0xea7   : > { %v2302_v14 = vadd.f32 %v3025_v9, %v2294_v13  ;;  %3499 = vmatpush3.bf16.msra.mxu0 %v3498_v20  ;;  %3531 = vmatpush3.bf16.msra.mxu1 %v3530_v22  ;;  %v3500_v59 = vpack.c.bf16 %v2626_v6, %v2625_v23  ;;  %v3512_v9 = vpack.c.bf16 %v2632_v5, %v2631_v4  ;;  %v2618_v20 = vld [vmem:[#allocation14 + $0x58] sm:$0xff]  ;;  %v2649_v22 = vld [vmem:[#allocation14 + $0x150] sm:$0xff] }
 0xea8   : > { %3533 = vmatprep.subr.bf16.mxu1 %v3532_v29  ;;  %v3514_v13 = vpack.c.bf16 %v2616_v11, %v2615_v54  ;;  %v3518_v21 = vpack.c.bf16 %v2618_v20, %v2617_v19  ;;  %v2650_v23 = vld [vmem:[#allocation14 + $0x158] sm:$0xff]  ;;  %v2619_v29 = vld [vmem:[#allocation14 + $0x60] sm:$0xff] }
 0xea9   : > { %2460 = vmatmul.mubr.f32.gmra.mrb[28].mxu0 %v2302_v14  ;;  %2537 = vmatmul.mubr.f32.gmra.mrb[16].mxu1 %v2302_v14  ;;  %v2647_v14 = vld [vmem:[#allocation14 + $0x140] sm:$0xff]  ;;  %v3550_v6 = vpack.c.bf16 %v2650_v23, %v2649_v22 }
 0xeaa   : > { %3501 = vmatprep.subr.bf16.mxu0 %v3500_v59  ;;  %v3546_v15 = vpack.c.bf16 %v2648_v45, %v2647_v14  ;;  %v2636_v59 = vld [vmem:[#allocation14 + $0xe8] sm:$0xff] }
 0xeab   : > { %3503 = vmatpush3.bf16.msra.mxu0 %v3502_v30  ;;  %3535 = vmatpush3.bf16.msra.mxu1 %v3534_v34  ;;  %v3520_v26 = vpack.c.bf16 %v2636_v59, %v2635_v24  ;;  %v2620_v30 = vld [vmem:[#allocation14 + $0x68] sm:$0xff]  ;;  %v2651_v34 = vld [vmem:[#allocation14 + $0x160] sm:$0xff] }
 0xeac   : > { %3505 = vmatprep.subr.bf16.mxu0 %v3504_v35  ;;  %3537 = vmatprep.subr.bf16.mxu1 %v3536_v28  ;;  %v3522_v33 = vpack.c.bf16 %v2620_v30, %v2619_v29  ;;  %v3554_v57 = vpack.c.bf16 %v2652_v49, %v2651_v34  ;;  %v2638_v35 = vld [vmem:[#allocation14 + $0xf8] sm:$0xff]  ;;  %v2621_v28 = vld [vmem:[#allocation14 + $0x70] sm:$0xff] }
 0xead   : > { %v3524_v37 = vpack.c.bf16 %v2638_v35, %v2637_v58 }
 0xeaf   : > { %3507 = vmatpush3.bf16.msra.mxu0 %v3506_v40  ;;  %3539 = vmatpush3.bf16.msra.mxu1 %v3538_v46  ;;  %v2622_v40 = vld [vmem:[#allocation14 + $0x78] sm:$0xff]  ;;  %v2653_v46 = vld [vmem:[#allocation14 + $0x170] sm:$0xff] }
 0xeb0   : > { %3509 = vmatprep.subr.bf16.mxu0 %v3508_v51  ;;  %3541 = vmatprep.subr.bf16.mxu1 %v3540_v60  ;;  %v3526_v44 = vpack.c.bf16 %v2622_v40, %v2621_v28  ;;  %v3558_v48 = vpack.c.bf16 %v2654_v47, %v2653_v46  ;;  %v2383_v51 = vsub.s32 3, %v4434_v39 }
 0xeb2   : > { %v2384_v60 = vrot.slane %v2367_v50, %v2383_v51 }
 0xeb3   : > { %3511 = vmatpush3.bf16.msra.mxu0 %v3510_v62  ;;  %3543 = vmatpush3.bf16.msra.mxu1 %v3542_v3 }
 0xeb4   : > { %3513 = vmatprep.subr.bf16.mxu0 %v3512_v9  ;;  %3545 = vmatprep.subr.bf16.mxu1 %v3544_v12 }
 0xeb7   : > { %3515 = vmatpush3.bf16.msra.mxu0 %v3514_v13  ;;  %3547 = vmatpush3.bf16.msra.mxu1 %v3546_v15 }
 0xeb8   : > { %3517 = vmatprep.subr.bf16.mxu0 %v3516_v18  ;;  %3549 = vmatprep.subr.bf16.mxu1 %v3548_v52 }
 0xebb   : > { %3519 = vmatpush3.bf16.msra.mxu0 %v3518_v21  ;;  %3551 = vmatpush3.bf16.msra.mxu1 %v3550_v6 }
 0xebc   : > { %3521 = vmatprep.subr.bf16.mxu0 %v3520_v26  ;;  %3553 = vmatprep.subr.bf16.mxu1 %v3552_v31 }
 0xebf   : > { %3523 = vmatpush3.bf16.msra.mxu0 %v3522_v33  ;;  %3555 = vmatpush3.bf16.msra.mxu1 %v3554_v57 }
 0xec0   : > { %3525 = vmatprep.subr.bf16.mxu0 %v3524_v37  ;;  %3557 = vmatprep.subr.bf16.mxu1 %v3556_v42 }
 0xec3   : > { %3527 = vmatpush3.bf16.msra.mxu0 %v3526_v44  ;;  %3559 = vmatpush3.bf16.msra.mxu1 %v3558_v48 }
 0xf78   : > { %v2455_v62 = vpop.f32.mrb[26].mxu0  ;;  %v2532_v63 = vpop.f32.mrb[14].mxu1 }
 0xf79   : > { %v4655_v2 = vadd.f32 %v2455_v62, %v2372_v53  ;;  %v4657_v3 = vadd.f32 %v2532_v63, %v2380_v55  ;;  %v2457_v4 = vpop.f32.mrb[27].mxu0  ;;  %v2534_v5 = vpop.f32.mrb[15].mxu1 }
 0xf7a   : > { %v2458_v61 = vadd.f32 %v2457_v4, %v2376_v56  ;;  %v4659_v9 = vadd.f32 %v2534_v5, %v2384_v60 }
 0xf7b   : > { %v3026_v32 = vmul.f32 -1.702, %v4655_v2  ;;  %v3028_v10 = vmul.f32 -1.702, %v4657_v3 }
 0xf7c   : > { %v3027_v43 = vmul.f32 -1.702, %v2458_v61  ;;  %v3029_v39 = vmul.f32 -1.702, %v4659_v9  ;;  %v2461_v41 = vpop.f32.mrb[28].mxu0  ;;  %v2538_v54 = vpop.f32.mrb[16].mxu1 }
 0xf7d   : > { %v2559_v11 = vmul.f32 1.442695, %v3026_v32  ;;  %v2563_v12 = vmul.f32 1.442695, %v3028_v10  ;;  %v4664_v13 = vadd.f32 %v2461_v41, %v2372_v53  ;;  %v4666_v14 = vadd.f32 %v2538_v54, %v2380_v55  ;;  %v2463_v45 = vpop.f32.mrb[29].mxu0  ;;  %v2540_v15 = vpop.f32.mrb[17].mxu1 }
 0xf7e   : > { %v2561_v16 = vmul.f32 1.442695, %v3027_v43  ;;  %v2565_v17 = vmul.f32 1.442695, %v3029_v39  ;;  %v2464_v1 = vadd.f32 %v2463_v45, %v2376_v56  ;;  %v2541_v18 = vadd.f32 %v2540_v15, %v2384_v60 }
 0xf7f   : > { %3720 = vpow2.f32 %v2559_v11  ;;  %v3030_v0 = vmul.f32 -1.702, %v4664_v13  ;;  %v3032_v19 = vmul.f32 -1.702, %v4666_v14 }
 0xf80   : > { %3722 = vpow2.f32 %v2563_v12  ;;  %v3031_v20 = vmul.f32 -1.702, %v2464_v1  ;;  %v3033_v52 = vmul.f32 -1.702, %v2541_v18 }
 0xf81   : > { %3724 = vpow2.f32 %v2561_v16  ;;  %v2567_v21 = vmul.f32 1.442695, %v3030_v0  ;;  %v2571_v22 = vmul.f32 1.442695, %v3032_v19 }
 0xf82   : > { %3726 = vpow2.f32 %v2565_v17  ;;  %v2569_v23 = vmul.f32 1.442695, %v3031_v20  ;;  %v2573_v6 = vmul.f32 1.442695, %v3033_v52 }
 0xf83   : > { %3728 = vpow2.f32 %v2567_v21 }
 0xf84   : > { %3730 = vpow2.f32 %v2571_v22 }
 0xf85   : > { %3732 = vpow2.f32 %v2569_v23 }
 0xf86   : > { %3734 = vpow2.f32 %v2573_v6 }
 0xf89   : > { %v3721_v24 = vpop.eup %3720 }
 0xf8a   : > { %v3723_v59 = vpop.eup %3722  ;;  %v2575_v25 = vadd.f32 1.0, %v3721_v24 }
 0xf8b   : > { %v3725_v26 = vpop.eup %3724  ;;  %v2577_v27 = vadd.f32 1.0, %v3723_v59 }
 0xf8c   : > { %v3727_v29 = vpop.eup %3726  ;;  %3736 = vrcp.f32 %v2575_v25  ;;  %v2576_v30 = vadd.f32 1.0, %v3725_v26 }
 0xf8d   : > { %v3729_v31 = vpop.eup %3728  ;;  %3738 = vrcp.f32 %v2577_v27  ;;  %v2578_v33 = vadd.f32 1.0, %v3727_v29 }
 0xf8e   : > { %v3731_v34 = vpop.eup %3730  ;;  %3740 = vrcp.f32 %v2576_v30  ;;  %v2579_v49 = vadd.f32 1.0, %v3729_v31 }
 0xf8f   : > { %v3733_v57 = vpop.eup %3732  ;;  %3742 = vrcp.f32 %v2578_v33  ;;  %v2581_v58 = vadd.f32 1.0, %v3731_v34 }
 0xf90   : > { %v3735_v35 = vpop.eup %3734  ;;  %3744 = vrcp.f32 %v2579_v49  ;;  %v2580_v36 = vadd.f32 1.0, %v3733_v57 }
 0xf91   : > { %3746 = vrcp.f32 %v2581_v58  ;;  %v2582_v37 = vadd.f32 1.0, %v3735_v35 }
 0xf92   : > { %3748 = vrcp.f32 %v2580_v36 }
 0xf93   : > { %3750 = vrcp.f32 %v2582_v37 }
 0xf96   : > { %v3737_v38 = vpop.eup %3736 }
 0xf97   : > { %v3739_v28 = vpop.eup %3738  ;;  %v2599_v47 = vmul.f32 %v3737_v38, %v4655_v2 }
 0xf98   : > { %v3741_v40 = vpop.eup %3740  ;;  %v2601_v51 = vmul.f32 %v3739_v28, %v4657_v3  ;;  %v3034_v3 = vld [vmem:[%s4778_s18] ss:$0 sm:$0xff] }
 0xf99   : > { %v3743_v42 = vpop.eup %3742  ;;  %v2600_v44 = vmul.f32 %v3741_v40, %v2458_v61 }
 0xf9a   : > { %v3745_v46 = vpop.eup %3744  ;;  %v2602_v48 = vmul.f32 %v3743_v42, %v4659_v9 }
 0xf9b   : > { %v3747_v50 = vpop.eup %3746  ;;  %2742 = vmatprep.mubr.f32.mxu0 %v2600_v44  ;;  %v2603_v60 = vmul.f32 %v3745_v46, %v4664_v13 }
 0xf9c   : > { %v3749_v53 = vpop.eup %3748  ;;  %2817 = vmatprep.mubr.f32.mxu1 %v2602_v48  ;;  %2743 = vmatmul.mubr.f32.vlgmr.msra.gmra.mrb[30].mxu0 %v2599_v47  ;;  %v2605_v63 = vmul.f32 %v3747_v50, %v4666_v14 }
 0xf9d   : > { %v3751_v55 = vpop.eup %3750  ;;  %v2604_v56 = vmul.f32 %v3749_v53, %v2464_v1  ;;  %2818 = vmatmul.mubr.f32.vlgmr.msra.gmra.mrb[18].mxu1 %v2601_v51 }
 0xf9e   : > { %v2606_v62 = vmul.f32 %v3751_v55, %v2541_v18 }
 0xf9f   : > { %2747 = vmatprep.mubr.f32.mxu0 %v2604_v56 }
 0xfa0   : > { %2822 = vmatprep.mubr.f32.mxu1 %v2606_v62  ;;  %2748 = vmatmul.mubr.f32.gmra.mrb[32].mxu0 %v2603_v60 }
 0xfa1   : > { %2823 = vmatmul.mubr.f32.gmra.mrb[20].mxu1 %v2605_v63 }
0x106f   : > { %v3142_v2 = vpop.f32.mrb[30].mxu0 }
0x1070   : > { %v3180_v4 = vpop.f32.mrb[18].mxu1  ;;  %v3143_v5 = vpop.f32.mrb[31].mxu0 }
0x1071   : > { %v3144_v61 = vadd.f32 %v3143_v5, %v3142_v2  ;;  %v3181_v9 = vpop.f32.mrb[19].mxu1 }
0x1072   : > { %v3182_v32 = vadd.f32 %v3181_v9, %v3180_v4 }
0x1073   : > { %v2745_v10 = vadd.f32 %v3144_v61, %v3034_v3  ;;  %v3145_v43 = vpop.f32.mrb[32].mxu0 }
0x1074   : > { %v3183_v39 = vpop.f32.mrb[20].mxu1  ;;  %v3146_v41 = vpop.f32.mrb[33].mxu0 }
0x1075   : > { %v2820_v54 = vadd.f32 %v3182_v32, %v2745_v10  ;;  %v3147_v11 = vadd.f32 %v3146_v41, %v3145_v43  ;;  %v3184_v12 = vpop.f32.mrb[21].mxu1 }
0x1076   : > { %v3185_v13 = vadd.f32 %v3184_v12, %v3183_v39 }
0x1077   : > { %v2828_v14 = vadd.f32 %v2820_v54, %v4621_v8  ;;  %v2750_v45 = vadd.f32 %v3147_v11, %v3034_v3 }
0x1079   : > { %2830 = vst [vmem:[%s541_s20] sm:$0xff] %v2828_v14  ;;  %v2825_v15 = vadd.f32 %v3185_v13, %v2750_v45 }
0x107b   : > { %v2829_v16 = vadd.f32 %v2825_v15, %v4618_v7 }
0x107d   : > { %2831 = vst [vmem:[%s541_s20 + $0x8] sm:$0xff] %v2829_v16 }
0x107e   : > { %3963 = shalt.err (!%p3960_p8)
}
0x107f   : > { %s3964_s3 = scalar_lea.hbm %s4687_s17, 256  ;;  %s3968_s20 = scalar_lea.hbm %s4779_s22, 512 }
0x1080   : > { %p3965_p10 = scmp.ne.s32.totalorder %s4687_s17, %s3964_s3  ;;  %p3969_p0 = scmp.lt.u32.totalorder %s4687_s17, %s4779_s22 }
0x1081   : > { %p3970_p5 = scmp.lt.u32.totalorder %s3968_s20, %s3964_s3  ;;  %p3972_p6 = scmp.lt.u32.totalorder %s3964_s3, %s4687_s17 }
0x1082   : > { %p3966_p11 = pnand %p3965_p10, %p4780_p9 }
0x1083   : > { %p3971_p7 = por %p3970_p5, %p3969_p0 }
0x1084   : > { %p3967_p12 = pneg %p3966_p11 }
0x1085   : > { %p3973_p4 = por %p3972_p6, %p3971_p7 }
0x1087   : > { %p3974_p13 = pnand %p3973_p4, %p3967_p12 }
0x1089   : > { %3977 = shalt.err (!%p3974_p13)
}
0x108a   : > { %s4049_s19 = smov 128   ;;  %s4050_s15 = smov 8  }
0x108b   : > { %3586 = dma.vmem_to_hbm [thread:$0]  (%p4780_p9), %s4682_s7, 256, %s4687_s17, %s2833_s1, %s4049_s19, %s4049_s19, %s4050_s15  }
0x108c PF: > { %s2861_s14 = sand.u32 1, %s4016_s25   ;;  %p4781_p1 = scmp.ne.s32.totalorder %s4766_s12, 0 }
0x108d   : > { %p4782_p3 = scmp.ge.s32.totalorder %s4028_s28, 2  ;;  %s2862_s24 = scalar_lea.sflag [#allocation5], %s2861_s14 }
0x108f   : > { %p3612_p2 = pnand %p4782_p3, %p4781_p1 }
0x1091   : > { %4011 = dma.done.wait (!%p3612_p2), %s2862_s24, 256  }
0x1092   : > { %4013 = vsyncadd (!%p3612_p2), %s2862_s24, 4294967040  ;;  %p29_p8 = scmp.ge.s32.totalorder %s4304_s16, 4   ;;  %s4783_s25 = smov %s4020_s26 }
0x1093   : > { %s4784_s26 = smov %s4024_s27  ;;  %s4785_s27 = smov %s4315_s10 }
0x1094   : > { %s4786_s28 = smov %s4304_s16  ;;  %31 = sbr.rel (!%p29_p8) target bundleno = 16 (0x10), region = 141 }
0x109b   :  { %2867 = vsyncpa [#allocation4], 1 }
0x109c   :  { %2869 = vsyncpa [#allocation4 + $0x1], 1 }
0x109d   :  { %2870 = vsyncpa [#allocation7], 1 }
0x109e   :  { %2871 = vsyncpa [#allocation10], 1 }
0x109f   :  { %2872 = vsyncpa [#allocation13], 1 }
0x10a0   :  { %2873 = vsyncpa [#allocation5], 1 }
0x10a1   :  { %2875 = vsyncpa [#allocation5 + $0x1], 1 }

// kernel: tpu_custom_call.1
= control target key start
LH: loop header
LB: loop body
LE: loop exit
PB: predicated region body
PF: predicated region fallthrough
CT: control target
= control target key end

     0   :  { %s4732_s0 = inlined_call_operand.hbm [shape: f32[4,8,128], index: 0, kind: input, shape index: {}]   ;;  %s4733_s1 = inlined_call_operand.hbm [shape: f32[1,128], index: 1, kind: input, shape index: {}]   ;;  %s4734_s2 = inlined_call_operand.hbm [shape: f32[1,128], index: 2, kind: input, shape index: {}]   ;;  %s4735_s3 = inlined_call_operand.hbm [shape: f32[128,384], index: 3, kind: input, shape index: {}]   ;;  %s4736_s4 = inlined_call_operand.vmem [shape: f32[1,384], index: 4, kind: input, shape index: {}]   ;;  %s4737_s5 = inlined_call_operand.hbm [shape: f32[128,128], index: 5, kind: input, shape index: {}]   ;;  %s4738_s6 = inlined_call_operand.vmem [shape: f32[1,128], index: 6, kind: input, shape index: {}]   ;;  %s4739_s7 = inlined_call_operand.vmem [shape: f32[1,128], index: 7, kind: input, shape index: {}]   ;;  %s4740_s8 = inlined_call_operand.vmem [shape: f32[1,128], index: 8, kind: input, shape index: {}]   ;;  %s4741_s9 = inlined_call_operand.hbm [shape: f32[128,512], index: 9, kind: input, shape index: {}]   ;;  %s4742_s10 = inlined_call_operand.vmem [shape: f32[1,512], index: 10, kind: input, shape index: {}]   ;;  %s4743_s11 = inlined_call_operand.hbm [shape: f32[512,128], index: 11, kind: input, shape index: {}]   ;;  %s4744_s12 = inlined_call_operand.vmem [shape: f32[1,128], index: 12, kind: input, shape index: {}]   ;;  %s4745_s13 = inlined_call_operand.hbm [shape: f32[4,8,128], index: 13, kind: output, shape index: {}]  }
   0x1   :  { %4750 = sst [smem:[#allocation21_spill]] %s4733_s1 }
   0x2   :  { %4751 = sst [smem:[#allocation22_spill]] %s4735_s3 }
   0x3   :  { %4752 = sst [smem:[#allocation23_spill]] %s4739_s7 }
   0x4   :  { %4753 = sst [smem:[#allocation24_spill]] %s4740_s8 }
   0x5   :  { %4754 = sst [smem:[#allocation25_spill]] %s4742_s10 }
   0x6   :  { %4755 = sst [smem:[#allocation26_spill]] %s4744_s12 }
   0x7   :  { %4756 = sst [smem:[#allocation27_spill]] %s4745_s13 }
   0x8   :  { %18 = vsyncpa [#allocation4], 0 }
   0x9   :  { %20 = vsyncpa [#allocation4 + $0x1], 0 }
   0xa   :  { %21 = vsyncpa [#allocation7], 0 }
   0xb   :  { %22 = vsyncpa [#allocation10], 0 }
   0xc   :  { %23 = vsyncpa [#allocation13], 0 }
   0xd   :  { %24 = vsyncpa [#allocation5], 0 }
   0xe   :  { %26 = vsyncpa [#allocation5 + $0x1], 0  ;;  %s4121_s25 = smov 0   ;;  %s4123_s26 = smov 0  }
   0xf   :  { %s4125_s27 = smov 0   ;;  %s4127_s28 = smov 0  }
  0x10 LB: > { %s4030_s29 = smov [#allocation6]   ;;  %s4142_s14 = sadd.s32 4294967295, %s4028_s28   ;;  %s4028_s28 = sphi %s4127_s28, %s4786_s28   ;;  %s4024_s27 = sphi %s4125_s27, %s4785_s27   ;;  %s4020_s26 = sphi %s4123_s26, %s4784_s26   ;;  %s4016_s25 = sphi %s4121_s25, %s4783_s25  }
  0x11   : > { %s354_s30 = sshll.u32 %s4030_s29, 4  ;;  %p2977_p0 = scmp.ge.s32.totalorder %s4028_s28, 1  ;;  %s4147_s30 = int_to_ptr.vmem [resolvable:$true] %s354_s30 }
  0x12   : > { %p4747_p1 = scmp.eq.s32.totalorder %s4142_s14, 0  ;;  %p341_p2 = scmp.lt.s32.totalorder %s4028_s28, 3 }
  0x13   : > { %s4031_s16 = smov [#allocation9]   ;;  %s4032_s19 = smov [#allocation12]  }
  0x14   : > { %p4149_p3 = pnand %p2977_p0, %p341_p2  ;;  %s375_s17 = sshll.u32 %s4031_s16, 4  ;;  %s4156_s17 = int_to_ptr.vmem [resolvable:$true] %s375_s17 }
  0x15   : > { %s413_s20 = sshll.u32 %s4032_s19, 4  ;;  %s4759_s1 = sld [smem:[#allocation21_spill]]  ;;  %s4164_s20 = int_to_ptr.vmem [resolvable:$true] %s413_s20 }
  0x16   : > { %s4757_s15 = scalar_select %p4149_p3, 1, 0 }
  0x17   : > { %p3588_p5 = pneg %p4149_p3 }
  0x19   : > { %p4160_p6 = pnand %p3588_p5, %p4747_p1 }
  0x1b   : > { %s3752_s23 = scalar_lea.hbm %s4759_s1, 16  ;;  %p4174_p8 = pneg %p4160_p6 }
  0x1c   : > { %p3753_p7 = scmp.ne.s32.totalorder %s4759_s1, %s3752_s23  ;;  %p3759_p11 = scmp.lt.u32.totalorder %s3752_s23, %s4759_s1 }
  0x1e   : > { %p3755_p9 = pnand %p4174_p8, %p3753_p7 }
  0x20   : > { %p3756_p10 = pneg %p3755_p9 }
  0x22   : > { %p3761_p12 = pnand %p3759_p11, %p3756_p10 }
  0x24   : > { %3764 = shalt.err (!%p3761_p12)
}
  0x25   : > { %s3765_s21 = scalar_lea.vmem %s4147_s30, 16  ;;  %s3772_s22 = scalar_lea.vmem %s4147_s30, 32 }
  0x26   : > { %p3766_p13 = scmp.ne.s32.totalorder %s4147_s30, %s3765_s21  ;;  %p3773_p5 = scmp.lt.s32.totalorder %s4147_s30, %s4147_s30 }
  0x27   : > { %p3774_p7 = scmp.lt.s32.totalorder %s3772_s22, %s3765_s21 }
  0x28   : > { %p3768_p0 = pnand %p3766_p13, %p4174_p8 }
  0x29   : > { %p3775_p9 = por %p3774_p7, %p3773_p5 }
  0x2a   : > { %p3769_p2 = pneg %p3768_p0 }
  0x2c   : > { %p3776_p4 = pnand %p3775_p9, %p3769_p2 }
  0x2e   : > { %3779 = shalt.err (!%p3776_p4)
}
  0x2f   : > { %3591 = dma.hbm_to_vmem [thread:$0]  (!%p4160_p6), %s4759_s1, 16, %s4147_s30, [#allocation7]  }
  0x30   : > { %s4761_s3 = sld [smem:[#allocation22_spill]] }
  0x36   : > { %s3780_s19 = scalar_lea.hbm %s4761_s3, 6144 }
  0x37   : > { %p3781_p10 = scmp.ne.s32.totalorder %s4761_s3, %s3780_s19  ;;  %p3787_p4 = scmp.lt.u32.totalorder %s3780_s19, %s4761_s3 }
  0x39   : > { %p3783_p11 = pnand %p3781_p10, %p4174_p8 }
  0x3b   : > { %p3784_p12 = pneg %p3783_p11 }
  0x3d   : > { %p3789_p13 = pnand %p3787_p4, %p3784_p12 }
  0x3f   : > { %3792 = shalt.err (!%p3789_p13)
}
  0x40   : > { %s3793_s30 = scalar_lea.vmem %s4156_s17, 6144  ;;  %p3801_p7 = scmp.lt.s32.totalorder %s4156_s17, %s4156_s17 }
  0x41   : > { %p3794_p0 = scmp.ne.s32.totalorder %s4156_s17, %s3793_s30  ;;  %p3802_p9 = scmp.lt.s32.totalorder %s3793_s30, %s3793_s30 }
  0x43   : > { %p3796_p2 = pnand %p3794_p0, %p4174_p8  ;;  %p3803_p10 = por %p3802_p9, %p3801_p7 }
  0x45   : > { %p3797_p5 = pneg %p3796_p2 }
  0x47   : > { %p3804_p11 = pnand %p3803_p10, %p3797_p5 }
  0x49   : > { %3807 = shalt.err (!%p3804_p11)
}
  0x4a   : > { %s4033_s10 = smov 384   ;;  %s4034_s12 = smov 24  }
  0x4b   : > { %3597 = dma.hbm_to_vmem [thread:$0]  (!%p4160_p6), %s4761_s3, 6144, %s4156_s17, [#allocation10], %s4033_s10, %s4033_s10, %s4034_s12  }
  0x4c   : > { %s3808_s19 = scalar_lea.hbm %s4741_s9, 8192 }
  0x4d   : > { %p3809_p12 = scmp.ne.s32.totalorder %s4741_s9, %s3808_s19  ;;  %p3815_p0 = scmp.lt.u32.totalorder %s3808_s19, %s4741_s9 }
  0x4f   : > { %p3811_p4 = pnand %p3809_p12, %p4174_p8 }
  0x51   : > { %p3812_p13 = pneg %p3811_p4 }
  0x53   : > { %p3817_p2 = pnand %p3815_p0, %p3812_p13 }
  0x55   : > { %3820 = shalt.err (!%p3817_p2)
}
  0x56   : > { %s3821_s17 = scalar_lea.vmem %s4164_s20, 8192  ;;  %p3829_p10 = scmp.lt.s32.totalorder %s4164_s20, %s4164_s20 }
  0x57   : > { %p3822_p5 = scmp.ne.s32.totalorder %s4164_s20, %s3821_s17  ;;  %p3830_p11 = scmp.lt.s32.totalorder %s3821_s17, %s3821_s17 }
  0x59   : > { %p3824_p7 = pnand %p3822_p5, %p4174_p8  ;;  %p3831_p12 = por %p3830_p11, %p3829_p10 }
  0x5b   : > { %p3825_p9 = pneg %p3824_p7 }
  0x5d   : > { %p3832_p4 = pnand %p3831_p12, %p3825_p9 }
  0x5f   : > { %3835 = shalt.err (!%p3832_p4)
}
  0x60   : > { %s4035_s10 = smov 512   ;;  %s4036_s1 = smov 32  }
  0x61   : > { %3603 = dma.hbm_to_vmem [thread:$0]  (!%p4160_p6), %s4741_s9, 8192, %s4164_s20, [#allocation13], %s4035_s10, %s4035_s10, %s4036_s1  }
  0x62   : > { %s4037_s23 = smov [#allocation8]   ;;  %s4038_s29 = smov [#allocation11]  }
  0x63   : > { %s365_s24 = sshll.u32 %s4037_s23, 4  ;;  %s391_s19 = sshll.u32 %s4038_s29, 4  ;;  %s366_s24 = int_to_ptr.vmem [resolvable:$true] %s365_s24  ;;  %s392_s19 = int_to_ptr.vmem [resolvable:$true] %s391_s19 }
  0x64   : > { %s3836_s30 = scalar_lea.hbm %s4734_s2, 16 }
  0x65   : > { %p3837_p13 = scmp.ne.s32.totalorder %s4734_s2, %s3836_s30  ;;  %p3843_p5 = scmp.lt.u32.totalorder %s3836_s30, %s4734_s2 }
  0x67   : > { %p3839_p0 = pnand %p3837_p13, %p4174_p8 }
  0x69   : > { %p3840_p2 = pneg %p3839_p0 }
  0x6b   : > { %p3845_p7 = pnand %p3843_p5, %p3840_p2 }
  0x6d   : > { %3848 = shalt.err (!%p3845_p7)
}
  0x6e   : > { %s3849_s20 = scalar_lea.vmem %s366_s24, 16  ;;  %s3856_s10 = scalar_lea.vmem %s366_s24, 32 }
  0x6f   : > { %p3850_p9 = scmp.ne.s32.totalorder %s366_s24, %s3849_s20  ;;  %p3857_p12 = scmp.lt.s32.totalorder %s366_s24, %s366_s24 }
  0x70   : > { %p3858_p4 = scmp.lt.s32.totalorder %s3856_s10, %s3849_s20 }
  0x71   : > { %p3852_p10 = pnand %p3850_p9, %p4174_p8 }
  0x72   : > { %p3859_p1 = por %p3858_p4, %p3857_p12 }
  0x73   : > { %p3853_p11 = pneg %p3852_p10 }
  0x75   : > { %p3860_p3 = pnand %p3859_p1, %p3853_p11 }
  0x77   : > { %3863 = shalt.err (!%p3860_p3)
}
  0x78   : > { %3594 = dma.hbm_to_vmem [thread:$0]  (!%p4160_p6), %s4734_s2, 16, %s366_s24, [#allocation7]  }
  0x79   : > { %s3864_s12 = scalar_lea.hbm %s4737_s5, 2048 }
  0x7a   : > { %p3865_p13 = scmp.ne.s32.totalorder %s4737_s5, %s3864_s12  ;;  %p3871_p3 = scmp.lt.u32.totalorder %s3864_s12, %s4737_s5 }
  0x7c   : > { %p3867_p0 = pnand %p3865_p13, %p4174_p8 }
  0x7e   : > { %p3868_p1 = pneg %p3867_p0 }
  0x80   : > { %p3873_p2 = pnand %p3871_p3, %p3868_p1 }
  0x82   : > { %3876 = shalt.err (!%p3873_p2)
}
  0x83   : > { %s3877_s22 = scalar_lea.vmem %s392_s19, 2048  ;;  %p3885_p10 = scmp.lt.s32.totalorder %s392_s19, %s392_s19 }
  0x84   : > { %p3878_p5 = scmp.ne.s32.totalorder %s392_s19, %s3877_s22  ;;  %p3886_p11 = scmp.lt.s32.totalorder %s3877_s22, %s3877_s22 }
  0x86   : > { %p3880_p7 = pnand %p3878_p5, %p4174_p8  ;;  %p3887_p12 = por %p3886_p11, %p3885_p10 }
  0x88   : > { %p3881_p9 = pneg %p3880_p7 }
  0x8a   : > { %p3888_p4 = pnand %p3887_p12, %p3881_p9 }
  0x8c   : > { %3891 = shalt.err (!%p3888_p4)
}
  0x8d   : > { %s4039_s24 = smov 128   ;;  %s4040_s30 = smov 8  }
  0x8e   : > { %3600 = dma.hbm_to_vmem [thread:$0]  (!%p4160_p6), %s4737_s5, 2048, %s392_s19, [#allocation10], %s4039_s24, %s4039_s24, %s4040_s30  }
  0x8f   : > { %s4041_s10 = smov [#allocation14]   ;;  %s3892_s8 = scalar_lea.hbm %s4743_s11, 8192 }
  0x90   : > { %s429_s3 = sshll.u32 %s4041_s10, 4  ;;  %p3893_p13 = scmp.ne.s32.totalorder %s4743_s11, %s3892_s8  ;;  %s430_s3 = int_to_ptr.vmem [resolvable:$true] %s429_s3 }
  0x91   : > { %p3899_p3 = scmp.lt.u32.totalorder %s3892_s8, %s4743_s11 }
  0x92   : > { %p3895_p0 = pnand %p3893_p13, %p4174_p8 }
  0x94   : > { %p3896_p1 = pneg %p3895_p0 }
  0x96   : > { %p3901_p2 = pnand %p3899_p3, %p3896_p1 }
  0x98   : > { %3904 = shalt.err (!%p3901_p2)
}
  0x99   : > { %s3905_s19 = scalar_lea.vmem %s430_s3, 8192  ;;  %p3913_p10 = scmp.lt.s32.totalorder %s430_s3, %s430_s3 }
  0x9a   : > { %p3906_p5 = scmp.ne.s32.totalorder %s430_s3, %s3905_s19  ;;  %p3914_p11 = scmp.lt.s32.totalorder %s3905_s19, %s3905_s19 }
  0x9c   : > { %p3908_p7 = pnand %p3906_p5, %p4174_p8  ;;  %p3915_p12 = por %p3914_p11, %p3913_p10 }
  0x9e   : > { %p3909_p9 = pneg %p3908_p7 }
  0xa0   : > { %p3916_p4 = pnand %p3915_p12, %p3909_p9 }
  0xa2   : > { %3919 = shalt.err (!%p3916_p4)
}
  0xa3   : > { %3606 = dma.hbm_to_vmem [thread:$0]  (!%p4160_p6), %s4743_s11, 8192, %s430_s3, [#allocation13], %s4039_s24, %s4039_s24, %s4040_s30  }
  0xa4   : > { %s2976_s18 = sadd.s32 4294967294, %s4028_s28   ;;  %s4304_s16 = sadd.s32 1, %s4028_s28  }
  0xa5   : > { %s36_s17 = ssub.s32 %s4028_s28, %s4304_s16  ;;  %s39_s20 = sadd.s32 1, %s4024_s27 }
  0xa6   : > { %p37_p8 = scmp.eq.s32.totalorder %s36_s17, 0  ;;  %p46_p13 = scmp.ne.s32.totalorder %s4024_s27, %s4020_s26 }
  0xa7   : > { %p47_p0 = scmp.eq.s32.totalorder %s4028_s28, 0  ;;  %p52_p1 = scmp.ne.s32.totalorder %s4020_s26, %s4016_s25 }
  0xa8   : > { %s4315_s10 = scalar_select %p37_p8, %s4024_s27, %s39_s20  }
  0xa9   : > { %p4317_p3 = por %p47_p0, %p46_p13  ;;  %p4763_p2 = scmp.eq.s32.totalorder %s4142_s14, 0 }
  0xaa   : > { %p328_p5 = scmp.eq.s32.totalorder %s4142_s14, 1  ;;  %p334_p7 = scmp.eq.s32.totalorder %s2976_s18, 1 }
  0xab   : > { %p4323_p6 = por %p4763_p2, %p52_p1  ;;  %p3621_p9 = scmp.lt.s32.totalorder %s4028_s28, 2 }
  0xac   : > { %s446_s7 = sand.u32 1, %s4024_s27   ;;  %p4330_p10 = por %p328_p5, %p46_p13 }
  0xad   : > { %p4334_p11 = por %p334_p7, %p52_p1  ;;  %s2985_s13 = sshll.u32 %s446_s7, 4 }
  0xae   : > { %s4765_s8 = scalar_select %p4330_p10, 1, 0 }
  0xaf   : > { %s4766_s12 = scalar_select %p4334_p11, 1, 0 }
  0xb0   : > { %s3040_s23 = sshll.u32 %s4028_s28, 8  ;;  %s450_s22 = scalar_lea.vmem [#allocation3], %s2985_s13 }
  0xb1   : > { %s4342_s21 = scalar_lea.hbm %s4732_s0, %s3040_s23  ;;  %s457_s18 = sshll.u32 %s450_s22, 4  ;;  %s4344_s18 = int_to_ptr.vmem [resolvable:$true] %s457_s18 }
  0xb2   : > { %p4348_p12 = pnand %p3621_p9, %p4317_p3  ;;  %s4352_s20 = scalar_lea.sflag [#allocation4], %s446_s7 }
  0xb3   : > { %s3920_s29 = scalar_lea.hbm %s4342_s21, 256  ;;  %s3925_s1 = scalar_lea.hbm %s4732_s0, 512 }
  0xb4   : > { %p3921_p4 = scmp.ne.s32.totalorder %s4342_s21, %s3920_s29  ;;  %p3922_p8 = pneg %p4348_p12 }
  0xb5   : > { %p3926_p1 = scmp.lt.u32.totalorder %s4342_s21, %s4732_s0  ;;  %p3927_p3 = scmp.lt.u32.totalorder %s3925_s1, %s3920_s29 }
  0xb6   : > { %p3923_p13 = pnand %p3922_p8, %p3921_p4  ;;  %p3929_p5 = scmp.lt.u32.totalorder %s3920_s29, %s4342_s21 }
  0xb7   : > { %p3928_p2 = por %p3927_p3, %p3926_p1 }
  0xb8   : > { %p3924_p0 = pneg %p3923_p13 }
  0xb9   : > { %p3930_p7 = por %p3929_p5, %p3928_p2 }
  0xbb   : > { %p3931_p9 = pnand %p3930_p7, %p3924_p0 }
  0xbd   : > { %3934 = shalt.err (!%p3931_p9)
}
  0xbe   : > { %s3935_s7 = scalar_lea.vmem %s4344_s18, 256  ;;  %s4042_s13 = smov [#allocation3]  }
  0xbf   : > { %p3936_p4 = scmp.ne.s32.totalorder %s4344_s18, %s3935_s7  ;;  %s3940_s23 = sshll.u32 %s4042_s13, 4  ;;  %s3941_s23 = int_to_ptr.vmem [resolvable:$false] %s3940_s23 }
  0xc0   : > { %s3942_s19 = scalar_lea.vmem %s3941_s23, 512  ;;  %p3943_p10 = scmp.lt.s32.totalorder %s4344_s18, %s3941_s23 }
  0xc1   : > { %p3938_p13 = pnand %p3936_p4, %p3922_p8  ;;  %p3944_p1 = scmp.lt.s32.totalorder %s3942_s19, %s3935_s7 }
  0xc3   : > { %p3939_p11 = pneg %p3938_p13  ;;  %p3945_p3 = por %p3944_p1, %p3943_p10 }
  0xc5   : > { %p3946_p2 = pnand %p3945_p3, %p3939_p11 }
  0xc7   : > { %3949 = shalt.err (!%p3946_p2)
}
  0xc8   : > { %3610 = dma.hbm_to_vmem [thread:$0]  (!%p4348_p12), %s4342_s21, 256, %s4344_s18, %s4352_s20, %s4039_s24, %s4039_s24, %s4040_s30  }
  0xc9   : > { %p4768_p8 = scmp.ne.s32.totalorder %s4757_s15, 0 }
  0xca   : > { %s4386_s29 = sand.u32 (!%p4768_p8), 1, %s4020_s26  }
  0xcb   : > { %469 = sbr.rel (%p4768_p8) target bundleno = 4236 (0x108c), region = 72  ;;  %s2989_s1 = sshll.u32 (!%p4768_p8), %s4386_s29, 4 }
  0xcc   : > { %s472_s22 = scalar_lea.sflag (!%p4768_p8), [#allocation4], %s4386_s29  ;;  %s475_s17 = scalar_lea.vmem (!%p4768_p8), [#allocation3], %s2989_s1 }
  0xd2   : > { %3995 = dma.done.wait (%p4323_p6), %s472_s22, 256  }
  0xd3   : > { %3997 = vsyncadd (%p4323_p6), %s472_s22, 4294967040  ;;  %p4769_p10 = scmp.eq.s32.totalorder %s4142_s14, 0 }
  0xd5   : > { %3999 = dma.done.wait (%p4769_p10), [#allocation7], 32   ;;  %p4770_p11 = pmov %p4769_p10 }
  0xd6   : > { %p4771_p12 = pmov %p4769_p10 }
  0xd7   : > { %4001 = vsyncadd (%p4770_p11), [#allocation7], 4294967264 }
  0xd8   : > { %4003 = dma.done.wait (%p4771_p12), [#allocation10], 8192   ;;  %p4772_p0 = pmov %p4769_p10 }
  0xda   : > { %4005 = vsyncadd (%p4772_p0), [#allocation10], 4294959104  ;;  %p4773_p5 = pmov %p4772_p0 }
  0xdb   : > { %p4774_p7 = pmov %p4772_p0 }
  0xdc   : > { %4007 = dma.done.wait (%p4773_p5), [#allocation13], 16384  }
  0xdd   : > { %4009 = vsyncadd (%p4774_p7), [#allocation13], 4294950912  ;;  %v4408_v0 = vld [vmem:[%s475_s17] sm:$0xff]  ;;  %v4411_v1 = vld [vmem:[%s475_s17 + $0x8] sm:$0xff]  ;;  %vm4044_vm0 = vmmov 0   ;;  %vm812_vm1 = vcmask 261120  }
  0xde   : > { %548 = vadd.xlane.f32.xlu0 %v4408_v0  ;;  %v588_v2 = vld [vmem:[#allocation9 + $0x8] sm:$0xff]  ;;  %v591_v3 = vld [vmem:[#allocation9 + $0x20] sm:$0xff]  ;;  %v590_v6 = vld [vmem:[#allocation9 + $0x18] sm:$0xff]  ;;  %vm965_vm3 = vcmask 64512   ;;  %s4045_s30 = smov 96   ;;  %s4046_s3 = smov 64  }
  0xdf   : > { %v587_v4 = vld [vmem:[#allocation9] sm:$0xff]  ;;  %v3336_v5 = vpack.c.bf16 %v591_v3, %v588_v2  ;;  %v594_v7 = vld [vmem:[#allocation9 + $0x38] sm:$0xff]  ;;  %v597_v8 = vld [vmem:[#allocation9 + $0x50] sm:$0xff]  ;;  %s4047_s21 = smov 32   ;;  %vm1476_vm4 = vcmask 523520   ;;  %vm1817_vm5 = vcmask 785920  }
  0xe0   : > { %v3338_v9 = vpack.c.bf16 %v590_v6, %v587_v4  ;;  %v3340_v10 = vpack.c.bf16 %v597_v8, %v594_v7  ;;  %v589_v11 = vld [vmem:[#allocation9 + $0x10] sm:$0xff]  ;;  %v592_v12 = vld [vmem:[#allocation9 + $0x28] sm:$0xff]  ;;  %v603_v17 = vld [vmem:[#allocation9 + $0x80] sm:$0xff]  ;;  %v4043_v6 = vmov 0.0   ;;  %vm2158_vm6 = vcmask 1048320   ;;  %s4775_s23 = sld [smem:[#allocation23_spill]] }
  0xe1   : > { %v593_v13 = vld [vmem:[#allocation9 + $0x30] sm:$0xff]  ;;  %3337 = vmatprep.subr.bf16.mxu0 %v3336_v5  ;;  %v3368_v14 = vpack.c.bf16 %v592_v12, %v589_v11  ;;  %v596_v15 = vld [vmem:[#allocation9 + $0x48] sm:$0xff]  ;;  %v595_v19 = vld [vmem:[#allocation9 + $0x40] sm:$0xff]  ;;  %716 = vmatprep.mubr.f32.mxu0 %v4043_v6  ;;  %s4776_s17 = sld [smem:[#allocation24_spill]]  ;;  %s4778_s18 = sld [smem:[#allocation26_spill]] }
  0xe2   : > { %550 = vadd.xlane.f32.xlu0 %v4411_v1  ;;  %v600_v16 = vld [vmem:[#allocation9 + $0x68] sm:$0xff]  ;;  %3339 = vmatpush1.bf16.msra.mxu0 %v3338_v9  ;;  %v3342_v18 = vpack.c.bf16 %v596_v15, %v593_v13  ;;  %v598_v20 = vld [vmem:[#allocation9 + $0x58] sm:$0xff]  ;;  %v599_v23 = vld [vmem:[#allocation9 + $0x60] sm:$0xff]  ;;  %s541_s20 = scalar_lea.vmem [#allocation15], %s2989_s1  ;;  %s3041_s13 = sshll.u32 %s4142_s14, 8 }
  0xe3   : > { %3341 = vmatprep.subr.bf16.mxu0 %v3340_v10  ;;  %3369 = vmatprep.subr.bf16.mxu1 %v3368_v14  ;;  %v3344_v21 = vpack.c.bf16 %v603_v17, %v600_v16  ;;  %v3372_v22 = vpack.c.bf16 %v598_v20, %v595_v19  ;;  %v602_v24 = vld [vmem:[#allocation9 + $0x78] sm:$0xff]  ;;  %v609_v35 = vld [vmem:[#allocation9 + $0xb0] sm:$0xff]  ;;  %v604_v38 = vld [vmem:[#allocation9 + $0x88] sm:$0xff]  ;;  %s2846_s7 = sshll.u32 %s541_s20, 4  ;;  %s4779_s22 = sld [smem:[#allocation27_spill]]  ;;  %s4682_s7 = int_to_ptr.vmem [resolvable:$true] %s2846_s7 }
  0xe4   : > { %3371 = vmatpush3.bf16.msra.mxu1 %v3368_v14  ;;  %v3346_v25 = vpack.c.bf16 %v602_v24, %v599_v23  ;;  %v606_v34 = vld [vmem:[#allocation9 + $0x98] sm:$0xff]  ;;  %v601_v36 = vld [vmem:[#allocation9 + $0x70] sm:$0xff]  ;;  %v608_v40 = vld [vmem:[#allocation9 + $0xa8] sm:$0xff]  ;;  %s2833_s1 = scalar_lea.sflag [#allocation5], %s4386_s29  ;;  %s3950_s15 = scalar_lea.vmem %s4682_s7, 256 }
  0xe5   : > { %3373 = vmatprep.subr.bf16.mxu1 %v3372_v22  ;;  %v3348_v37 = vpack.c.bf16 %v609_v35, %v606_v34  ;;  %v605_v39 = vld [vmem:[#allocation9 + $0x90] sm:$0xff]  ;;  %v3376_v41 = vpack.c.bf16 %v604_v38, %v601_v36  ;;  %v612_v43 = vld [vmem:[#allocation9 + $0xc8] sm:$0xff]  ;;  %v615_v44 = vld [vmem:[#allocation9 + $0xe0] sm:$0xff]  ;;  %p3951_p6 = scmp.ne.s32.totalorder %s4682_s7, %s3950_s15  ;;  %p4780_p9 = scmp.ne.s32.totalorder %s4765_s8, 0 }
  0xe6   : > { %3343 = vmatpush1.bf16.msra.mxu0 %v3342_v18  ;;  %v3350_v42 = vpack.c.bf16 %v608_v40, %v605_v39  ;;  %v607_v45 = vld [vmem:[#allocation9 + $0xa0] sm:$0xff]  ;;  %v3352_v46 = vpack.c.bf16 %v615_v44, %v612_v43  ;;  %v610_v47 = vld [vmem:[#allocation9 + $0xb8] sm:$0xff]  ;;  %v621_v53 = vld [vmem:[#allocation9 + $0x110] sm:$0xff]  ;;  %s4048_s14 = smov [#allocation15]  }
  0xe7   : > { %3345 = vmatprep.subr.bf16.mxu0 %v3344_v21  ;;  %v611_v48 = vld [vmem:[#allocation9 + $0xc0] sm:$0xff]  ;;  %v614_v49 = vld [vmem:[#allocation9 + $0xd8] sm:$0xff]  ;;  %v3380_v50 = vpack.c.bf16 %v610_v47, %v607_v45  ;;  %v613_v54 = vld [vmem:[#allocation9 + $0xd0] sm:$0xff]  ;;  %p3952_p4 = pnand %p3951_p6, %p4780_p9  ;;  %s3954_s24 = sshll.u32 %s4048_s14, 4  ;;  %s3955_s24 = int_to_ptr.vmem [resolvable:$false] %s3954_s24 }
  0xe8   : > { %3375 = vmatpush3.bf16.msra.mxu1 %v3372_v22  ;;  %v3354_v51 = vpack.c.bf16 %v614_v49, %v611_v48  ;;  %v618_v52 = vld [vmem:[#allocation9 + $0xf8] sm:$0xff]  ;;  %v616_v56 = vld [vmem:[#allocation9 + $0xe8] sm:$0xff]  ;;  %v617_v57 = vld [vmem:[#allocation9 + $0xf0] sm:$0xff]  ;;  %p3957_p1 = scmp.lt.s32.totalorder %s4682_s7, %s3955_s24 }
  0xe9   : > { %3377 = vmatprep.subr.bf16.mxu1 %v3376_v41  ;;  %v3356_v55 = vpack.c.bf16 %v621_v53, %v618_v52  ;;  %v620_v58 = vld [vmem:[#allocation9 + $0x108] sm:$0xff]  ;;  %v3384_v59 = vpack.c.bf16 %v616_v56, %v613_v54  ;;  %v627_v62 = vld [vmem:[#allocation9 + $0x140] sm:$0xff]  ;;  %v622_v3 = vld [vmem:[#allocation9 + $0x118] sm:$0xff]  ;;  %p3953_p13 = pneg %p3952_p4 }
  0xea   : > { %3347 = vmatpush1.bf16.msra.mxu0 %v3346_v25  ;;  %v3358_v60 = vpack.c.bf16 %v620_v58, %v617_v57  ;;  %v624_v61 = vld [vmem:[#allocation9 + $0x128] sm:$0xff]  ;;  %v619_v63 = vld [vmem:[#allocation9 + $0x100] sm:$0xff]  ;;  %v626_v5 = vld [vmem:[#allocation9 + $0x138] sm:$0xff] }
  0xeb   : > { %3349 = vmatprep.subr.bf16.mxu0 %v3348_v37  ;;  %v3360_v2 = vpack.c.bf16 %v627_v62, %v624_v61  ;;  %v623_v4 = vld [vmem:[#allocation9 + $0x120] sm:$0xff]  ;;  %v3388_v7 = vpack.c.bf16 %v622_v3, %v619_v63  ;;  %v630_v9 = vld [vmem:[#allocation9 + $0x158] sm:$0xff]  ;;  %v633_v10 = vld [vmem:[#allocation9 + $0x170] sm:$0xff] }
  0xec   : > { %3379 = vmatpush3.bf16.msra.mxu1 %v3376_v41  ;;  %v3362_v8 = vpack.c.bf16 %v626_v5, %v623_v4  ;;  %v625_v11 = vld [vmem:[#allocation9 + $0x130] sm:$0xff]  ;;  %v3364_v12 = vpack.c.bf16 %v633_v10, %v630_v9  ;;  %v628_v13 = vld [vmem:[#allocation9 + $0x148] sm:$0xff]  ;;  %v631_v18 = vld [vmem:[#allocation9 + $0x160] sm:$0xff] }
  0xed   : > { %3381 = vmatprep.subr.bf16.mxu1 %v3380_v50  ;;  %v629_v14 = vld [vmem:[#allocation9 + $0x150] sm:$0xff]  ;;  %v632_v15 = vld [vmem:[#allocation9 + $0x168] sm:$0xff]  ;;  %v3392_v16 = vpack.c.bf16 %v628_v13, %v625_v11  ;;  %v634_v19 = vld [vmem:[#allocation9 + $0x178] sm:$0xff] }
  0xee   : > { %3351 = vmatpush1.bf16.msra.mxu0 %v3350_v42  ;;  %v3366_v17 = vpack.c.bf16 %v632_v15, %v629_v14  ;;  %v3396_v20 = vpack.c.bf16 %v634_v19, %v631_v18  ;;  %v635_v40 = vld [vmem:[%s4736_s4] sm:$0x7] }
  0xef   : > { %3353 = vmatprep.subr.bf16.mxu0 %v3352_v46 }
  0xf0   : > { %3383 = vmatpush3.bf16.msra.mxu1 %v3380_v50 }
  0xf1   : > { %3385 = vmatprep.subr.bf16.mxu1 %v3384_v59 }
  0xf2   : > { %3355 = vmatpush1.bf16.msra.mxu0 %v3354_v51 }
  0xf3   : > { %3357 = vmatprep.subr.bf16.mxu0 %v3356_v55 }
  0xf4   : > { %3387 = vmatpush3.bf16.msra.mxu1 %v3384_v59 }
  0xf5   : > { %3389 = vmatprep.subr.bf16.mxu1 %v3388_v7 }
  0xf6   : > { %3359 = vmatpush1.bf16.msra.mxu0 %v3358_v60 }
  0xf7   : > { %3361 = vmatprep.subr.bf16.mxu0 %v3360_v2 }
  0xf8   : > { %3391 = vmatpush3.bf16.msra.mxu1 %v3388_v7 }
  0xf9   : > { %3393 = vmatprep.subr.bf16.mxu1 %v3392_v16 }
  0xfa   : > { %3363 = vmatpush1.bf16.msra.mxu0 %v3362_v8 }
  0xfb   : > { %3365 = vmatprep.subr.bf16.mxu0 %v3364_v12 }
  0xfc   : > { %3395 = vmatpush3.bf16.msra.mxu1 %v3392_v16 }
  0xfd   : > { %3397 = vmatprep.subr.bf16.mxu1 %v3396_v20 }
  0xfe   : > { %3367 = vmatpush1.bf16.msra.mxu0 %v3366_v17 }
  0xff   : > { %3221 = vmatprep.subr.mxu0 %v4043_v6 }
 0x100   : > { %3399 = vmatpush3.bf16.msra.mxu1 %v3396_v20 }
 0x101   : > { %3251 = vmatprep.subr.mxu1 %v4043_v6 }
 0x16b   : > { %v549_v26 = vpop.xlane.xlu0 %548 }
 0x16c   : > { %v553_v27 = vmul.f32 0.0078125, %v549_v26 }
 0x16e   : > { %v4415_v28 = vsub.f32 %v4408_v0, %v553_v27 }
 0x16f   : > { %v551_v29 = vpop.xlane.xlu0 %550 }
 0x170   : > { %v554_v30 = vmul.f32 0.0078125, %v551_v29  ;;  %v557_v31 = vmul.f32 %v4415_v28, %v4415_v28  ;;  %v2997_v29 = vld [vmem:[#allocation6] ss:$0 sm:$0xff] }
 0x172   : > { %v4420_v32 = vsub.f32 %v4411_v1, %v554_v30  ;;  %559 = vadd.xlane.f32.xlu1 %v557_v31  ;;  %v2998_v31 = vld [vmem:[#allocation8] ss:$0 sm:$0xff] }
 0x174   : > { %v558_v33 = vmul.f32 %v4420_v32, %v4420_v32 }
 0x176   : > { %561 = vadd.xlane.f32.xlu1 %v558_v33 }
 0x1ff   : > { %v560_v21 = vpop.xlane.xlu1 %559 }
 0x200   : > { %v563_v22 = vmul.f32 0.0078125, %v560_v21 }
 0x202   : > { %v565_v23 = vadd.f32 1e-05, %v563_v22 }
 0x203   : > { %v562_v24 = vpop.xlane.xlu1 %561 }
 0x204   : > { %3680 = vrsqrt.f32 %v565_v23  ;;  %v564_v25 = vmul.f32 0.0078125, %v562_v24 }
 0x206   : > { %v566_v26 = vadd.f32 1e-05, %v564_v25 }
 0x208   : > { %3682 = vrsqrt.f32 %v566_v26 }
 0x20e   : > { %v3681_v27 = vpop.eup %3680 }
 0x20f   : > { %v569_v30 = vmul.f32 %v3681_v27, %v4415_v28  ;;  %v637_v28 = vlaneseq }
 0x211   : > { %v577_v33 = vmul.f32 %v2997_v29, %v569_v30  ;;  %v4434_v39 = vshrl.u32 %v637_v28, 7  ;;  %v809_v60 = vand.u32 127, %v637_v28 }
 0x212   : > { %v3683_v34 = vpop.eup %3682 }
 0x213   : > { %v585_v35 = vadd.f32 %v2998_v31, %v577_v33  ;;  %v570_v36 = vmul.f32 %v3683_v34, %v4420_v32  ;;  %v639_v32 = vsub.s32 0, %v4434_v39  ;;  %v643_v41 = vsub.s32 1, %v4434_v39 }
 0x214   : > { %v647_v43 = vsub.s32 2, %v4434_v39  ;;  %vm810_vm2 = vcmp.gt.s32.totalorder %v809_v60, %v4434_v39 }
 0x215   : > { %717 = vmatmul.mubr.f32.vlgmr.msra.gmra.mrb[0].mxu0 %v585_v35  ;;  %3218 = vmatprep.mubr.f32.mxu1 %v585_v35  ;;  %v578_v37 = vmul.f32 %v2997_v29, %v570_v36  ;;  %v640_v42 = vrot.slane %v635_v40, %v639_v32  ;;  %v644_v44 = vrot.slane %v635_v40, %v643_v41  ;;  %v4478_v61 = vsel %vm810_vm2, -1e+30, %v4043_v6 }
 0x216   : > { %722 = vmatprep.mubr.f32.mxu0 %v4043_v6  ;;  %v648_v48 = vrot.slane %v635_v40, %v647_v43 }
 0x217   : > { %v586_v38 = vadd.f32 %v2998_v31, %v578_v37 }
 0x219   : > { %723 = vmatmul.mubr.f32.gmra.mrb[2].mxu0 %v586_v38  ;;  %3219 = vmatmul.mubr.f32.vlgmr.msra.gmra.mrb[0].mxu1 %v586_v38 }
 0x21a   : > { %3223 = vmatprep.mubr.msk.f32.mxu0 %vm4044_vm0, %v4043_v6  ;;  %3253 = vmatprep.mubr.msk.f32.mxu1 %vm4044_vm0, %v4043_v6 }
 0x2e8   : > { %v718_v45 = vpop.f32.mrb[0].mxu0 }
 0x2e9   : > { %v719_v46 = vadd.f32 %v718_v45, %v640_v42  ;;  %v720_v47 = vpop.f32.mrb[1].mxu0 }
 0x2ea   : > { %v4448_v49 = vadd.f32 %v720_v47, %v644_v44 }
 0x2eb   : > { %v4452_v52 = vmul.f32 0.17677669, %v719_v46 }
 0x2ec   : > { %v724_v50 = vpop.f32.mrb[2].mxu0  ;;  %v3220_v51 = vpop.f32.mrb[0].mxu1  ;;  %3222 = vmatpush3.xpose.msk.msra.mxu0 %vm812_vm1, %v4448_v49 }
 0x2ed   : > { %v725_v53 = vadd.f32 %v724_v50, %v640_v42  ;;  %v4454_v54 = vadd.f32 %v3220_v51, %v648_v48  ;;  %v726_v55 = vpop.f32.mrb[3].mxu0  ;;  %v795_v56 = vpop.f32.mrb[1].mxu1  ;;  %3226 = vmatprep.subr.mxu0 %v4043_v6 }
 0x2ee   : > { %v4457_v57 = vadd.f32 %v726_v55, %v644_v44  ;;  %v4468_v59 = vadd.f32 %v795_v56, %v648_v48 }
 0x2ef   : > { %3224 = vmatmul.mubr.msk.f32.vlgmr.msra.gmra.mrb[4].mxu0 %vm812_vm1, %v4452_v52  ;;  %v4465_v58 = vmul.f32 0.17677669, %v725_v53 }
 0x2f0   : > { %3227 = vmatpush3.xpose.msk.msra.mxu0 %vm812_vm1, %v4457_v57  ;;  %3228 = vmatprep.mubr.msk.f32.mxu0 %vm4044_vm0, %v4043_v6 }
 0x2f1   : > { %3231 = vmatprep.subr.mxu0 %v4043_v6 }
 0x2f3   : > { %3229 = vmatmul.mubr.msk.f32.vlgmr.msra.gmra.mrb[6].mxu0 %vm812_vm1, %v4465_v58 }
 0x2f4   : > { %3232 = vmatpush3.msra.mxu0 %v4468_v59  ;;  %3233 = vmatprep.mubr.msk.f32.mxu0 %vm4044_vm0, %v4043_v6 }
 0x2f5   : > { %3236 = vmatprep.subr.mxu0 %v4043_v6 }
 0x3c2   : > { %v885_v62 = vpop.f32.mrb[4].mxu0 }
 0x3c3   : > { %v886_v63 = vadd.f32 %v885_v62, %v4478_v61  ;;  %v3225_v2 = vpop.f32.mrb[5].mxu0 }
 0x3c5   : > { %v966_v3 = vsel %vm965_vm3, %v886_v63, -inf }
 0x3c6   : > { %967 = vmax.xlane.f32.xlu0 %v966_v3  ;;  %v961_v4 = vpop.f32.mrb[6].mxu0 }
 0x3c7   : > { %v962_v5 = vadd.f32 %v961_v4, %v4478_v61  ;;  %v3230_v7 = vpop.f32.mrb[7].mxu0 }
 0x3c9   : > { %v969_v8 = vsel %vm965_vm3, %v962_v5, -inf }
 0x3ca   : > { %970 = vmax.xlane.f32.xlu1 %v969_v8 }
 0x3db   : > { %1136 = vrot.lane.b32.xlu1 %v4452_v52, %s4045_s30 }
 0x3df   : > { %1216 = vrot.lane.b32.xlu1 %v4457_v57, %s4045_s30 }
 0x453   : > { %v968_v9 = vpop.xlane.xlu0 %967 }
 0x454   : > { %v972_v10 = vsub.f32 %v886_v63, %v968_v9 }
 0x456   : > { %v974_v11 = vmul.f32 1.442695, %v972_v10 }
 0x457   : > { %v971_v12 = vpop.xlane.xlu1 %970 }
 0x458   : > { %3684 = vpow2.f32 %v974_v11  ;;  %v973_v13 = vsub.f32 %v962_v5, %v971_v12 }
 0x45a   : > { %v976_v14 = vmul.f32 1.442695, %v973_v13 }
 0x45b   : > { %v1137_v19 = vpop.permute.xlu1 %1136 }
 0x45c   : > { %3686 = vpow2.f32 %v976_v14 }
 0x45f   : > { %v1217_v20 = vpop.permute.xlu1 %1216 }
 0x462   : > { %v3685_v15 = vpop.eup %3684 }
 0x463   : > { %v978_v16 = vsel %vm965_vm3, %v3685_v15, 0.0 }
 0x464   : > { %979 = vadd.xlane.f32.xlu0 %v978_v16 }
 0x466   : > { %v3687_v17 = vpop.eup %3686 }
 0x467   : > { %v981_v18 = vsel %vm965_vm3, %v3687_v17, 0.0 }
 0x468   : > { %982 = vadd.xlane.f32.xlu1 %v981_v18 }
 0x479   : > { %1214 = vrot.lane.b32.xlu1 %v4465_v58, %s4045_s30 }
 0x47a   : > { %1138 = vrot.lane.b32.xlu0 %v4448_v49, %s4045_s30 }
 0x4f1   : > { %v980_v21 = vpop.xlane.xlu0 %979 }
 0x4f2   : > { %3688 = vrcp.f32 %v980_v21 }
 0x4f5   : > { %v983_v22 = vpop.xlane.xlu1 %982  ;;  %v1139_v27 = vpop.permute.xlu0 %1138 }
 0x4f6   : > { %3690 = vrcp.f32 %v983_v22 }
 0x4f9   : > { %v1215_v29 = vpop.permute.xlu1 %1214 }
 0x4fc   : > { %v3689_v23 = vpop.eup %3688 }
 0x4fd   : > { %v986_v24 = vmul.f32 %v3689_v23, %v3685_v15 }
 0x4ff   : > { %3234 = vmatmul.mubr.msk.f32.vlgmr.msra.gmra.mrb[8].mxu0 %vm965_vm3, %v986_v24 }
 0x500   : > { %v3691_v25 = vpop.eup %3690  ;;  %3237 = vmatpush3.msra.mxu0 %v4454_v54  ;;  %3238 = vmatprep.mubr.msk.f32.mxu0 %vm4044_vm0, %v4043_v6 }
 0x501   : > { %v987_v26 = vmul.f32 %v3691_v25, %v3687_v17  ;;  %3241 = vmatprep.subr.mxu0 %v4043_v6 }
 0x503   : > { %3239 = vmatmul.mubr.msk.f32.vlgmr.msra.gmra.mrb[10].mxu0 %vm965_vm3, %v987_v26 }
 0x504   : > { %3243 = vmatprep.mubr.msk.f32.mxu0 %vm4044_vm0, %v4043_v6 }
 0x507   : > { %3242 = vmatpush3.xpose.msk.msra.mxu0 %vm812_vm1, %v1139_v27 }
 0x508   : > { %3246 = vmatprep.subr.mxu0 %v4043_v6 }
 0x50a   : > { %3244 = vmatmul.mubr.msk.f32.vlgmr.msra.gmra.mrb[12].mxu0 %vm812_vm1, %v1137_v19 }
 0x50b   : > { %3247 = vmatpush3.xpose.msk.msra.mxu0 %vm812_vm1, %v1217_v20  ;;  %3248 = vmatprep.mubr.msk.f32.mxu0 %vm4044_vm0, %v4043_v6 }
 0x50c   : > { %3256 = vmatprep.subr.mxu0 %v4043_v6 }
 0x50e   : > { %3249 = vmatmul.mubr.msk.f32.vlgmr.msra.gmra.mrb[14].mxu0 %vm812_vm1, %v1215_v29 }
 0x50f   : > { %3258 = vmatprep.mubr.msk.f32.mxu0 %vm4044_vm0, %v4043_v6 }
 0x5d2   : > { %v1057_v30 = vpop.f32.mrb[8].mxu0 }
 0x5d3   : > { %1134 = vst.msk [vmem:[#allocation2] sm:$0xff] %vm812_vm1, %v1057_v30  ;;  %v3235_v31 = vpop.f32.mrb[9].mxu0 }
 0x5d6   : > { %v1130_v33 = vpop.f32.mrb[10].mxu0 }
 0x5d7   : > { %1135 = vst.msk [vmem:[#allocation2 + $0x8] sm:$0xff] %vm812_vm1, %v1130_v33  ;;  %v3240_v34 = vpop.f32.mrb[11].mxu0 }
 0x5dd   : > { %v1210_v35 = vpop.f32.mrb[12].mxu0 }
 0x5de   : > { %v1211_v36 = vadd.f32 %v1210_v35, %v4478_v61  ;;  %v3245_v37 = vpop.f32.mrb[13].mxu0 }
 0x5e0   : > { %v1292_v38 = vsel %vm965_vm3, %v1211_v36, -inf }
 0x5e1   : > { %1293 = vmax.xlane.f32.xlu0 %v1292_v38  ;;  %v1288_v28 = vpop.f32.mrb[14].mxu0 }
 0x5e2   : > { %v1289_v40 = vadd.f32 %v1288_v28, %v4478_v61  ;;  %v3250_v42 = vpop.f32.mrb[15].mxu0 }
 0x5e4   : > { %v1295_v44 = vsel %vm965_vm3, %v1289_v40, -inf }
 0x5e5   : > { %1296 = vmax.xlane.f32.xlu1 %v1295_v44 }
 0x5f6   : > { %1392 = vrot.lane.b32.xlu1 %v4454_v54, %s4045_s30 }
 0x5f7   : > { %1315 = vrot.lane.b32.xlu0 %v4468_v59, %s4045_s30 }
 0x5fa   : > { %1481 = vrot.lane.b32.xlu1 %v4448_v49, %s4046_s3 }
 0x5fe   : > { %1559 = vrot.lane.b32.xlu1 %v4457_v57, %s4046_s3 }
 0x602   : > { %1557 = vrot.lane.b32.xlu1 %v4465_v58, %s4046_s3 }
 0x66e   : > { %v1294_v45 = vpop.xlane.xlu0 %1293 }
 0x66f   : > { %v1298_v46 = vsub.f32 %v1211_v36, %v1294_v45 }
 0x671   : > { %v1300_v47 = vmul.f32 1.442695, %v1298_v46 }
 0x672   : > { %v1316_v48 = vpop.permute.xlu0 %1315  ;;  %v1297_v50 = vpop.xlane.xlu1 %1296 }
 0x673   : > { %3692 = vpow2.f32 %v1300_v47  ;;  %v1299_v51 = vsub.f32 %v1289_v40, %v1297_v50  ;;  %3252 = vmatpush3.msra.mxu1 %v1316_v48 }
 0x674   : > { %3261 = vmatprep.subr.mxu1 %v4043_v6 }
 0x675   : > { %v1302_v53 = vmul.f32 1.442695, %v1299_v51 }
 0x676   : > { %v1393_v55 = vpop.permute.xlu1 %1392 }
 0x677   : > { %3694 = vpow2.f32 %v1302_v53  ;;  %3257 = vmatpush3.msra.mxu0 %v1393_v55 }
 0x678   : > { %3266 = vmatprep.subr.mxu0 %v4043_v6 }
 0x67a   : > { %v1482_v4 = vpop.permute.xlu1 %1481 }
 0x67d   : > { %v3693_v56 = vpop.eup %3692 }
 0x67e   : > { %v1304_v60 = vsel %vm965_vm3, %v3693_v56, 0.0  ;;  %v1560_v9 = vpop.permute.xlu1 %1559 }
 0x67f   : > { %1305 = vadd.xlane.f32.xlu0 %v1304_v60 }
 0x681   : > { %v3695_v62 = vpop.eup %3694 }
 0x682   : > { %v1307_v63 = vsel %vm965_vm3, %v3695_v62, 0.0  ;;  %v1558_v12 = vpop.permute.xlu1 %1557 }
 0x683   : > { %1308 = vadd.xlane.f32.xlu0 %v1307_v63 }
 0x699   : > { %1479 = vrot.lane.b32.xlu0 %v4452_v52, %s4046_s3 }
 0x70c   : > { %v1306_v2 = vpop.xlane.xlu0 %1305 }
 0x70d   : > { %3696 = vrcp.f32 %v1306_v2 }
 0x710   : > { %v1309_v3 = vpop.xlane.xlu0 %1308 }
 0x711   : > { %3698 = vrcp.f32 %v1309_v3 }
 0x714   : > { %v1480_v11 = vpop.permute.xlu0 %1479 }
 0x717   : > { %v3697_v5 = vpop.eup %3696 }
 0x718   : > { %v1312_v7 = vmul.f32 %v3697_v5, %v3693_v56 }
 0x71a   : > { %3254 = vmatmul.mubr.msk.f32.vlgmr.msra.gmra.mrb[2].mxu1 %vm965_vm3, %v1312_v7 }
 0x71b   : > { %v3699_v8 = vpop.eup %3698  ;;  %3262 = vmatpush3.xpose.msk.msra.mxu1 %vm812_vm1, %v1482_v4  ;;  %3263 = vmatprep.mubr.msk.f32.mxu1 %vm4044_vm0, %v4043_v6 }
 0x71c   : > { %v1313_v10 = vmul.f32 %v3699_v8, %v3695_v62  ;;  %3271 = vmatprep.subr.mxu1 %v4043_v6 }
 0x71e   : > { %3259 = vmatmul.mubr.msk.f32.vlgmr.msra.gmra.mrb[16].mxu0 %vm965_vm3, %v1313_v10  ;;  %3264 = vmatmul.mubr.msk.f32.vlgmr.msra.gmra.mrb[4].mxu1 %vm812_vm1, %v1480_v11 }
 0x71f   : > { %3267 = vmatpush3.xpose.msk.msra.mxu0 %vm812_vm1, %v1560_v9  ;;  %3268 = vmatprep.mubr.msk.f32.mxu0 %vm4044_vm0, %v4043_v6 }
 0x720   : > { %3276 = vmatprep.subr.mxu0 %v4043_v6  ;;  %3273 = vmatprep.mubr.msk.f32.mxu1 %vm4044_vm0, %v4043_v6 }
 0x722   : > { %3269 = vmatmul.mubr.msk.f32.vlgmr.msra.gmra.mrb[18].mxu0 %vm812_vm1, %v1558_v12 }
 0x723   : > { %3278 = vmatprep.mubr.msk.f32.mxu0 %vm4044_vm0, %v4043_v6 }
 0x7ed   : > { %v4550_v13 = vpop.f32.mrb[2].mxu1 }
 0x7ee   : > { %v3255_v14 = vpop.f32.mrb[3].mxu1 }
 0x7f1   : > { %v4552_v15 = vpop.f32.mrb[16].mxu0  ;;  %v1553_v16 = vpop.f32.mrb[4].mxu1 }
 0x7f2   : > { %v1554_v17 = vadd.f32 %v1553_v16, %v4478_v61  ;;  %v3260_v18 = vpop.f32.mrb[17].mxu0  ;;  %v3265_v19 = vpop.f32.mrb[5].mxu1 }
 0x7f4   : > { %v1635_v20 = vsel %vm965_vm3, %v1554_v17, -inf }
 0x7f5   : > { %1636 = vmax.xlane.f32.xlu0 %v1635_v20  ;;  %v1631_v21 = vpop.f32.mrb[18].mxu0 }
 0x7f6   : > { %v1632_v22 = vadd.f32 %v1631_v21, %v4478_v61  ;;  %v3270_v23 = vpop.f32.mrb[19].mxu0 }
 0x7f8   : > { %v1638_v24 = vsel %vm965_vm3, %v1632_v22, -inf }
 0x7f9   : > { %1639 = vmax.xlane.f32.xlu1 %v1638_v24 }
 0x80a   : > { %1733 = vrot.lane.b32.xlu1 %v4454_v54, %s4046_s3 }
 0x80b   : > { %1657 = vrot.lane.b32.xlu0 %v4468_v59, %s4046_s3 }
 0x80e   : > { %1822 = vrot.lane.b32.xlu1 %v4448_v49, %s4047_s21 }
 0x812   : > { %1900 = vrot.lane.b32.xlu1 %v4457_v57, %s4047_s21 }
 0x816   : > { %1898 = vrot.lane.b32.xlu1 %v4465_v58, %s4047_s21 }
 0x882   : > { %v1637_v25 = vpop.xlane.xlu0 %1636 }
 0x883   : > { %v1641_v26 = vsub.f32 %v1554_v17, %v1637_v25  ;;  %v2164_v25 = vld [vmem:[#allocation11 + $0x8] sm:$0xff] }
 0x885   : > { %v1643_v27 = vmul.f32 1.442695, %v1641_v26  ;;  %v2165_v26 = vld [vmem:[#allocation11 + $0x10] sm:$0xff] }
 0x886   : > { %v1658_v29 = vpop.permute.xlu0 %1657  ;;  %v1640_v30 = vpop.xlane.xlu1 %1639 }
 0x887   : > { %3700 = vpow2.f32 %v1643_v27  ;;  %v1642_v31 = vsub.f32 %v1632_v22, %v1640_v30  ;;  %3272 = vmatpush3.msra.mxu1 %v1658_v29  ;;  %v2166_v29 = vld [vmem:[#allocation11 + $0x18] sm:$0xff] }
 0x888   : > { %3281 = vmatprep.subr.mxu1 %v4043_v6  ;;  %v3404_v30 = vpack.c.bf16 %v2166_v29, %v2165_v26  ;;  %v2317_v26 = vld [vmem:[#allocation12 + $0x70] sm:$0xff]  ;;  %v2324_v29 = vld [vmem:[#allocation12 + $0xa8] sm:$0xff] }
 0x889   : > { %v1645_v33 = vmul.f32 1.442695, %v1642_v31  ;;  %v2167_v31 = vld [vmem:[#allocation11 + $0x20] sm:$0xff] }
 0x88a   : > { %v1734_v34 = vpop.permute.xlu1 %1733 }
 0x88b   : > { %3702 = vpow2.f32 %v1645_v33  ;;  %3277 = vmatpush3.msra.mxu0 %v1734_v34  ;;  %v2168_v33 = vld [vmem:[#allocation11 + $0x28] sm:$0xff] }
 0x88c   : > { %3286 = vmatprep.subr.mxu0 %v4043_v6  ;;  %v3408_v34 = vpack.c.bf16 %v2168_v33, %v2167_v31  ;;  %v2322_v33 = vld [vmem:[#allocation12 + $0x98] sm:$0xff] }
 0x88e   : > { %v1823_v38 = vpop.permute.xlu1 %1822 }
 0x891   : > { %v3701_v49 = vpop.eup %3700 }
 0x892   : > { %v1647_v57 = vsel %vm965_vm3, %v3701_v49, 0.0  ;;  %v1901_v44 = vpop.permute.xlu1 %1900 }
 0x893   : > { %1648 = vadd.xlane.f32.xlu0 %v1647_v57  ;;  %v2170_v57 = vld [vmem:[#allocation11 + $0x38] sm:$0xff] }
 0x895   : > { %v3703_v58 = vpop.eup %3702 }
 0x896   : > { %v1650_v35 = vsel %vm965_vm3, %v3703_v58, 0.0  ;;  %v1899_v46 = vpop.permute.xlu1 %1898 }
 0x897   : > { %1651 = vadd.xlane.f32.xlu0 %v1650_v35  ;;  %v2171_v35 = vld [vmem:[#allocation11 + $0x40] sm:$0xff] }
 0x8ad   : > { %1820 = vrot.lane.b32.xlu0 %v4452_v52, %s4047_s21 }
 0x920   : > { %v1649_v36 = vpop.xlane.xlu0 %1648 }
 0x921   : > { %3704 = vrcp.f32 %v1649_v36  ;;  %v2172_v36 = vld [vmem:[#allocation11 + $0x48] sm:$0xff] }
 0x924   : > { %v1652_v37 = vpop.xlane.xlu0 %1651 }
 0x925   : > { %3706 = vrcp.f32 %v1652_v37  ;;  %v3416_v37 = vpack.c.bf16 %v2172_v36, %v2171_v35  ;;  %v2321_v35 = vld [vmem:[#allocation12 + $0x90] sm:$0xff] }
 0x926   : > { %v2325_v36 = vld [vmem:[#allocation12 + $0xb0] sm:$0xff] }
 0x928   : > { %v1821_v52 = vpop.permute.xlu0 %1820 }
 0x92b   : > { %v3705_v28 = vpop.eup %3704 }
 0x92c   : > { %v1655_v40 = vmul.f32 %v3705_v28, %v3701_v49  ;;  %v2169_v49 = vld [vmem:[#allocation11 + $0x30] sm:$0xff]  ;;  %v2174_v28 = vld [vmem:[#allocation11 + $0x58] sm:$0xff] }
 0x92e   : > { %3274 = vmatmul.mubr.msk.f32.vlgmr.msra.gmra.mrb[6].mxu1 %vm965_vm3, %v1655_v40 }
 0x92f   : > { %v3707_v42 = vpop.eup %3706  ;;  %3282 = vmatpush3.xpose.msk.msra.mxu1 %vm812_vm1, %v1823_v38  ;;  %3283 = vmatprep.mubr.msk.f32.mxu1 %vm4044_vm0, %v4043_v6  ;;  %v2173_v38 = vld [vmem:[#allocation11 + $0x50] sm:$0xff] }
 0x930   : > { %v1656_v45 = vmul.f32 %v3707_v42, %v3703_v58  ;;  %3291 = vmatprep.subr.mxu1 %v4043_v6  ;;  %v3412_v58 = vpack.c.bf16 %v2170_v57, %v2169_v49  ;;  %v3420_v40 = vpack.c.bf16 %v2174_v28, %v2173_v38  ;;  %v2175_v42 = vld [vmem:[#allocation11 + $0x60] sm:$0xff]  ;;  %v3474_v38 = vpack.c.bf16 %v2325_v36, %v2321_v35  ;;  %v2357_v36 = vld [vmem:[#allocation12 + $0x1b0] sm:$0xff] }
 0x931   : > { %v2319_v49 = vld [vmem:[#allocation12 + $0x80] sm:$0xff] }
 0x932   : > { %3279 = vmatmul.mubr.msk.f32.vlgmr.msra.gmra.mrb[20].mxu0 %vm965_vm3, %v1656_v45  ;;  %3284 = vmatmul.mubr.msk.f32.vlgmr.msra.gmra.mrb[8].mxu1 %vm812_vm1, %v1821_v52  ;;  %v2177_v52 = vld [vmem:[#allocation11 + $0x70] sm:$0xff] }
 0x933   : > { %3287 = vmatpush3.xpose.msk.msra.mxu0 %vm812_vm1, %v1901_v44  ;;  %3288 = vmatprep.mubr.msk.f32.mxu0 %vm4044_vm0, %v4043_v6  ;;  %v2176_v44 = vld [vmem:[#allocation11 + $0x68] sm:$0xff] }
 0x934   : > { %3296 = vmatprep.subr.mxu0 %v4043_v6  ;;  %3293 = vmatprep.mubr.msk.f32.mxu1 %vm4044_vm0, %v4043_v6  ;;  %v3424_v45 = vpack.c.bf16 %v2176_v44, %v2175_v42 }
 0x936   : > { %3289 = vmatmul.mubr.msk.f32.vlgmr.msra.gmra.mrb[22].mxu0 %vm812_vm1, %v1899_v46  ;;  %v2178_v46 = vld [vmem:[#allocation11 + $0x78] sm:$0xff] }
 0x937   : > { %3298 = vmatprep.mubr.msk.f32.mxu0 %vm4044_vm0, %v4043_v6 }
 0xa01   : > { %v1729_v47 = vpop.f32.mrb[6].mxu1 }
 0xa02   : > { %v3275_v48 = vpop.f32.mrb[7].mxu1 }
 0xa05   : > { %v1805_v50 = vpop.f32.mrb[20].mxu0  ;;  %v1894_v51 = vpop.f32.mrb[8].mxu1 }
 0xa06   : > { %v1895_v53 = vadd.f32 %v1894_v51, %v4478_v61  ;;  %v3280_v55 = vpop.f32.mrb[21].mxu0  ;;  %v3285_v56 = vpop.f32.mrb[9].mxu1 }
 0xa08   : > { %v1976_v60 = vsel %vm965_vm3, %v1895_v53, -inf }
 0xa09   : > { %1977 = vmax.xlane.f32.xlu0 %v1976_v60  ;;  %v1972_v62 = vpop.f32.mrb[22].mxu0 }
 0xa0a   : > { %v1973_v63 = vadd.f32 %v1972_v62, %v4478_v61  ;;  %v3290_v2 = vpop.f32.mrb[23].mxu0 }
 0xa0c   : > { %v1979_v3 = vsel %vm965_vm3, %v1973_v63, -inf }
 0xa0d   : > { %1980 = vmax.xlane.f32.xlu1 %v1979_v3 }
 0xa1e   : > { %2074 = vrot.lane.b32.xlu1 %v4454_v54, %s4047_s21 }
 0xa22   : > { %1470 = vrot.lane.b32.xlu1 %v4550_v13, %s4047_s21 }
 0xa26   : > { %1472 = vrot.lane.b32.xlu1 %v4552_v15, %s4047_s21 }
 0xa2a   : > { %1813 = vrot.lane.b32.xlu1 %v1805_v50, %s4046_s3 }
 0xa96   : > { %v1978_v4 = vpop.xlane.xlu0 %1977 }
 0xa97   : > { %v1982_v5 = vsub.f32 %v1895_v53, %v1978_v4 }
 0xa99   : > { %v1984_v7 = vmul.f32 1.442695, %v1982_v5 }
 0xa9a   : > { %v1981_v8 = vpop.xlane.xlu1 %1980 }
 0xa9b   : > { %3708 = vpow2.f32 %v1984_v7  ;;  %v1983_v61 = vsub.f32 %v1973_v63, %v1981_v8  ;;  %v3023_v63 = vld [vmem:[%s4738_s6] ss:$0 sm:$0xff] }
 0xa9d   : > { %v1986_v9 = vmul.f32 1.442695, %v1983_v61  ;;  %v2304_v61 = vld [vmem:[#allocation12 + $0x8] sm:$0xff] }
 0xa9e   : > { %v2075_v10 = vpop.permute.xlu1 %2074 }
 0xa9f   : > { %3710 = vpow2.f32 %v1986_v9  ;;  %3297 = vmatpush3.msra.mxu0 %v2075_v10  ;;  %v2308_v9 = vld [vmem:[#allocation12 + $0x28] sm:$0xff]  ;;  %v2306_v10 = vld [vmem:[#allocation12 + $0x18] sm:$0xff] }
 0xaa2   : > { %v1471_v54 = vpop.permute.xlu1 %1470 }
 0xaa3   : > { %1477 = vst.msk [vmem:[#allocation2] sm:$0xff] %vm1476_vm4, %v1471_v54  ;;  %v3432_v54 = vpack.c.bf16 %v2308_v9, %v2304_v61  ;;  %v2340_v61 = vld [vmem:[#allocation12 + $0x128] sm:$0xff]  ;;  %v2338_v9 = vld [vmem:[#allocation12 + $0x118] sm:$0xff] }
 0xaa5   : > { %v3709_v11 = vpop.eup %3708  ;;  %3433 = vmatprep.subr.bf16.mxu0 %v3432_v54  ;;  %v2342_v54 = vld [vmem:[#allocation12 + $0x138] sm:$0xff] }
 0xaa6   : > { %v1473_v12 = vpop.permute.xlu1 %1472  ;;  %v1988_v13 = vsel %vm965_vm3, %v3709_v11, 0.0 }
 0xaa7   : > { %1478 = vst.msk [vmem:[#allocation2 + $0x8] sm:$0xff] %vm1476_vm4, %v1473_v12  ;;  %1989 = vadd.xlane.f32.xlu0 %v1988_v13  ;;  %v2303_v12 = vld [vmem:[#allocation12] sm:$0xff] }
 0xaa8   : > { %v2307_v13 = vld [vmem:[#allocation12 + $0x20] sm:$0xff] }
 0xaa9   : > { %v3711_v14 = vpop.eup %3710 }
 0xaaa   : > { %v1814_v15 = vpop.permute.xlu1 %1813  ;;  %v1991_v16 = vsel %vm965_vm3, %v3711_v14, 0.0 }
 0xaab   : > { %1819 = vst.msk [vmem:[#allocation2 + $0x8] sm:$0xff] %vm1817_vm5, %v1814_v15  ;;  %1992 = vadd.xlane.f32.xlu0 %v1991_v16  ;;  %v3434_v15 = vpack.c.bf16 %v2307_v13, %v2303_v12  ;;  %v2305_v16 = vld [vmem:[#allocation12 + $0x10] sm:$0xff]  ;;  %v2339_v12 = vld [vmem:[#allocation12 + $0x120] sm:$0xff]  ;;  %v3480_v13 = vpack.c.bf16 %v2342_v54, %v2338_v9  ;;  %v3025_v9 = vld [vmem:[%s4776_s17] ss:$0 sm:$0xff]  ;;  %s4687_s17 = scalar_lea.hbm %s4779_s22, %s3041_s13 }
 0xac1   : > { %1998 = vrot.lane.b32.xlu0 %v4468_v59, %s4047_s21  ;;  %v2163_v59 = vld [vmem:[#allocation11] sm:$0xff] }
 0xac2   : > { %v3400_v27 = vpack.c.bf16 %v2164_v25, %v2163_v59  ;;  %v2313_v59 = vld [vmem:[#allocation12 + $0x50] sm:$0xff] }
 0xac5   : > { %1811 = vrot.lane.b32.xlu0 %v1729_v47, %s4046_s3  ;;  %v3428_v47 = vpack.c.bf16 %v2178_v46, %v2177_v52 }
 0xb34   : > { %v1990_v17 = vpop.xlane.xlu0 %1989 }
 0xb35   : > { %3712 = vrcp.f32 %v1990_v17  ;;  %v2309_v17 = vld [vmem:[#allocation12 + $0x30] sm:$0xff] }
 0xb38   : > { %v1993_v18 = vpop.xlane.xlu0 %1992 }
 0xb39   : > { %3714 = vrcp.f32 %v1993_v18  ;;  %v3466_v18 = vpack.c.bf16 %v2309_v17, %v2305_v16  ;;  %v2341_v16 = vld [vmem:[#allocation12 + $0x130] sm:$0xff] }
 0xb3c   : > { %v1999_v19 = vpop.permute.xlu0 %1998 }
 0xb3d   : > { %3292 = vmatpush3.msra.mxu1 %v1999_v19  ;;  %v2314_v19 = vld [vmem:[#allocation12 + $0x58] sm:$0xff] }
 0xb3e   : > { %3401 = vmatprep.subr.bf16.mxu1 %v3400_v27 }
 0xb3f   : > { %v3713_v20 = vpop.eup %3712 }
 0xb40   : > { %v1996_v21 = vmul.f32 %v3713_v20, %v3709_v11  ;;  %v1812_v22 = vpop.permute.xlu0 %1811  ;;  %v2310_v11 = vld [vmem:[#allocation12 + $0x38] sm:$0xff] }
 0xb41   : > { %1818 = vst.msk [vmem:[#allocation2] sm:$0xff] %vm1817_vm5, %v1812_v22  ;;  %v2318_v20 = vld [vmem:[#allocation12 + $0x78] sm:$0xff] }
 0xb42   : > { %3294 = vmatmul.mubr.msk.f32.vlgmr.msra.gmra.mrb[10].mxu1 %vm965_vm3, %v1996_v21  ;;  %v3468_v22 = vpack.c.bf16 %v2318_v20, %v2314_v19  ;;  %v2350_v20 = vld [vmem:[#allocation12 + $0x178] sm:$0xff] }
 0xb43   : > { %v3715_v23 = vpop.eup %3714  ;;  %3403 = vmatpush3.bf16.msra.mxu1 %v3400_v27  ;;  %v2320_v27 = vld [vmem:[#allocation12 + $0x88] sm:$0xff] }
 0xb44   : > { %v1997_v24 = vmul.f32 %v3715_v23, %v3711_v14  ;;  %3405 = vmatprep.subr.bf16.mxu1 %v3404_v30  ;;  %v3464_v14 = vpack.c.bf16 %v2310_v11, %v2306_v10  ;;  %v2311_v23 = vld [vmem:[#allocation12 + $0x40] sm:$0xff]  ;;  %v3440_v31 = vpack.c.bf16 %v2324_v29, %v2320_v27  ;;  %v2356_v29 = vld [vmem:[#allocation12 + $0x1a8] sm:$0xff] }
 0xb45   : > { %v2335_v11 = vld [vmem:[#allocation12 + $0x100] sm:$0xff] }
 0xb46   : > { %3299 = vmatmul.mubr.msk.f32.vlgmr.msra.gmra.mrb[24].mxu0 %vm965_vm3, %v1997_v24  ;;  %v2315_v24 = vld [vmem:[#allocation12 + $0x60] sm:$0xff] }
 0xb47   : > { %2453 = vmatprep.mubr.f32.mxu0 %v4043_v6  ;;  %3407 = vmatpush3.bf16.msra.mxu1 %v3404_v30  ;;  %v3438_v25 = vpack.c.bf16 %v2315_v24, %v2311_v23  ;;  %v3470_v30 = vpack.c.bf16 %v2317_v26, %v2313_v59  ;;  %v2345_v59 = vld [vmem:[#allocation12 + $0x150] sm:$0xff]  ;;  %v2352_v26 = vld [vmem:[#allocation12 + $0x188] sm:$0xff] }
 0xb48   : > { %3409 = vmatprep.subr.bf16.mxu1 %v3408_v34  ;;  %3435 = vmatpush1.bf16.msra.mxu0 %v3434_v15  ;;  %v2337_v15 = vld [vmem:[#allocation12 + $0x110] sm:$0xff] }
 0xb49   : > { %v3482_v17 = vpack.c.bf16 %v2341_v16, %v2337_v15  ;;  %v2624_v15 = vld [vmem:[#allocation14 + $0x88] sm:$0xff]  ;;  %v2655_v16 = vld [vmem:[#allocation14 + $0x180] sm:$0xff] }
 0xb4b   : > { %3411 = vmatpush3.bf16.msra.mxu1 %v3408_v34  ;;  %v2326_v34 = vld [vmem:[#allocation12 + $0xb8] sm:$0xff] }
 0xb4c   : > { %3413 = vmatprep.subr.bf16.mxu1 %v3412_v58  ;;  %v3472_v57 = vpack.c.bf16 %v2326_v34, %v2322_v33  ;;  %v3456_v33 = vpack.c.bf16 %v2356_v29, %v2352_v26  ;;  %v2609_v26 = vld [vmem:[#allocation14 + $0x10] sm:$0xff] }
 0xb4f   : > { %3415 = vmatpush3.bf16.msra.mxu1 %v3412_v58  ;;  %v2323_v58 = vld [vmem:[#allocation12 + $0xa0] sm:$0xff] }
 0xb50   : > { %3417 = vmatprep.subr.bf16.mxu1 %v3416_v37 }
 0xb53   : > { %3419 = vmatpush3.bf16.msra.mxu1 %v3416_v37  ;;  %v3442_v37 = vpack.c.bf16 %v2323_v58, %v2319_v49  ;;  %v2351_v49 = vld [vmem:[#allocation12 + $0x180] sm:$0xff]  ;;  %v2353_v58 = vld [vmem:[#allocation12 + $0x190] sm:$0xff] }
 0xb54   : > { %3421 = vmatprep.subr.bf16.mxu1 %v3420_v40 }
 0xb57   : > { %3423 = vmatpush3.bf16.msra.mxu1 %v3420_v40 }
 0xb58   : > { %3425 = vmatprep.subr.bf16.mxu1 %v3424_v45 }
 0xb5b   : > { %3427 = vmatpush3.bf16.msra.mxu1 %v3424_v45 }
 0xb5c   : > { %3429 = vmatprep.subr.bf16.mxu1 %v3428_v47 }
 0xb5f   : > { %3431 = vmatpush3.bf16.msra.mxu1 %v3428_v47 }
 0xb60   : > { %3465 = vmatprep.subr.bf16.mxu1 %v3464_v14  ;;  %v3450_v14 = vpack.c.bf16 %v2339_v12, %v2335_v11 }
 0xc15   : > { %v2070_v48 = vpop.f32.mrb[10].mxu1 }
 0xc16   : > { %2152 = vrot.lane.b32.xlu0 %v2070_v48, %s4045_s30  ;;  %v3295_v50 = vpop.f32.mrb[11].mxu1  ;;  %v2328_v48 = vld [vmem:[#allocation12 + $0xc8] sm:$0xff] }
 0xc17   : > { %v2332_v50 = vld [vmem:[#allocation12 + $0xe8] sm:$0xff] }
 0xc19   : > { %v2146_v51 = vpop.f32.mrb[24].mxu0 }
 0xc1a   : > { %2154 = vrot.lane.b32.xlu1 %v2146_v51, %s4045_s30  ;;  %v3300_v53 = vpop.f32.mrb[25].mxu0  ;;  %v2330_v51 = vld [vmem:[#allocation12 + $0xd8] sm:$0xff]  ;;  %s4777_s30 = sld [smem:[#allocation25_spill]] }
 0xc1b   : > { %v3444_v53 = vpack.c.bf16 %v2332_v50, %v2328_v48  ;;  %v2363_v48 = vld [vmem:[#allocation12 + $0x1e0] sm:$0xff]  ;;  %v2361_v50 = vld [vmem:[#allocation12 + $0x1d0] sm:$0xff] }
 0xc88   : > { %v2153_v55 = vpop.permute.xlu0 %2152 }
 0xc89   : > { %2159 = vst.msk [vmem:[#allocation2] sm:$0xff] %vm2158_vm6, %v2153_v55  ;;  %v2334_v55 = vld [vmem:[#allocation12 + $0xf8] sm:$0xff] }
 0xc8c   : > { %v2155_v56 = vpop.permute.xlu1 %2154 }
 0xc8d   : > { %2160 = vst.msk [vmem:[#allocation2 + $0x8] sm:$0xff] %vm2158_vm6, %v2155_v56  ;;  %v2327_v56 = vld [vmem:[#allocation12 + $0xc0] sm:$0xff] }
 0xc90   : > { %v2161_v60 = vld [vmem:[#allocation2] sm:$0xff] }
 0xc91   : > { %3333 = vmatprep.mubr.f32.mxu1 %v2161_v60  ;;  %v2331_v60 = vld [vmem:[#allocation12 + $0xe0] sm:$0xff] }
 0xc94   : > { %v2162_v62 = vld [vmem:[#allocation2 + $0x8] sm:$0xff] }
 0xc95   : > { %3334 = vmatmul.mubr.f32.vlgmr.msra.gmra.mrb[12].mxu1 %v2162_v62  ;;  %v3476_v62 = vpack.c.bf16 %v2334_v55, %v2330_v51  ;;  %v2365_v51 = vld [vmem:[#allocation12 + $0x1f0] sm:$0xff] }
 0xc96   : > { %2530 = vmatprep.mubr.f32.mxu1 %v4043_v6  ;;  %3467 = vmatpush1.bf16.msra.mxu1 %v3466_v18  ;;  %v2348_v18 = vld [vmem:[#allocation12 + $0x168] sm:$0xff]  ;;  %v3494_v55 = vpack.c.bf16 %v2365_v51, %v2361_v50  ;;  %v2661_v50 = vld [vmem:[#allocation14 + $0x1b0] sm:$0xff] }
 0xc97   : > { %3469 = vmatprep.subr.bf16.mxu1 %v3468_v22  ;;  %v2347_v22 = vld [vmem:[#allocation12 + $0x160] sm:$0xff] }
 0xc9a   : > { %3471 = vmatpush1.bf16.msra.mxu1 %v3470_v30  ;;  %v2354_v30 = vld [vmem:[#allocation12 + $0x198] sm:$0xff] }
 0xc9b   : > { %3473 = vmatprep.subr.bf16.mxu1 %v3472_v57  ;;  %v2355_v57 = vld [vmem:[#allocation12 + $0x1a0] sm:$0xff] }
 0xc9c   : > { %v3458_v35 = vpack.c.bf16 %v2355_v57, %v2351_v49  ;;  %v2627_v49 = vld [vmem:[#allocation14 + $0xa0] sm:$0xff]  ;;  %v2628_v57 = vld [vmem:[#allocation14 + $0xa8] sm:$0xff] }
 0xc9e   : > { %3475 = vmatpush1.bf16.msra.mxu1 %v3474_v38  ;;  %v2364_v38 = vld [vmem:[#allocation12 + $0x1e8] sm:$0xff] }
 0xc9f   : > { %3477 = vmatprep.subr.bf16.mxu1 %v3476_v62 }
 0xd68   : > { %v3335_v2 = vpop.f32.mrb[12].mxu1 }
 0xd69   : > { %v2258_v3 = vadd.f32 %v3335_v2, %v3023_v63  ;;  %v2252_v4 = vpop.f32.mrb[13].mxu1  ;;  %v2329_v2 = vld [vmem:[#allocation12 + $0xd0] sm:$0xff] }
 0xd6a   : > { %v2253_v5 = vadd.f32 %v3023_v63, %v2252_v4  ;;  %v3446_v63 = vpack.c.bf16 %v2331_v60, %v2327_v56 }
 0xd6b   : > { %v4618_v7 = vadd.f32 %v2258_v3, %v4411_v1  ;;  %v2312_v1 = vld [vmem:[#allocation12 + $0x48] sm:$0xff]  ;;  %v2333_v3 = vld [vmem:[#allocation12 + $0xf0] sm:$0xff] }
 0xd6c   : > { %v4621_v8 = vadd.f32 %v2253_v5, %v4408_v0  ;;  %v2316_v0 = vld [vmem:[#allocation12 + $0x68] sm:$0xff]  ;;  %v3478_v4 = vpack.c.bf16 %v2333_v3, %v2329_v2 }
 0xd6d   : > { %2267 = vadd.xlane.f32.xlu1 %v4618_v7  ;;  %v3436_v21 = vpack.c.bf16 %v2316_v0, %v2312_v1  ;;  %v2336_v5 = vld [vmem:[#allocation12 + $0x108] sm:$0xff]  ;;  %v2346_v0 = vld [vmem:[#allocation12 + $0x158] sm:$0xff] }
 0xd6e   : > { %2265 = vadd.xlane.f32.xlu0 %v4621_v8  ;;  %3479 = vmatpush1.bf16.msra.mxu1 %v3478_v4  ;;  %v3448_v10 = vpack.c.bf16 %v2340_v61, %v2336_v5  ;;  %v2344_v1 = vld [vmem:[#allocation12 + $0x148] sm:$0xff]  ;;  %v3484_v23 = vpack.c.bf16 %v2350_v20, %v2346_v0 }
 0xd6f   : > { %3437 = vmatprep.subr.bf16.mxu0 %v3436_v21  ;;  %3481 = vmatprep.subr.bf16.mxu1 %v3480_v13  ;;  %v3452_v19 = vpack.c.bf16 %v2348_v18, %v2344_v1  ;;  %v2343_v21 = vld [vmem:[#allocation12 + $0x140] sm:$0xff]  ;;  %v3024_v5 = vld [vmem:[%s4775_s23] ss:$0 sm:$0xff] }
 0xd70   : > { %3439 = vmatpush1.bf16.msra.mxu0 %v3438_v25  ;;  %v3454_v24 = vpack.c.bf16 %v2347_v22, %v2343_v21  ;;  %v2349_v25 = vld [vmem:[#allocation12 + $0x170] sm:$0xff]  ;;  %v2656_v1 = vld [vmem:[#allocation14 + $0x188] sm:$0xff]  ;;  %v2607_v18 = vld [vmem:[#allocation14] sm:$0xff] }
 0xd71   : > { %3441 = vmatprep.subr.bf16.mxu0 %v3440_v31  ;;  %v3486_v27 = vpack.c.bf16 %v2349_v25, %v2345_v59  ;;  %v2358_v31 = vld [vmem:[#allocation12 + $0x1b8] sm:$0xff]  ;;  %v2608_v0 = vld [vmem:[#allocation14 + $0x8] sm:$0xff] }
 0xd72   : > { %3483 = vmatpush1.bf16.msra.mxu1 %v3482_v17  ;;  %v3488_v34 = vpack.c.bf16 %v2358_v31, %v2354_v30  ;;  %v3498_v20 = vpack.c.bf16 %v2608_v0, %v2607_v18  ;;  %v2640_v21 = vld [vmem:[#allocation14 + $0x108] sm:$0xff]  ;;  %v2658_v25 = vld [vmem:[#allocation14 + $0x198] sm:$0xff]  ;;  %v2641_v31 = vld [vmem:[#allocation14 + $0x110] sm:$0xff] }
 0xd73   : > { %3485 = vmatprep.subr.bf16.mxu1 %v3484_v23  ;;  %v2625_v23 = vld [vmem:[#allocation14 + $0x90] sm:$0xff]  ;;  %v2666_v0 = vld [vmem:[#allocation14 + $0x1d8] sm:$0xff] }
 0xd74   : > { %3443 = vmatpush1.bf16.msra.mxu0 %v3442_v37  ;;  %v2360_v37 = vld [vmem:[#allocation12 + $0x1c8] sm:$0xff] }
 0xd75   : > { %3445 = vmatprep.subr.bf16.mxu0 %v3444_v53 }
 0xd76   : > { %3487 = vmatpush1.bf16.msra.mxu1 %v3486_v27  ;;  %v2610_v27 = vld [vmem:[#allocation14 + $0x18] sm:$0xff] }
 0xd77   : > { %3489 = vmatprep.subr.bf16.mxu1 %v3488_v34  ;;  %v3502_v30 = vpack.c.bf16 %v2610_v27, %v2609_v26  ;;  %v2668_v27 = vld [vmem:[#allocation14 + $0x1e8] sm:$0xff] }
 0xd78   : > { %3447 = vmatpush1.bf16.msra.mxu0 %v3446_v63 }
 0xd79   : > { %3449 = vmatprep.subr.bf16.mxu0 %v3448_v10 }
 0xd7c   : > { %3451 = vmatpush1.bf16.msra.mxu0 %v3450_v14 }
 0xd7d   : > { %3453 = vmatprep.subr.bf16.mxu0 %v3452_v19  ;;  %v3528_v19 = vpack.c.bf16 %v2656_v1, %v2655_v16  ;;  %v2633_v16 = vld [vmem:[#allocation14 + $0xd0] sm:$0xff] }
 0xd7e   : > { %v2665_v1 = vld [vmem:[#allocation14 + $0x1d0] sm:$0xff] }
 0xd80   : > { %3455 = vmatpush1.bf16.msra.mxu0 %v3454_v24  ;;  %v2657_v24 = vld [vmem:[#allocation14 + $0x190] sm:$0xff] }
 0xd81   : > { %3457 = vmatprep.subr.bf16.mxu0 %v3456_v33  ;;  %v3532_v29 = vpack.c.bf16 %v2658_v25, %v2657_v24  ;;  %v2642_v33 = vld [vmem:[#allocation14 + $0x118] sm:$0xff]  ;;  %v2635_v24 = vld [vmem:[#allocation14 + $0xe0] sm:$0xff] }
 0xd82   : > { %v3534_v34 = vpack.c.bf16 %v2642_v33, %v2641_v31  ;;  %v2667_v25 = vld [vmem:[#allocation14 + $0x1e0] sm:$0xff] }
 0xd83   : > { %v3552_v31 = vpack.c.bf16 %v2668_v27, %v2667_v25 }
 0xd84   : > { %3459 = vmatpush1.bf16.msra.mxu0 %v3458_v35  ;;  %v3504_v35 = vpack.c.bf16 %v2628_v57, %v2627_v49  ;;  %v2652_v49 = vld [vmem:[#allocation14 + $0x168] sm:$0xff] }
 0xdfa   : > { %v2268_v28 = vpop.xlane.xlu1 %2267 }
 0xdfb   : > { %v2266_v40 = vpop.xlane.xlu0 %2265  ;;  %v2270_v42 = vmul.f32 0.0078125, %v2268_v28  ;;  %v3490_v28 = vpack.c.bf16 %v2357_v36, %v2353_v58  ;;  %v2659_v58 = vld [vmem:[#allocation14 + $0x1a0] sm:$0xff]  ;;  %v2660_v36 = vld [vmem:[#allocation14 + $0x1a8] sm:$0xff] }
 0xdfc   : > { %v2269_v44 = vmul.f32 0.0078125, %v2266_v40  ;;  %v3460_v40 = vpack.c.bf16 %v2364_v38, %v2360_v37  ;;  %v2611_v37 = vld [vmem:[#allocation14 + $0x20] sm:$0xff]  ;;  %v2612_v38 = vld [vmem:[#allocation14 + $0x28] sm:$0xff] }
 0xdfd   : > { %v4629_v52 = vsub.f32 %v4618_v7, %v2270_v42  ;;  %v2362_v42 = vld [vmem:[#allocation12 + $0x1d8] sm:$0xff]  ;;  %3491 = vmatpush1.bf16.msra.mxu1 %v3490_v28  ;;  %v3536_v28 = vpack.c.bf16 %v2660_v36, %v2659_v58  ;;  %v2637_v58 = vld [vmem:[#allocation14 + $0xf0] sm:$0xff] }
 0xdfe   : > { %v4626_v45 = vsub.f32 %v4621_v8, %v2269_v44  ;;  %v2366_v44 = vld [vmem:[#allocation12 + $0x1f8] sm:$0xff]  ;;  %3461 = vmatprep.subr.bf16.mxu0 %v3460_v40  ;;  %v3506_v40 = vpack.c.bf16 %v2612_v38, %v2611_v37  ;;  %v2669_v36 = vld [vmem:[#allocation14 + $0x1f0] sm:$0xff] }
 0xdff   : > { %v2274_v47 = vmul.f32 %v4629_v52, %v4629_v52  ;;  %v2670_v38 = vld [vmem:[#allocation14 + $0x1f8] sm:$0xff] }
 0xe00   : > { %v2273_v46 = vmul.f32 %v4626_v45, %v4626_v45 }
 0xe02   : > { %2275 = vadd.xlane.f32.xlu0 %v2273_v46  ;;  %v2359_v46 = vld [vmem:[#allocation12 + $0x1c0] sm:$0xff] }
 0xe03   : > { %v3462_v53 = vpack.c.bf16 %v2363_v48, %v2359_v46  ;;  %v2630_v48 = vld [vmem:[#allocation14 + $0xb8] sm:$0xff] }
 0xe05   : > { %3463 = vmatpush1.bf16.msra.mxu0 %v3462_v53  ;;  %v2662_v53 = vld [vmem:[#allocation14 + $0x1b8] sm:$0xff] }
 0xe06   : > { %2277 = vadd.xlane.f32.xlu0 %v2274_v47  ;;  %v3492_v47 = vpack.c.bf16 %v2366_v44, %v2362_v42  ;;  %v2643_v42 = vld [vmem:[#allocation14 + $0x120] sm:$0xff]  ;;  %v2644_v44 = vld [vmem:[#allocation14 + $0x128] sm:$0xff] }
 0xe07   : > { %v3538_v46 = vpack.c.bf16 %v2644_v44, %v2643_v42  ;;  %v3556_v42 = vpack.c.bf16 %v2670_v38, %v2669_v36 }
 0xe08   : > { %3493 = vmatprep.subr.bf16.mxu1 %v3492_v47  ;;  %v2629_v47 = vld [vmem:[#allocation14 + $0xb0] sm:$0xff] }
 0xe09   : > { %3495 = vmatpush1.bf16.msra.mxu1 %v3494_v55  ;;  %v3508_v51 = vpack.c.bf16 %v2630_v48, %v2629_v47  ;;  %v2613_v55 = vld [vmem:[#allocation14 + $0x30] sm:$0xff]  ;;  %v2654_v47 = vld [vmem:[#allocation14 + $0x178] sm:$0xff] }
 0xe0a   : > { %3529 = vmatprep.subr.bf16.mxu1 %v3528_v19  ;;  %v2617_v19 = vld [vmem:[#allocation14 + $0x50] sm:$0xff] }
 0xe8f   : > { %v2276_v56 = vpop.xlane.xlu0 %2275 }
 0xe90   : > { %v2279_v60 = vmul.f32 0.0078125, %v2276_v56  ;;  %v2614_v56 = vld [vmem:[#allocation14 + $0x38] sm:$0xff] }
 0xe92   : > { %v2281_v62 = vadd.f32 1e-05, %v2279_v60  ;;  %v3540_v60 = vpack.c.bf16 %v2662_v53, %v2661_v50  ;;  %v2367_v50 = vld [vmem:[%s4777_s30] sm:$0xf]  ;;  %s3956_s30 = scalar_lea.vmem %s3955_s24, 512 }
 0xe93   : > { %v2278_v63 = vpop.xlane.xlu0 %2277  ;;  %v2372_v53 = vrot.slane %v2367_v50, %v639_v32  ;;  %p3958_p3 = scmp.lt.s32.totalorder %s3956_s30, %s3950_s15 }
 0xe94   : > { %3716 = vrsqrt.f32 %v2281_v62  ;;  %v2280_v2 = vmul.f32 0.0078125, %v2278_v63  ;;  %v3510_v62 = vpack.c.bf16 %v2614_v56, %v2613_v55  ;;  %v2645_v63 = vld [vmem:[#allocation14 + $0x130] sm:$0xff]  ;;  %v2380_v55 = vrot.slane %v2367_v50, %v647_v43 }
 0xe95   : > { %v2376_v56 = vrot.slane %v2367_v50, %v643_v41  ;;  %p3959_p2 = por %p3958_p3, %p3957_p1 }
 0xe96   : > { %v2282_v3 = vadd.f32 1e-05, %v2280_v2  ;;  %v2646_v2 = vld [vmem:[#allocation14 + $0x138] sm:$0xff] }
 0xe97   : > { %p3960_p8 = pnand %p3959_p2, %p3953_p13 }
 0xe98   : > { %3718 = vrsqrt.f32 %v2282_v3  ;;  %v3542_v3 = vpack.c.bf16 %v2646_v2, %v2645_v63 }
 0xe9e   : > { %v3717_v4 = vpop.eup %3716 }
 0xe9f   : > { %v2285_v61 = vmul.f32 %v3717_v4, %v4626_v45  ;;  %v2623_v45 = vld [vmem:[#allocation14 + $0x80] sm:$0xff] }
 0xea0   : > { %v3496_v17 = vpack.c.bf16 %v2624_v15, %v2623_v45  ;;  %v2631_v4 = vld [vmem:[#allocation14 + $0xc0] sm:$0xff]  ;;  %v2648_v45 = vld [vmem:[#allocation14 + $0x148] sm:$0xff] }
 0xea1   : > { %v2293_v10 = vmul.f32 %v3024_v5, %v2285_v61  ;;  %v2663_v61 = vld [vmem:[#allocation14 + $0x1c0] sm:$0xff] }
 0xea2   : > { %v3719_v54 = vpop.eup %3718  ;;  %3497 = vmatprep.subr.bf16.mxu0 %v3496_v17  ;;  %v2634_v17 = vld [vmem:[#allocation14 + $0xd8] sm:$0xff] }
 0xea3   : > { %v2301_v11 = vadd.f32 %v3025_v9, %v2293_v10  ;;  %v2286_v12 = vmul.f32 %v3719_v54, %v4629_v52  ;;  %v2639_v52 = vld [vmem:[#allocation14 + $0x100] sm:$0xff]  ;;  %v2664_v10 = vld [vmem:[#allocation14 + $0x1c8] sm:$0xff]  ;;  %v3516_v18 = vpack.c.bf16 %v2634_v17, %v2633_v16 }
 0xea4   : > { %v3530_v22 = vpack.c.bf16 %v2640_v21, %v2639_v52  ;;  %v2615_v54 = vld [vmem:[#allocation14 + $0x40] sm:$0xff]  ;;  %v3548_v52 = vpack.c.bf16 %v2666_v0, %v2665_v1 }
 0xea5   : > { %2454 = vmatmul.mubr.f32.vlgmr.msra.gmra.mrb[26].mxu0 %v2301_v11  ;;  %2531 = vmatmul.mubr.f32.vlgmr.msra.gmra.mrb[14].mxu1 %v2301_v11  ;;  %v2294_v13 = vmul.f32 %v3024_v5, %v2286_v12  ;;  %v2632_v5 = vld [vmem:[#allocation14 + $0xc8] sm:$0xff]  ;;  %v3544_v12 = vpack.c.bf16 %v2664_v10, %v2663_v61 }
 0xea6   : > { %2459 = vmatprep.mubr.f32.mxu0 %v4043_v6  ;;  %2536 = vmatprep.mubr.f32.mxu1 %v4043_v6  ;;  %v2626_v6 = vld [vmem:[#allocation14 + $0x98] sm:$0xff]  ;;  %v2616_v11 = vld [vmem:[#allocation14 + $0x48] sm:$0xff] }
 0xea7   : > { %v2302_v14 = vadd.f32 %v3025_v9, %v2294_v13  ;;  %3499 = vmatpush3.bf16.msra.mxu0 %v3498_v20  ;;  %3531 = vmatpush3.bf16.msra.mxu1 %v3530_v22  ;;  %v3500_v59 = vpack.c.bf16 %v2626_v6, %v2625_v23  ;;  %v3512_v9 = vpack.c.bf16 %v2632_v5, %v2631_v4  ;;  %v2618_v20 = vld [vmem:[#allocation14 + $0x58] sm:$0xff]  ;;  %v2649_v22 = vld [vmem:[#allocation14 + $0x150] sm:$0xff] }
 0xea8   : > { %3533 = vmatprep.subr.bf16.mxu1 %v3532_v29  ;;  %v3514_v13 = vpack.c.bf16 %v2616_v11, %v2615_v54  ;;  %v3518_v21 = vpack.c.bf16 %v2618_v20, %v2617_v19  ;;  %v2650_v23 = vld [vmem:[#allocation14 + $0x158] sm:$0xff]  ;;  %v2619_v29 = vld [vmem:[#allocation14 + $0x60] sm:$0xff] }
 0xea9   : > { %2460 = vmatmul.mubr.f32.gmra.mrb[28].mxu0 %v2302_v14  ;;  %2537 = vmatmul.mubr.f32.gmra.mrb[16].mxu1 %v2302_v14  ;;  %v2647_v14 = vld [vmem:[#allocation14 + $0x140] sm:$0xff]  ;;  %v3550_v6 = vpack.c.bf16 %v2650_v23, %v2649_v22 }
 0xeaa   : > { %3501 = vmatprep.subr.bf16.mxu0 %v3500_v59  ;;  %v3546_v15 = vpack.c.bf16 %v2648_v45, %v2647_v14  ;;  %v2636_v59 = vld [vmem:[#allocation14 + $0xe8] sm:$0xff] }
 0xeab   : > { %3503 = vmatpush3.bf16.msra.mxu0 %v3502_v30  ;;  %3535 = vmatpush3.bf16.msra.mxu1 %v3534_v34  ;;  %v3520_v26 = vpack.c.bf16 %v2636_v59, %v2635_v24  ;;  %v2620_v30 = vld [vmem:[#allocation14 + $0x68] sm:$0xff]  ;;  %v2651_v34 = vld [vmem:[#allocation14 + $0x160] sm:$0xff] }
 0xeac   : > { %3505 = vmatprep.subr.bf16.mxu0 %v3504_v35  ;;  %3537 = vmatprep.subr.bf16.mxu1 %v3536_v28  ;;  %v3522_v33 = vpack.c.bf16 %v2620_v30, %v2619_v29  ;;  %v3554_v57 = vpack.c.bf16 %v2652_v49, %v2651_v34  ;;  %v2638_v35 = vld [vmem:[#allocation14 + $0xf8] sm:$0xff]  ;;  %v2621_v28 = vld [vmem:[#allocation14 + $0x70] sm:$0xff] }
 0xead   : > { %v3524_v37 = vpack.c.bf16 %v2638_v35, %v2637_v58 }
 0xeaf   : > { %3507 = vmatpush3.bf16.msra.mxu0 %v3506_v40  ;;  %3539 = vmatpush3.bf16.msra.mxu1 %v3538_v46  ;;  %v2622_v40 = vld [vmem:[#allocation14 + $0x78] sm:$0xff]  ;;  %v2653_v46 = vld [vmem:[#allocation14 + $0x170] sm:$0xff] }
 0xeb0   : > { %3509 = vmatprep.subr.bf16.mxu0 %v3508_v51  ;;  %3541 = vmatprep.subr.bf16.mxu1 %v3540_v60  ;;  %v3526_v44 = vpack.c.bf16 %v2622_v40, %v2621_v28  ;;  %v3558_v48 = vpack.c.bf16 %v2654_v47, %v2653_v46  ;;  %v2383_v51 = vsub.s32 3, %v4434_v39 }
 0xeb2   : > { %v2384_v60 = vrot.slane %v2367_v50, %v2383_v51 }
 0xeb3   : > { %3511 = vmatpush3.bf16.msra.mxu0 %v3510_v62  ;;  %3543 = vmatpush3.bf16.msra.mxu1 %v3542_v3 }
 0xeb4   : > { %3513 = vmatprep.subr.bf16.mxu0 %v3512_v9  ;;  %3545 = vmatprep.subr.bf16.mxu1 %v3544_v12 }
 0xeb7   : > { %3515 = vmatpush3.bf16.msra.mxu0 %v3514_v13  ;;  %3547 = vmatpush3.bf16.msra.mxu1 %v3546_v15 }
 0xeb8   : > { %3517 = vmatprep.subr.bf16.mxu0 %v3516_v18  ;;  %3549 = vmatprep.subr.bf16.mxu1 %v3548_v52 }
 0xebb   : > { %3519 = vmatpush3.bf16.msra.mxu0 %v3518_v21  ;;  %3551 = vmatpush3.bf16.msra.mxu1 %v3550_v6 }
 0xebc   : > { %3521 = vmatprep.subr.bf16.mxu0 %v3520_v26  ;;  %3553 = vmatprep.subr.bf16.mxu1 %v3552_v31 }
 0xebf   : > { %3523 = vmatpush3.bf16.msra.mxu0 %v3522_v33  ;;  %3555 = vmatpush3.bf16.msra.mxu1 %v3554_v57 }
 0xec0   : > { %3525 = vmatprep.subr.bf16.mxu0 %v3524_v37  ;;  %3557 = vmatprep.subr.bf16.mxu1 %v3556_v42 }
 0xec3   : > { %3527 = vmatpush3.bf16.msra.mxu0 %v3526_v44  ;;  %3559 = vmatpush3.bf16.msra.mxu1 %v3558_v48 }
 0xf78   : > { %v2455_v62 = vpop.f32.mrb[26].mxu0  ;;  %v2532_v63 = vpop.f32.mrb[14].mxu1 }
 0xf79   : > { %v4655_v2 = vadd.f32 %v2455_v62, %v2372_v53  ;;  %v4657_v3 = vadd.f32 %v2532_v63, %v2380_v55  ;;  %v2457_v4 = vpop.f32.mrb[27].mxu0  ;;  %v2534_v5 = vpop.f32.mrb[15].mxu1 }
 0xf7a   : > { %v2458_v61 = vadd.f32 %v2457_v4, %v2376_v56  ;;  %v4659_v9 = vadd.f32 %v2534_v5, %v2384_v60 }
 0xf7b   : > { %v3026_v32 = vmul.f32 -1.702, %v4655_v2  ;;  %v3028_v10 = vmul.f32 -1.702, %v4657_v3 }
 0xf7c   : > { %v3027_v43 = vmul.f32 -1.702, %v2458_v61  ;;  %v3029_v39 = vmul.f32 -1.702, %v4659_v9  ;;  %v2461_v41 = vpop.f32.mrb[28].mxu0  ;;  %v2538_v54 = vpop.f32.mrb[16].mxu1 }
 0xf7d   : > { %v2559_v11 = vmul.f32 1.442695, %v3026_v32  ;;  %v2563_v12 = vmul.f32 1.442695, %v3028_v10  ;;  %v4664_v13 = vadd.f32 %v2461_v41, %v2372_v53  ;;  %v4666_v14 = vadd.f32 %v2538_v54, %v2380_v55  ;;  %v2463_v45 = vpop.f32.mrb[29].mxu0  ;;  %v2540_v15 = vpop.f32.mrb[17].mxu1 }
 0xf7e   : > { %v2561_v16 = vmul.f32 1.442695, %v3027_v43  ;;  %v2565_v17 = vmul.f32 1.442695, %v3029_v39  ;;  %v2464_v1 = vadd.f32 %v2463_v45, %v2376_v56  ;;  %v2541_v18 = vadd.f32 %v2540_v15, %v2384_v60 }
 0xf7f   : > { %3720 = vpow2.f32 %v2559_v11  ;;  %v3030_v0 = vmul.f32 -1.702, %v4664_v13  ;;  %v3032_v19 = vmul.f32 -1.702, %v4666_v14 }
 0xf80   : > { %3722 = vpow2.f32 %v2563_v12  ;;  %v3031_v20 = vmul.f32 -1.702, %v2464_v1  ;;  %v3033_v52 = vmul.f32 -1.702, %v2541_v18 }
 0xf81   : > { %3724 = vpow2.f32 %v2561_v16  ;;  %v2567_v21 = vmul.f32 1.442695, %v3030_v0  ;;  %v2571_v22 = vmul.f32 1.442695, %v3032_v19 }
 0xf82   : > { %3726 = vpow2.f32 %v2565_v17  ;;  %v2569_v23 = vmul.f32 1.442695, %v3031_v20  ;;  %v2573_v6 = vmul.f32 1.442695, %v3033_v52 }
 0xf83   : > { %3728 = vpow2.f32 %v2567_v21 }
 0xf84   : > { %3730 = vpow2.f32 %v2571_v22 }
 0xf85   : > { %3732 = vpow2.f32 %v2569_v23 }
 0xf86   : > { %3734 = vpow2.f32 %v2573_v6 }
 0xf89   : > { %v3721_v24 = vpop.eup %3720 }
 0xf8a   : > { %v3723_v59 = vpop.eup %3722  ;;  %v2575_v25 = vadd.f32 1.0, %v3721_v24 }
 0xf8b   : > { %v3725_v26 = vpop.eup %3724  ;;  %v2577_v27 = vadd.f32 1.0, %v3723_v59 }
 0xf8c   : > { %v3727_v29 = vpop.eup %3726  ;;  %3736 = vrcp.f32 %v2575_v25  ;;  %v2576_v30 = vadd.f32 1.0, %v3725_v26 }
 0xf8d   : > { %v3729_v31 = vpop.eup %3728  ;;  %3738 = vrcp.f32 %v2577_v27  ;;  %v2578_v33 = vadd.f32 1.0, %v3727_v29 }
 0xf8e   : > { %v3731_v34 = vpop.eup %3730  ;;  %3740 = vrcp.f32 %v2576_v30  ;;  %v2579_v49 = vadd.f32 1.0, %v3729_v31 }
 0xf8f   : > { %v3733_v57 = vpop.eup %3732  ;;  %3742 = vrcp.f32 %v2578_v33  ;;  %v2581_v58 = vadd.f32 1.0, %v3731_v34 }
 0xf90   : > { %v3735_v35 = vpop.eup %3734  ;;  %3744 = vrcp.f32 %v2579_v49  ;;  %v2580_v36 = vadd.f32 1.0, %v3733_v57 }
 0xf91   : > { %3746 = vrcp.f32 %v2581_v58  ;;  %v2582_v37 = vadd.f32 1.0, %v3735_v35 }
 0xf92   : > { %3748 = vrcp.f32 %v2580_v36 }
 0xf93   : > { %3750 = vrcp.f32 %v2582_v37 }
 0xf96   : > { %v3737_v38 = vpop.eup %3736 }
 0xf97   : > { %v3739_v28 = vpop.eup %3738  ;;  %v2599_v47 = vmul.f32 %v3737_v38, %v4655_v2 }
 0xf98   : > { %v3741_v40 = vpop.eup %3740  ;;  %v2601_v51 = vmul.f32 %v3739_v28, %v4657_v3  ;;  %v3034_v3 = vld [vmem:[%s4778_s18] ss:$0 sm:$0xff] }
 0xf99   : > { %v3743_v42 = vpop.eup %3742  ;;  %v2600_v44 = vmul.f32 %v3741_v40, %v2458_v61 }
 0xf9a   : > { %v3745_v46 = vpop.eup %3744  ;;  %v2602_v48 = vmul.f32 %v3743_v42, %v4659_v9 }
 0xf9b   : > { %v3747_v50 = vpop.eup %3746  ;;  %2742 = vmatprep.mubr.f32.mxu0 %v2600_v44  ;;  %v2603_v60 = vmul.f32 %v3745_v46, %v4664_v13 }
 0xf9c   : > { %v3749_v53 = vpop.eup %3748  ;;  %2817 = vmatprep.mubr.f32.mxu1 %v2602_v48  ;;  %2743 = vmatmul.mubr.f32.vlgmr.msra.gmra.mrb[30].mxu0 %v2599_v47  ;;  %v2605_v63 = vmul.f32 %v3747_v50, %v4666_v14 }
 0xf9d   : > { %v3751_v55 = vpop.eup %3750  ;;  %v2604_v56 = vmul.f32 %v3749_v53, %v2464_v1  ;;  %2818 = vmatmul.mubr.f32.vlgmr.msra.gmra.mrb[18].mxu1 %v2601_v51 }
 0xf9e   : > { %v2606_v62 = vmul.f32 %v3751_v55, %v2541_v18 }
 0xf9f   : > { %2747 = vmatprep.mubr.f32.mxu0 %v2604_v56 }
 0xfa0   : > { %2822 = vmatprep.mubr.f32.mxu1 %v2606_v62  ;;  %2748 = vmatmul.mubr.f32.gmra.mrb[32].mxu0 %v2603_v60 }
 0xfa1   : > { %2823 = vmatmul.mubr.f32.gmra.mrb[20].mxu1 %v2605_v63 }
0x106f   : > { %v3142_v2 = vpop.f32.mrb[30].mxu0 }
0x1070   : > { %v3180_v4 = vpop.f32.mrb[18].mxu1  ;;  %v3143_v5 = vpop.f32.mrb[31].mxu0 }
0x1071   : > { %v3144_v61 = vadd.f32 %v3143_v5, %v3142_v2  ;;  %v3181_v9 = vpop.f32.mrb[19].mxu1 }
0x1072   : > { %v3182_v32 = vadd.f32 %v3181_v9, %v3180_v4 }
0x1073   : > { %v2745_v10 = vadd.f32 %v3144_v61, %v3034_v3  ;;  %v3145_v43 = vpop.f32.mrb[32].mxu0 }
0x1074   : > { %v3183_v39 = vpop.f32.mrb[20].mxu1  ;;  %v3146_v41 = vpop.f32.mrb[33].mxu0 }
0x1075   : > { %v2820_v54 = vadd.f32 %v3182_v32, %v2745_v10  ;;  %v3147_v11 = vadd.f32 %v3146_v41, %v3145_v43  ;;  %v3184_v12 = vpop.f32.mrb[21].mxu1 }
0x1076   : > { %v3185_v13 = vadd.f32 %v3184_v12, %v3183_v39 }
0x1077   : > { %v2828_v14 = vadd.f32 %v2820_v54, %v4621_v8  ;;  %v2750_v45 = vadd.f32 %v3147_v11, %v3034_v3 }
0x1079   : > { %2830 = vst [vmem:[%s541_s20] sm:$0xff] %v2828_v14  ;;  %v2825_v15 = vadd.f32 %v3185_v13, %v2750_v45 }
0x107b   : > { %v2829_v16 = vadd.f32 %v2825_v15, %v4618_v7 }
0x107d   : > { %2831 = vst [vmem:[%s541_s20 + $0x8] sm:$0xff] %v2829_v16 }
0x107e   : > { %3963 = shalt.err (!%p3960_p8)
}
0x107f   : > { %s3964_s3 = scalar_lea.hbm %s4687_s17, 256  ;;  %s3968_s20 = scalar_lea.hbm %s4779_s22, 512 }
0x1080   : > { %p3965_p10 = scmp.ne.s32.totalorder %s4687_s17, %s3964_s3  ;;  %p3969_p0 = scmp.lt.u32.totalorder %s4687_s17, %s4779_s22 }
0x1081   : > { %p3970_p5 = scmp.lt.u32.totalorder %s3968_s20, %s3964_s3  ;;  %p3972_p6 = scmp.lt.u32.totalorder %s3964_s3, %s4687_s17 }
0x1082   : > { %p3966_p11 = pnand %p3965_p10, %p4780_p9 }
0x1083   : > { %p3971_p7 = por %p3970_p5, %p3969_p0 }
0x1084   : > { %p3967_p12 = pneg %p3966_p11 }
0x1085   : > { %p3973_p4 = por %p3972_p6, %p3971_p7 }
0x1087   : > { %p3974_p13 = pnand %p3973_p4, %p3967_p12 }
0x1089   : > { %3977 = shalt.err (!%p3974_p13)
}
0x108a   : > { %s4049_s19 = smov 128   ;;  %s4050_s15 = smov 8  }
0x108b   : > { %3586 = dma.vmem_to_hbm [thread:$0]  (%p4780_p9), %s4682_s7, 256, %s4687_s17, %s2833_s1, %s4049_s19, %s4049_s19, %s4050_s15  }
0x108c PF: > { %s2861_s14 = sand.u32 1, %s4016_s25   ;;  %p4781_p1 = scmp.ne.s32.totalorder %s4766_s12, 0 }
0x108d   : > { %p4782_p3 = scmp.ge.s32.totalorder %s4028_s28, 2  ;;  %s2862_s24 = scalar_lea.sflag [#allocation5], %s2861_s14 }
0x108f   : > { %p3612_p2 = pnand %p4782_p3, %p4781_p1 }
0x1091   : > { %4011 = dma.done.wait (!%p3612_p2), %s2862_s24, 256  }
0x1092   : > { %4013 = vsyncadd (!%p3612_p2), %s2862_s24, 4294967040  ;;  %p29_p8 = scmp.ge.s32.totalorder %s4304_s16, 4   ;;  %s4783_s25 = smov %s4020_s26 }
0x1093   : > { %s4784_s26 = smov %s4024_s27  ;;  %s4785_s27 = smov %s4315_s10 }
0x1094   : > { %s4786_s28 = smov %s4304_s16  ;;  %31 = sbr.rel (!%p29_p8) target bundleno = 16 (0x10), region = 141 }
0x109b   :  { %2867 = vsyncpa [#allocation4], 1 }
0x109c   :  { %2869 = vsyncpa [#allocation4 + $0x1], 1 }
0x109d   :  { %2870 = vsyncpa [#allocation7], 1 }
0x109e   :  { %2871 = vsyncpa [#allocation10], 1 }
0x109f   :  { %2872 = vsyncpa [#allocation13], 1 }
0x10a0   :  { %2873 = vsyncpa [#allocation5], 1 }
0x10a1   :  { %2875 = vsyncpa [#allocation5 + $0x1], 1 }

</bundles_post_ra>
